<compile_context>
chip_gen: v5e
topology: v5e:2x2
jax: 0.10.0
libtpu: 0.0.40
codegen_flags: <defaults>
</compile_context>

<pallas_src>
import functools

import jax
import jax.numpy as jnp
from jax.experimental import pallas as pl
from jax.experimental.pallas import tpu as pltpu

# ----------------------------- configuration -------------------------------
B = 2            # batch
C = 3            # image channels
IMG = 16         # image height/width
PATCH = 8        # patch size -> 2x2 = 4 patches
P = (IMG // PATCH) ** 2          # image tokens (4)
PATCH_DIM = C * PATCH * PATCH    # 192
DV = 24          # vision hidden size
H = 32           # lm hidden size
I = 64           # ffn intermediate size
E = 4            # num experts
NH = 4           # attention heads
DH = H // NH     # head dim (8)
L = 2            # decoder layers
V = 64           # vocab size
S = 8            # text sequence length
T = P + S        # combined sequence length (12)
BT = B * T       # fused batch*seq rows (24)
EI = E * I       # concatenated expert intermediate (256)
VPAD = 128       # lm_head output padded to a full lane tile
RLANES = 128     # router output slab lanes (probs | logits | zeros)
ALPHA, BETA = 0.01, 0.01         # aux-loss weights (returned separately)


# ------------------------------ shared helpers ------------------------------
def _ln(v, g, b, eps=1e-5):
    mu = jnp.mean(v, axis=-1, keepdims=True)
    var = jnp.mean((v - mu) ** 2, axis=-1, keepdims=True)
    return (v - mu) * jax.lax.rsqrt(var + eps) * g + b


# ------------------------------ vision kernel -------------------------------
def _vision_kernel(px_ref, vw_ref, vb_ref, lng_ref, lnb_ref, pw_ref, pb_ref,
                   o_ref):
    # fused: patch-embed matmul + LayerNorm + projection (use_perceiver=False),
    # batch fused into rows ([B*P, PATCH_DIM]) -> single grid step.
    px = px_ref[...].astype(jnp.bfloat16)
    v = jnp.dot(px, vw_ref[...], preferred_element_type=jnp.float32) + vb_ref[...]
    v = _ln(v, lng_ref[...], lnb_ref[...])
    o_ref[...] = (
        jnp.dot(v.astype(jnp.bfloat16), pw_ref[...],
                preferred_element_type=jnp.float32) + pb_ref[...]
    )


def vision_embed(px, p):
    """px: [B*P, PATCH_DIM] -> image embeddings [B*P, H]."""
    n, dp = px.shape
    return pl.pallas_call(
        _vision_kernel,
        out_shape=jax.ShapeDtypeStruct((n, H), jnp.float32),
        grid=(1,),
        in_specs=[
            pl.BlockSpec((n, dp), lambda i: (0, 0)),
            pl.BlockSpec((dp, DV), lambda i: (0, 0)),
            pl.BlockSpec((1, DV), lambda i: (0, 0)),
            pl.BlockSpec((1, DV), lambda i: (0, 0)),
            pl.BlockSpec((1, DV), lambda i: (0, 0)),
            pl.BlockSpec((DV, H), lambda i: (0, 0)),
            pl.BlockSpec((1, H), lambda i: (0, 0)),
        ],
        out_specs=pl.BlockSpec((n, H), lambda i: (0, 0)),
        compiler_params=pltpu.CompilerParams(dimension_semantics=("arbitrary",)),
    )(px, p["vis_w"], p["vis_b"], p["vis_ln_g"], p["vis_ln_b"],
      p["proj_w"], p["proj_b"])


# -------------------- fused decoder stack + lm_head kernel ------------------
def _decoder_stack_kernel(x0_ref, bias_ref, lane_e_ref,
                          ln1g_ref, ln1b_ref, wq_ref, wk_ref, wv_ref, wo_ref,
                          ln2g_ref, ln2b_ref, wr_ref, br_ref, wgu_ref, wd_ref,
                          fing_ref, finb_ref, wlm_ref,
                          router_ref, lmout_ref,
                          x_sc,
                          *, num_heads, head_dim, num_experts, inter,
                          router_lanes):
    l = pl.program_id(0)

    # activations live in VMEM scratch across the whole layer ("arbitrary") axis
    @pl.when(l == 0)
    def _():
        x_sc[...] = x0_ref[...]

    x = x_sc[...]                                             # [BT, H] f32
    bt, hid = x.shape

    # ---- input LayerNorm + head-batched QKV projections (bf16 on MXU) ------
    h1 = _ln(x, ln1g_ref[0], ln1b_ref[0])
    h1b = h1.astype(jnp.bfloat16)
    xh = jnp.broadcast_to(h1b[None, :, :], (num_heads, bt, hid))   # [NH,BT,H]
    q4 = jnp.einsum("htc,hcd->htd", xh, wq_ref[0],
                    preferred_element_type=jnp.float32)            # [NH,BT,DH]
    k4 = jnp.einsum("htc,hcd->htd", xh, wk_ref[0],
                    preferred_element_type=jnp.float32)
    v4 = jnp.einsum("htc,hcd->htd", xh, wv_ref[0],
                    preferred_element_type=jnp.float32)
    q4 = q4 * (head_dim ** -0.5)

    # ---- all-head attention with block-diagonal causal+padding bias --------
    s = jnp.einsum("hqd,hkd->hqk", q4.astype(jnp.bfloat16),
                   k4.astype(jnp.bfloat16),
                   preferred_element_type=jnp.float32)             # [NH,BT,BT]
    s = s + bias_ref[...][None, :, :]
    s = s - jnp.max(s, axis=-1, keepdims=True)
    pa = jnp.exp(s)
    pa = pa * pl.reciprocal(jnp.sum(pa, axis=-1, keepdims=True), approx=True)
    o4 = jnp.einsum("hqk,hkd->hqd", pa.astype(jnp.bfloat16),
                    v4.astype(jnp.bfloat16),
                    preferred_element_type=jnp.float32)            # [NH,BT,DH]
    oh = jnp.einsum("htd,hdo->hto", o4.astype(jnp.bfloat16), wo_ref[0],
                    preferred_element_type=jnp.float32)            # [NH,BT,H]
    attn = jnp.sum(oh, axis=0)                                     # [BT, H]
    x1 = x + attn

    # ---- post-attention LayerNorm + MoE ExpertFFN --------------------------
    h2 = _ln(x1, ln2g_ref[0], ln2b_ref[0])
    h2b = h2.astype(jnp.bfloat16)
    logits = (jnp.dot(h2b, wr_ref[0], preferred_element_type=jnp.float32)
              + br_ref[0])                                         # [BT, E]
    m = jnp.max(logits, axis=-1, keepdims=True)
    ex = jnp.exp(logits - m)
    probs = ex / jnp.sum(ex, axis=-1, keepdims=True)   # exact divide (loss path)

    # top-1 index (first max, matching torch.topk(1) tie-breaking)
    mx = jnp.max(probs, axis=-1, keepdims=True)
    iota_e = jax.lax.broadcasted_iota(jnp.int32, probs.shape, 1)
    top_idx = jnp.min(jnp.where(probs >= mx, iota_e, num_experts),
                      axis=-1, keepdims=True)                      # [BT, 1]

    # concatenated expert gate/up: single lane-dense [H, 2*E*I] matmul
    gu = jnp.dot(h2b, wgu_ref[0], preferred_element_type=jnp.float32)  # [BT,2EI]
    ei = num_experts * inter
    g = gu[:, :ei]
    u = gu[:, ei:]
    act = g * (1.0 / (1.0 + jnp.exp(-g))) * u                      # SiLU(g)*u

    # masked-lane top-1: zero lanes of non-selected experts, one down matmul
    sel = (lane_e_ref[...] == top_idx).astype(jnp.float32)         # [BT, EI]
    y = jnp.dot((act * sel).astype(jnp.bfloat16), wd_ref[0],
                preferred_element_type=jnp.float32)                # [BT, H]
    x_new = x1 + y
    x_sc[...] = x_new

    # lane-dense router output slab: [probs | logits | zeros] -> 128 lanes
    padz = jnp.zeros((bt, router_lanes - 2 * num_experts), jnp.float32)
    router_ref[0] = jnp.concatenate([probs, logits, padz], axis=-1)

    # ---- fused final model norm + lm_head on the last layer step -----------
    @pl.when(l == pl.num_programs(0) - 1)
    def _():
        xn = _ln(x_new, fing_ref[...], finb_ref[...])
        lmout_ref[...] = jnp.dot(xn.astype(jnp.bfloat16), wlm_ref[...],
                                 preferred_element_type=jnp.float32)


def decoder_stack(x0, bias, lane_expert, p):
    """x0: [B*T, H] -> (router_slab [L, B*T, 128], lm_logits_padded [B*T, 128])."""
    operands = (x0, bias, lane_expert,
                p["ln1_g"], p["ln1_b"], p["wq"], p["wk"], p["wv"], p["wo"],
                p["ln2_g"], p["ln2_b"], p["router_w"], p["router_b"],
                p["wgu"], p["wd"],
                p["final_ln_g"], p["final_ln_b"], p["lm_head_w"])

    in_specs = [
        pl.BlockSpec((BT, H), lambda l: (0, 0)),               # x0 (read once)
        pl.BlockSpec((BT, BT), lambda l: (0, 0)),              # attention bias
        pl.BlockSpec((1, EI), lambda l: (0, 0)),               # lane->expert map
        pl.BlockSpec((1, 1, H), lambda l: (l, 0, 0)),          # ln1_g
        pl.BlockSpec((1, 1, H), lambda l: (l, 0, 0)),          # ln1_b
        pl.BlockSpec((1, NH, H, DH), lambda l: (l, 0, 0, 0)),  # wq (per head)
        pl.BlockSpec((1, NH, H, DH), lambda l: (l, 0, 0, 0)),  # wk
        pl.BlockSpec((1, NH, H, DH), lambda l: (l, 0, 0, 0)),  # wv
        pl.BlockSpec((1, NH, DH, H), lambda l: (l, 0, 0, 0)),  # wo
        pl.BlockSpec((1, 1, H), lambda l: (l, 0, 0)),          # ln2_g
        pl.BlockSpec((1, 1, H), lambda l: (l, 0, 0)),          # ln2_b
        pl.BlockSpec((1, H, E), lambda l: (l, 0, 0)),          # router_w
        pl.BlockSpec((1, 1, E), lambda l: (l, 0, 0)),          # router_b
        pl.BlockSpec((1, H, 2 * EI), lambda l: (l, 0, 0)),     # wgu (concat)
        pl.BlockSpec((1, EI, H), lambda l: (l, 0, 0)),         # wd (flattened)
        pl.BlockSpec((1, H), lambda l: (0, 0)),                # final_ln_g
        pl.BlockSpec((1, H), lambda l: (0, 0)),                # final_ln_b
        pl.BlockSpec((H, VPAD), lambda l: (0, 0)),             # lm_head (padded)
    ]
    out_shape = (jax.ShapeDtypeStruct((L, BT, RLANES), jnp.float32),
                 jax.ShapeDtypeStruct((BT, VPAD), jnp.float32))
    out_specs = (pl.BlockSpec((1, BT, RLANES), lambda l: (l, 0, 0)),
                 pl.BlockSpec((BT, VPAD), lambda l: (0, 0)))

    flops = L * (3 * 2 * BT * H * H            # q/k/v projections
                 + 2 * 2 * NH * BT * BT * DH   # scores + attn@V
                 + 2 * BT * H * H              # o-projection
                 + 2 * BT * H * E              # router
                 + 2 * BT * H * (2 * EI)       # gate/up
                 + 2 * BT * EI * H)            # down
    flops += 2 * BT * H * VPAD                 # lm head
    transc = L * (NH * BT * BT + BT * E + BT * EI)
    bytes_acc = sum(int(a.size) * a.dtype.itemsize for a in operands)
    bytes_acc += L * BT * RLANES * 4 + BT * VPAD * 4

    kern = functools.partial(_decoder_stack_kernel, num_heads=NH, head_dim=DH,
                             num_experts=E, inter=I, router_lanes=RLANES)
    return pl.pallas_call(
        kern,
        out_shape=out_shape,
        grid=(L,),
        in_specs=in_specs,
        out_specs=out_specs,
        scratch_shapes=[pltpu.VMEM((BT, H), jnp.float32)],
        compiler_params=pltpu.CompilerParams(
            dimension_semantics=("arbitrary",),
            vmem_limit_bytes=32 * 1024 * 1024),
        cost_estimate=pl.CostEstimate(flops=int(flops),
                                      transcendentals=int(transc),
                                      bytes_accessed=int(bytes_acc)),
    )(*operands)


# ------------------------------ parameter init ------------------------------
def init_params(key):
    ks = iter(jax.random.split(key, 128))
    bf = jnp.bfloat16

    def nrm(shape, std=0.02):
        return (std * jax.random.normal(next(ks), shape, jnp.float32))

    params = {
        # synthetic frozen vision encoder (patch embed + LN), bf16 weights
        "vis_w": nrm((PATCH_DIM, DV)).astype(bf),
        "vis_b": jnp.zeros((1, DV), jnp.float32),
        "vis_ln_g": jnp.ones((1, DV), jnp.float32),
        "vis_ln_b": jnp.zeros((1, DV), jnp.float32),
        # projection (use_perceiver=False path of VLM/VLMMoE)
        "proj_w": nrm((DV, H)).astype(bf),
        "proj_b": jnp.zeros((1, H), jnp.float32),
        # lm token embedding (gathered in XLA) + final norm
        "embed": nrm((V, H)),
        "final_ln_g": jnp.ones((1, H), jnp.float32),
        "final_ln_b": jnp.zeros((1, H), jnp.float32),
    }
    # lm_head padded to a full 128-lane tile (lane-dense store, sliced back)
    lm_w = nrm((H, V))
    params["lm_head_w"] = jnp.concatenate(
        [lm_w, jnp.zeros((H, VPAD - V), jnp.float32)], axis=1).astype(bf)

    ln1_g, ln1_b, ln2_g, ln2_b = [], [], [], []
    wq4, wk4, wv4, wo4, wr, br, wgu, wd = [], [], [], [], [], [], [], []
    for _ in range(L):
        wq, wk, wv, wo = nrm((H, H)), nrm((H, H)), nrm((H, H)), nrm((H, H))
        gate, up, down = nrm((H, I)), nrm((H, I)), nrm((I, H))
        ln1_g.append(jnp.ones((1, H), jnp.float32))
        ln1_b.append(jnp.zeros((1, H), jnp.float32))
        ln2_g.append(jnp.ones((1, H), jnp.float32))
        ln2_b.append(jnp.zeros((1, H), jnp.float32))
        # per-head layouts so attention is expressed as leading-batch einsums
        wq4.append(wq.reshape(H, NH, DH).transpose(1, 0, 2))   # [NH, H, DH]
        wk4.append(wk.reshape(H, NH, DH).transpose(1, 0, 2))
        wv4.append(wv.reshape(H, NH, DH).transpose(1, 0, 2))
        wo4.append(wo.reshape(NH, DH, H))                      # [NH, DH, H]
        # ExpertFFN: router ~ N(0, 0.02); experts are deepcopy clones.
        wr.append(nrm((H, E)))
        br.append(jnp.zeros((1, E), jnp.float32))
        # gate/up for all experts concatenated: [gate_e0..e3 | up_e0..e3]
        wgu.append(jnp.concatenate(
            [jnp.tile(gate, (1, E)), jnp.tile(up, (1, E))], axis=1))  # [H, 2EI]
        wd.append(jnp.tile(down, (E, 1)))                             # [EI, H]

    params["ln1_g"] = jnp.stack(ln1_g)
    params["ln1_b"] = jnp.stack(ln1_b)
    params["ln2_g"] = jnp.stack(ln2_g)
    params["ln2_b"] = jnp.stack(ln2_b)
    params["wq"] = jnp.stack(wq4).astype(bf)          # [L, NH, H, DH]
    params["wk"] = jnp.stack(wk4).astype(bf)
    params["wv"] = jnp.stack(wv4).astype(bf)
    params["wo"] = jnp.stack(wo4).astype(bf)          # [L, NH, DH, H]
    params["router_w"] = jnp.stack(wr).astype(bf)     # [L, H, E]
    params["router_b"] = jnp.stack(br)                # [L, 1, E]
    params["wgu"] = jnp.stack(wgu).astype(bf)         # [L, H, 2EI]
    params["wd"] = jnp.stack(wd).astype(bf)           # [L, EI, H]
    return params


# -------------------------------- aux losses --------------------------------
def load_balancing_loss(router_probs):
    # router_probs: [B, T, E] -- matches MoEDecoderLayer.compute_load_balancing_loss
    chosen = jnp.argmax(router_probs, axis=-1)                       # [B, T]
    total_tokens = router_probs.shape[0] * router_probs.shape[1]
    loss = 0.0
    for i in range(E):
        frac = jnp.sum(chosen == i).astype(jnp.float32) / total_tokens
        total_prob = jnp.sum(router_probs[:, :, i])
        loss = loss + frac * total_prob
    return loss * E


def router_z_loss(router_logits):
    lse = jax.scipy.special.logsumexp(router_logits, axis=-1)
    return jnp.mean(lse ** 2) * E


def cross_entropy(logits, labels):
    # logits: [B, T, V] (float32), labels: [B, T] with -100 ignored
    shift_logits = logits[:, :-1, :].reshape(-1, V)
    shift_labels = labels[:, 1:].reshape(-1)
    valid = shift_labels != -100
    safe = jnp.where(valid, shift_labels, 0)
    logp = jax.nn.log_softmax(shift_logits, axis=-1)
    nll = -jnp.take_along_axis(logp, safe[:, None], axis=1)[:, 0]
    return jnp.sum(jnp.where(valid, nll, 0.0)) / jnp.maximum(jnp.sum(valid), 1)


# ------------------------------- full forward -------------------------------
def vlm_moe_forward(params, input_ids, pixel_values, attention_mask, labels):
    b = input_ids.shape[0]

    # ---- vision encoder (synthetic Siglip stand-in): NCHW -> patch tokens ---
    px = pixel_values.reshape(b, C, IMG // PATCH, PATCH, IMG // PATCH, PATCH)
    px = jnp.transpose(px, (0, 2, 4, 1, 3, 5)).reshape(b * P, PATCH_DIM)
    img_emb = vision_embed(px, params).reshape(b, P, H)             # [B, P, H]

    # ---- token embeddings + concat, fused into [B*T, H] rows ---------------
    tok_emb = params["embed"][input_ids]                            # [B, S, H]
    x = jnp.concatenate([img_emb, tok_emb], axis=1).reshape(b * T, H)

    # ---- block-diagonal causal + key-padding bias over the fused axis ------
    image_attention = jnp.ones((b, P), attention_mask.dtype)
    key_mask = jnp.concatenate([image_attention, attention_mask], axis=1)
    key_mask = key_mask.reshape(-1).astype(jnp.float32)             # [BT]
    row = jnp.arange(b * T)
    col = jnp.arange(b * T)
    same_b = (row[:, None] // T) == (col[None, :] // T)
    causal = (col[None, :] % T) <= (row[:, None] % T)
    allowed = same_b & causal & (key_mask[None, :] > 0.0)
    bias = jnp.where(allowed, 0.0, -1e9).astype(jnp.float32)        # [BT, BT]

    # lane -> expert id map for the masked-lane top-1 MoE trick
    lane_expert = jnp.repeat(jnp.arange(E, dtype=jnp.int32), I).reshape(1, EI)

    # ---- fused decoder stack + final norm + lm_head (one pallas_call) ------
    router_slab, lm_pad = decoder_stack(x, bias, lane_expert, params)
    logits = lm_pad[:, :V].reshape(b, T, V)
    probs_all = router_slab[:, :, :E].reshape(L, b, T, E)
    rlogits_all = router_slab[:, :, E:2 * E].reshape(L, b, T, E)

    loss = cross_entropy(logits, labels) if labels is not None else None
    total_lb = sum(load_balancing_loss(probs_all[l]) for l in range(L)) / L
    total_z = sum(router_z_loss(rlogits_all[l]) for l in range(L)) / L
    return logits, loss, total_lb, total_z


# ----------------------------------- main ------------------------------------
if __name__ == "__main__":
    root = jax.random.PRNGKey(0)
    kp, ki, kx = jax.random.split(root, 3)

    params = init_params(kp)

    input_ids = jax.random.randint(ki, (B, S), 0, V, dtype=jnp.int32)
    pixel_values = jax.random.normal(kx, (B, C, IMG, IMG), jnp.float32)
    attention_mask = jnp.ones((B, S), jnp.int32)
    # labels cover the full combined sequence; image positions are ignored
    labels = jnp.concatenate(
        [jnp.full((B, P), -100, jnp.int32), input_ids], axis=1)

    fwd = jax.jit(vlm_moe_forward)
    logits, loss, lb_loss, z_loss = fwd(
        params, input_ids, pixel_values, attention_mask, labels)
    jax.block_until_ready((logits, loss, lb_loss, z_loss))

    assert logits.shape == (B, T, V)
    print("KERNEL_OK")
</pallas_src>

<mosaic_0001>
module attributes {stable_mosaic.version = 11 : i64} {
  func.func @_vision_kernel(%arg0: i32, %arg1: memref<8x192xf32, #tpu.memory_space<vmem>>, %arg2: memref<192x24xbf16, #tpu.memory_space<vmem>>, %arg3: memref<1x24xf32, #tpu.memory_space<vmem>>, %arg4: memref<1x24xf32, #tpu.memory_space<vmem>>, %arg5: memref<1x24xf32, #tpu.memory_space<vmem>>, %arg6: memref<24x32xbf16, #tpu.memory_space<vmem>>, %arg7: memref<1x32xf32, #tpu.memory_space<vmem>>, %arg8: memref<8x32xf32, #tpu.memory_space<vmem>>) attributes {dimension_semantics = [#tpu.dimension_semantics<arbitrary>], iteration_bounds = array<i64: 1>, scalar_prefetch = 0 : i64, scratch_operands = 0 : i64, tpu.core_type = #tpu.core_type<tc>, window_params = [{pipeline_mode = #tpu.pipeline_mode<synchronous>, transform_indices = @transform_0, window_bounds = array<i64: 8, 192>}, {pipeline_mode = #tpu.pipeline_mode<synchronous>, transform_indices = @transform_1, window_bounds = array<i64: 192, 24>}, {pipeline_mode = #tpu.pipeline_mode<synchronous>, transform_indices = @transform_2, window_bounds = array<i64: 1, 24>}, {pipeline_mode = #tpu.pipeline_mode<synchronous>, transform_indices = @transform_3, window_bounds = array<i64: 1, 24>}, {pipeline_mode = #tpu.pipeline_mode<synchronous>, transform_indices = @transform_4, window_bounds = array<i64: 1, 24>}, {pipeline_mode = #tpu.pipeline_mode<synchronous>, transform_indices = @transform_5, window_bounds = array<i64: 24, 32>}, {pipeline_mode = #tpu.pipeline_mode<synchronous>, transform_indices = @transform_6, window_bounds = array<i64: 1, 32>}, {pipeline_mode = #tpu.pipeline_mode<synchronous>, transform_indices = @transform_7, window_bounds = array<i64: 8, 32>}]} {
    %c0 = arith.constant 0 : index
    %c0_0 = arith.constant 0 : index
    %0 = vector.load %arg1[%c0, %c0_0] : memref<8x192xf32, #tpu.memory_space<vmem>>, vector<8x192xf32>
    %1 = arith.truncf %0 : vector<8x192xf32> to vector<8x192xbf16>
    %c0_1 = arith.constant 0 : index
    %c0_2 = arith.constant 0 : index
    %2 = vector.load %arg2[%c0_1, %c0_2] : memref<192x24xbf16, #tpu.memory_space<vmem>>, vector<192x24xbf16>
    %cst = arith.constant dense<0.000000e+00> : vector<8x24xf32>
    %3 = tpu.matmul %1, %2, %cst {dimension_numbers = #tpu.dot_dimension_numbers<[1], [0], [0], [1], [0, 0, 1, 1], [], []>} : vector<8x192xbf16>, vector<192x24xbf16>, vector<8x24xf32> -> vector<8x24xf32>
    %c0_3 = arith.constant 0 : index
    %c0_4 = arith.constant 0 : index
    %4 = vector.load %arg3[%c0_3, %c0_4] : memref<1x24xf32, #tpu.memory_space<vmem>>, vector<1x24xf32>
    %5 = vector.broadcast %4 : vector<1x24xf32> to vector<8x24xf32>
    %6 = arith.addf %3, %5 : vector<8x24xf32>
    %c0_5 = arith.constant 0 : index
    %c0_6 = arith.constant 0 : index
    %7 = vector.load %arg4[%c0_5, %c0_6] : memref<1x24xf32, #tpu.memory_space<vmem>>, vector<1x24xf32>
    %c0_7 = arith.constant 0 : index
    %c0_8 = arith.constant 0 : index
    %8 = vector.load %arg5[%c0_7, %c0_8] : memref<1x24xf32, #tpu.memory_space<vmem>>, vector<1x24xf32>
    %cst_9 = arith.constant dense<0.000000e+00> : vector<8xf32>
    %9 = vector.multi_reduction <add>, %6, %cst_9 [1] : vector<8x24xf32> to vector<8xf32>
    %10 = vector.shape_cast %9 : vector<8xf32> to vector<8x1xf32>
    %cst_10 = arith.constant 2.400000e+01 : f32
    %11 = vector.broadcast %cst_10 : f32 to vector<8x1xf32>
    %12 = arith.divf %10, %11 : vector<8x1xf32>
    %13 = vector.broadcast %12 : vector<8x1xf32> to vector<8x24xf32>
    %14 = arith.subf %6, %13 : vector<8x24xf32>
    %15 = arith.mulf %14, %14 : vector<8x24xf32>
    %cst_11 = arith.constant dense<0.000000e+00> : vector<8xf32>
    %16 = vector.multi_reduction <add>, %15, %cst_11 [1] : vector<8x24xf32> to vector<8xf32>
    %17 = vector.shape_cast %16 : vector<8xf32> to vector<8x1xf32>
    %cst_12 = arith.constant 2.400000e+01 : f32
    %18 = vector.broadcast %cst_12 : f32 to vector<8x1xf32>
    %19 = arith.divf %17, %18 : vector<8x1xf32>
    %20 = vector.broadcast %12 : vector<8x1xf32> to vector<8x24xf32>
    %21 = arith.subf %6, %20 : vector<8x24xf32>
    %cst_13 = arith.constant 9.99999974E-6 : f32
    %22 = vector.broadcast %cst_13 : f32 to vector<8x1xf32>
    %23 = arith.addf %19, %22 : vector<8x1xf32>
    %24 = math.rsqrt %23 : vector<8x1xf32>
    %25 = vector.broadcast %24 : vector<8x1xf32> to vector<8x24xf32>
    %26 = arith.mulf %21, %25 : vector<8x24xf32>
    %27 = vector.broadcast %7 : vector<1x24xf32> to vector<8x24xf32>
    %28 = arith.mulf %26, %27 : vector<8x24xf32>
    %29 = vector.broadcast %8 : vector<1x24xf32> to vector<8x24xf32>
    %30 = arith.addf %28, %29 : vector<8x24xf32>
    %31 = arith.truncf %30 : vector<8x24xf32> to vector<8x24xbf16>
    %c0_14 = arith.constant 0 : index
    %c0_15 = arith.constant 0 : index
    %32 = vector.load %arg6[%c0_14, %c0_15] : memref<24x32xbf16, #tpu.memory_space<vmem>>, vector<24x32xbf16>
    %cst_16 = arith.constant dense<0.000000e+00> : vector<8x32xf32>
    %33 = tpu.matmul %31, %32, %cst_16 {dimension_numbers = #tpu.dot_dimension_numbers<[1], [0], [0], [1], [0, 0, 1, 1], [], []>} : vector<8x24xbf16>, vector<24x32xbf16>, vector<8x32xf32> -> vector<8x32xf32>
    %c0_17 = arith.constant 0 : index
    %c0_18 = arith.constant 0 : index
    %34 = vector.load %arg7[%c0_17, %c0_18] : memref<1x32xf32, #tpu.memory_space<vmem>>, vector<1x32xf32>
    %35 = vector.broadcast %34 : vector<1x32xf32> to vector<8x32xf32>
    %36 = arith.addf %33, %35 : vector<8x32xf32>
    %c0_19 = arith.constant 0 : index
    %c0_20 = arith.constant 0 : index
    %37 = vector.load %arg8[%c0_19, %c0_20] : memref<8x32xf32, #tpu.memory_space<vmem>>, vector<8x32xf32>
    tpu.vector_store %arg8[%c0_19, %c0_20], %36 {strides = array<i32>} : memref<8x32xf32, #tpu.memory_space<vmem>>, vector<8x32xf32>,
    return
  }
  func.func @transform_0(%arg0: i32) -> (i32, i32) {
    %c0_i32 = arith.constant 0 : i32
    %c0_i32_0 = arith.constant 0 : i32
    %c0_i32_1 = arith.constant 0 : i32
    return %c0_i32, %c0_i32_0 : i32, i32
  }
  func.func @transform_1(%arg0: i32) -> (i32, i32) {
    %c0_i32 = arith.constant 0 : i32
    %c0_i32_0 = arith.constant 0 : i32
    %c0_i32_1 = arith.constant 0 : i32
    return %c0_i32, %c0_i32_0 : i32, i32
  }
  func.func @transform_2(%arg0: i32) -> (i32, i32) {
    %c0_i32 = arith.constant 0 : i32
    %c0_i32_0 = arith.constant 0 : i32
    %c0_i32_1 = arith.constant 0 : i32
    return %c0_i32, %c0_i32_0 : i32, i32
  }
  func.func @transform_3(%arg0: i32) -> (i32, i32) {
    %c0_i32 = arith.constant 0 : i32
    %c0_i32_0 = arith.constant 0 : i32
    %c0_i32_1 = arith.constant 0 : i32
    return %c0_i32, %c0_i32_0 : i32, i32
  }
  func.func @transform_4(%arg0: i32) -> (i32, i32) {
    %c0_i32 = arith.constant 0 : i32
    %c0_i32_0 = arith.constant 0 : i32
    %c0_i32_1 = arith.constant 0 : i32
    return %c0_i32, %c0_i32_0 : i32, i32
  }
  func.func @transform_5(%arg0: i32) -> (i32, i32) {
    %c0_i32 = arith.constant 0 : i32
    %c0_i32_0 = arith.constant 0 : i32
    %c0_i32_1 = arith.constant 0 : i32
    return %c0_i32, %c0_i32_0 : i32, i32
  }
  func.func @transform_6(%arg0: i32) -> (i32, i32) {
    %c0_i32 = arith.constant 0 : i32
    %c0_i32_0 = arith.constant 0 : i32
    %c0_i32_1 = arith.constant 0 : i32
    return %c0_i32, %c0_i32_0 : i32, i32
  }
  func.func @transform_7(%arg0: i32) -> (i32, i32) {
    %c0_i32 = arith.constant 0 : i32
    %c0_i32_0 = arith.constant 0 : i32
    %c0_i32_1 = arith.constant 0 : i32
    return %c0_i32, %c0_i32_0 : i32, i32
  }
}

module attributes {stable_mosaic.version = 11 : i64} {
  func.func @_decoder_stack_kernel(%arg0: i32, %arg1: memref<24x32xf32, #tpu.memory_space<vmem>>, %arg2: memref<24x24xf32, #tpu.memory_space<vmem>>, %arg3: memref<1x256xi32, #tpu.memory_space<vmem>>, %arg4: memref<1x1x32xf32, #tpu.memory_space<vmem>>, %arg5: memref<1x1x32xf32, #tpu.memory_space<vmem>>, %arg6: memref<1x4x32x8xbf16, #tpu.memory_space<vmem>>, %arg7: memref<1x4x32x8xbf16, #tpu.memory_space<vmem>>, %arg8: memref<1x4x32x8xbf16, #tpu.memory_space<vmem>>, %arg9: memref<1x4x8x32xbf16, #tpu.memory_space<vmem>>, %arg10: memref<1x1x32xf32, #tpu.memory_space<vmem>>, %arg11: memref<1x1x32xf32, #tpu.memory_space<vmem>>, %arg12: memref<1x32x4xbf16, #tpu.memory_space<vmem>>, %arg13: memref<1x1x4xf32, #tpu.memory_space<vmem>>, %arg14: memref<1x32x512xbf16, #tpu.memory_space<vmem>>, %arg15: memref<1x256x32xbf16, #tpu.memory_space<vmem>>, %arg16: memref<1x32xf32, #tpu.memory_space<vmem>>, %arg17: memref<1x32xf32, #tpu.memory_space<vmem>>, %arg18: memref<32x128xbf16, #tpu.memory_space<vmem>>, %arg19: memref<1x24x128xf32, #tpu.memory_space<vmem>>, %arg20: memref<24x128xf32, #tpu.memory_space<vmem>>, %arg21: memref<24x32xf32, #tpu.memory_space<vmem>>) attributes {dimension_semantics = [#tpu.dimension_semantics<arbitrary>], iteration_bounds = array<i64: 2>, scalar_prefetch = 0 : i64, scratch_operands = 1 : i64, tpu.core_type = #tpu.core_type<tc>, window_params = [{pipeline_mode = #tpu.pipeline_mode<synchronous>, transform_indices = @transform_0, window_bounds = array<i64: 24, 32>}, {pipeline_mode = #tpu.pipeline_mode<synchronous>, transform_indices = @transform_1, window_bounds = array<i64: 24, 24>}, {pipeline_mode = #tpu.pipeline_mode<synchronous>, transform_indices = @transform_2, window_bounds = array<i64: 1, 256>}, {transform_indices = @transform_3, window_bounds = array<i64: 1, 1, 32>}, {transform_indices = @transform_4, window_bounds = array<i64: 1, 1, 32>}, {transform_indices = @transform_5, window_bounds = array<i64: 1, 4, 32, 8>}, {transform_indices = @transform_6, window_bounds = array<i64: 1, 4, 32, 8>}, {transform_indices = @transform_7, window_bounds = array<i64: 1, 4, 32, 8>}, {transform_indices = @transform_8, window_bounds = array<i64: 1, 4, 8, 32>}, {transform_indices = @transform_9, window_bounds = array<i64: 1, 1, 32>}, {transform_indices = @transform_10, window_bounds = array<i64: 1, 1, 32>}, {transform_indices = @transform_11, window_bounds = array<i64: 1, 32, 4>}, {transform_indices = @transform_12, window_bounds = array<i64: 1, 1, 4>}, {transform_indices = @transform_13, window_bounds = array<i64: 1, 32, 512>}, {transform_indices = @transform_14, window_bounds = array<i64: 1, 256, 32>}, {pipeline_mode = #tpu.pipeline_mode<synchronous>, transform_indices = @transform_15, window_bounds = array<i64: 1, 32>}, {pipeline_mode = #tpu.pipeline_mode<synchronous>, transform_indices = @transform_16, window_bounds = array<i64: 1, 32>}, {pipeline_mode = #tpu.pipeline_mode<synchronous>, transform_indices = @transform_17, window_bounds = array<i64: 32, 128>}, {transform_indices = @transform_18, window_bounds = array<i64: 1, 24, 128>}, {pipeline_mode = #tpu.pipeline_mode<synchronous>, transform_indices = @transform_19, window_bounds = array<i64: 24, 128>}]} {
    %c0_i32 = arith.constant 0 : i32
    %0 = arith.cmpi eq, %arg0, %c0_i32 : i32
    %1 = arith.extui %0 : i1 to i32
    %c0_i32_0 = arith.constant 0 : i32
    %2 = arith.cmpi ne, %1, %c0_i32_0 : i32
    scf.if %2 {
      %c0_82 = arith.constant 0 : index
      %c0_83 = arith.constant 0 : index
      %158 = vector.load %arg1[%c0_82, %c0_83] : memref<24x32xf32, #tpu.memory_space<vmem>>, vector<24x32xf32>
      %c0_84 = arith.constant 0 : index
      %c0_85 = arith.constant 0 : index
      %159 = vector.load %arg21[%c0_84, %c0_85] : memref<24x32xf32, #tpu.memory_space<vmem>>, vector<24x32xf32>
      tpu.vector_store %arg21[%c0_84, %c0_85], %158 {strides = array<i32>} : memref<24x32xf32, #tpu.memory_space<vmem>>, vector<24x32xf32>,
    } else {
    }
    %c0 = arith.constant 0 : index
    %c0_1 = arith.constant 0 : index
    %3 = vector.load %arg21[%c0, %c0_1] : memref<24x32xf32, #tpu.memory_space<vmem>>, vector<24x32xf32>
    %c0_2 = arith.constant 0 : index
    %c0_3 = arith.constant 0 : index
    %c0_4 = arith.constant 0 : index
    %4 = vector.load %arg4[%c0_2, %c0_3, %c0_4] : memref<1x1x32xf32, #tpu.memory_space<vmem>>, vector<1x1x32xf32>
    %5 = vector.shape_cast %4 : vector<1x1x32xf32> to vector<1x32xf32>
    %c0_5 = arith.constant 0 : index
    %c0_6 = arith.constant 0 : index
    %c0_7 = arith.constant 0 : index
    %6 = vector.load %arg5[%c0_5, %c0_6, %c0_7] : memref<1x1x32xf32, #tpu.memory_space<vmem>>, vector<1x1x32xf32>
    %7 = vector.shape_cast %6 : vector<1x1x32xf32> to vector<1x32xf32>
    %cst = arith.constant dense<0.000000e+00> : vector<24xf32>
    %8 = vector.multi_reduction <add>, %3, %cst [1] : vector<24x32xf32> to vector<24xf32>
    %9 = vector.shape_cast %8 : vector<24xf32> to vector<24x1xf32>
    %cst_8 = arith.constant 3.200000e+01 : f32
    %10 = vector.broadcast %cst_8 : f32 to vector<24x1xf32>
    %11 = arith.divf %9, %10 : vector<24x1xf32>
    %12 = vector.broadcast %11 : vector<24x1xf32> to vector<24x32xf32>
    %13 = arith.subf %3, %12 : vector<24x32xf32>
    %14 = arith.mulf %13, %13 : vector<24x32xf32>
    %cst_9 = arith.constant dense<0.000000e+00> : vector<24xf32>
    %15 = vector.multi_reduction <add>, %14, %cst_9 [1] : vector<24x32xf32> to vector<24xf32>
    %16 = vector.shape_cast %15 : vector<24xf32> to vector<24x1xf32>
    %cst_10 = arith.constant 3.200000e+01 : f32
    %17 = vector.broadcast %cst_10 : f32 to vector<24x1xf32>
    %18 = arith.divf %16, %17 : vector<24x1xf32>
    %19 = vector.broadcast %11 : vector<24x1xf32> to vector<24x32xf32>
    %20 = arith.subf %3, %19 : vector<24x32xf32>
    %cst_11 = arith.constant 9.99999974E-6 : f32
    %21 = vector.broadcast %cst_11 : f32 to vector<24x1xf32>
    %22 = arith.addf %18, %21 : vector<24x1xf32>
    %23 = math.rsqrt %22 : vector<24x1xf32>
    %24 = vector.broadcast %23 : vector<24x1xf32> to vector<24x32xf32>
    %25 = arith.mulf %20, %24 : vector<24x32xf32>
    %26 = vector.broadcast %5 : vector<1x32xf32> to vector<24x32xf32>
    %27 = arith.mulf %25, %26 : vector<24x32xf32>
    %28 = vector.broadcast %7 : vector<1x32xf32> to vector<24x32xf32>
    %29 = arith.addf %27, %28 : vector<24x32xf32>
    %30 = arith.truncf %29 : vector<24x32xf32> to vector<24x32xbf16>
    %31 = vector.shape_cast %30 : vector<24x32xbf16> to vector<1x24x32xbf16>
    %32 = vector.shape_cast %31 : vector<1x24x32xbf16> to vector<1x24x32xbf16>
    %33 = vector.broadcast %32 : vector<1x24x32xbf16> to vector<4x24x32xbf16>
    %c0_12 = arith.constant 0 : index
    %c0_13 = arith.constant 0 : index
    %c0_14 = arith.constant 0 : index
    %c0_15 = arith.constant 0 : index
    %34 = vector.load %arg6[%c0_12, %c0_13, %c0_14, %c0_15] : memref<1x4x32x8xbf16, #tpu.memory_space<vmem>>, vector<1x4x32x8xbf16>
    %35 = vector.shape_cast %34 : vector<1x4x32x8xbf16> to vector<4x32x8xbf16>
    "tpu.trace_start"() <{level = 10 : i32, message = "htc,hcd->htd"}> : () -> ()
    %cst_16 = arith.constant dense<0.000000e+00> : vector<4x24x8xf32>
    %36 = tpu.matmul %33, %35, %cst_16 {dimension_numbers = #tpu.dot_dimension_numbers<[2], [1], [1], [2], [0, 0, 0, 1, 1, 2], [0], [0]>} : vector<4x24x32xbf16>, vector<4x32x8xbf16>, vector<4x24x8xf32> -> vector<4x24x8xf32>
    "tpu.trace_stop"() : () -> ()
    %c0_17 = arith.constant 0 : index
    %c0_18 = arith.constant 0 : index
    %c0_19 = arith.constant 0 : index
    %c0_20 = arith.constant 0 : index
    %37 = vector.load %arg7[%c0_17, %c0_18, %c0_19, %c0_20] : memref<1x4x32x8xbf16, #tpu.memory_space<vmem>>, vector<1x4x32x8xbf16>
    %38 = vector.shape_cast %37 : vector<1x4x32x8xbf16> to vector<4x32x8xbf16>
    "tpu.trace_start"() <{level = 10 : i32, message = "htc,hcd->htd"}> : () -> ()
    %cst_21 = arith.constant dense<0.000000e+00> : vector<4x24x8xf32>
    %39 = tpu.matmul %33, %38, %cst_21 {dimension_numbers = #tpu.dot_dimension_numbers<[2], [1], [1], [2], [0, 0, 0, 1, 1, 2], [0], [0]>} : vector<4x24x32xbf16>, vector<4x32x8xbf16>, vector<4x24x8xf32> -> vector<4x24x8xf32>
    "tpu.trace_stop"() : () -> ()
    %c0_22 = arith.constant 0 : index
    %c0_23 = arith.constant 0 : index
    %c0_24 = arith.constant 0 : index
    %c0_25 = arith.constant 0 : index
    %40 = vector.load %arg8[%c0_22, %c0_23, %c0_24, %c0_25] : memref<1x4x32x8xbf16, #tpu.memory_space<vmem>>, vector<1x4x32x8xbf16>
    %41 = vector.shape_cast %40 : vector<1x4x32x8xbf16> to vector<4x32x8xbf16>
    "tpu.trace_start"() <{level = 10 : i32, message = "htc,hcd->htd"}> : () -> ()
    %cst_26 = arith.constant dense<0.000000e+00> : vector<4x24x8xf32>
    %42 = tpu.matmul %33, %41, %cst_26 {dimension_numbers = #tpu.dot_dimension_numbers<[2], [1], [1], [2], [0, 0, 0, 1, 1, 2], [0], [0]>} : vector<4x24x32xbf16>, vector<4x32x8xbf16>, vector<4x24x8xf32> -> vector<4x24x8xf32>
    "tpu.trace_stop"() : () -> ()
    %cst_27 = arith.constant 0.353553385 : f32
    %43 = vector.broadcast %cst_27 : f32 to vector<4x24x8xf32>
    %44 = arith.mulf %36, %43 : vector<4x24x8xf32>
    %45 = arith.truncf %44 : vector<4x24x8xf32> to vector<4x24x8xbf16>
    %46 = arith.truncf %39 : vector<4x24x8xf32> to vector<4x24x8xbf16>
    "tpu.trace_start"() <{level = 10 : i32, message = "hqd,hkd->hqk"}> : () -> ()
    %cst_28 = arith.constant dense<0.000000e+00> : vector<4x24x24xf32>
    %47 = tpu.matmul %45, %46, %cst_28 {dimension_numbers = #tpu.dot_dimension_numbers<[2], [2], [1], [1], [0, 0, 0, 1, 1, 1], [0], [0]>} : vector<4x24x8xbf16>, vector<4x24x8xbf16>, vector<4x24x24xf32> -> vector<4x24x24xf32>
    "tpu.trace_stop"() : () -> ()
    %c0_29 = arith.constant 0 : index
    %c0_30 = arith.constant 0 : index
    %48 = vector.load %arg2[%c0_29, %c0_30] : memref<24x24xf32, #tpu.memory_space<vmem>>, vector<24x24xf32>
    %49 = vector.shape_cast %48 : vector<24x24xf32> to vector<1x24x24xf32>
    %50 = vector.broadcast %49 : vector<1x24x24xf32> to vector<4x24x24xf32>
    %51 = arith.addf %47, %50 : vector<4x24x24xf32>
    %cst_31 = arith.constant dense<0xFF800000> : vector<4x24xf32>
    %52 = vector.multi_reduction <maximumf>, %51, %cst_31 [2] : vector<4x24x24xf32> to vector<4x24xf32>
    %53 = vector.shape_cast %52 : vector<4x24xf32> to vector<4x24x1xf32>
    %54 = vector.broadcast %53 : vector<4x24x1xf32> to vector<4x24x24xf32>
    %55 = arith.subf %51, %54 : vector<4x24x24xf32>
    %56 = math.exp %55 : vector<4x24x24xf32>
    %cst_32 = arith.constant dense<0.000000e+00> : vector<4x24xf32>
    %57 = vector.multi_reduction <add>, %56, %cst_32 [2] : vector<4x24x24xf32> to vector<4x24xf32>
    %58 = vector.shape_cast %57 : vector<4x24xf32> to vector<4x24x1xf32>
    %59 = tpu.reciprocal %58 {approx = true} : vector<4x24x1xf32> -> vector<4x24x1xf32>
    %60 = vector.broadcast %59 : vector<4x24x1xf32> to vector<4x24x24xf32>
    %61 = arith.mulf %56, %60 : vector<4x24x24xf32>
    %62 = arith.truncf %61 : vector<4x24x24xf32> to vector<4x24x24xbf16>
    %63 = arith.truncf %42 : vector<4x24x8xf32> to vector<4x24x8xbf16>
    "tpu.trace_start"() <{level = 10 : i32, message = "hqk,hkd->hqd"}> : () -> ()
    %cst_33 = arith.constant dense<0.000000e+00> : vector<4x24x8xf32>
    %64 = tpu.matmul %62, %63, %cst_33 {dimension_numbers = #tpu.dot_dimension_numbers<[2], [1], [1], [2], [0, 0, 0, 1, 1, 2], [0], [0]>} : vector<4x24x24xbf16>, vector<4x24x8xbf16>, vector<4x24x8xf32> -> vector<4x24x8xf32>
    "tpu.trace_stop"() : () -> ()
    %65 = arith.truncf %64 : vector<4x24x8xf32> to vector<4x24x8xbf16>
    %c0_34 = arith.constant 0 : index
    %c0_35 = arith.constant 0 : index
    %c0_36 = arith.constant 0 : index
    %c0_37 = arith.constant 0 : index
    %66 = vector.load %arg9[%c0_34, %c0_35, %c0_36, %c0_37] : memref<1x4x8x32xbf16, #tpu.memory_space<vmem>>, vector<1x4x8x32xbf16>
    %67 = vector.shape_cast %66 : vector<1x4x8x32xbf16> to vector<4x8x32xbf16>
    "tpu.trace_start"() <{level = 10 : i32, message = "htd,hdo->hto"}> : () -> ()
    %cst_38 = arith.constant dense<0.000000e+00> : vector<4x24x32xf32>
    %68 = tpu.matmul %65, %67, %cst_38 {dimension_numbers = #tpu.dot_dimension_numbers<[2], [1], [1], [2], [0, 0, 0, 1, 1, 2], [0], [0]>} : vector<4x24x8xbf16>, vector<4x8x32xbf16>, vector<4x24x32xf32> -> vector<4x24x32xf32>
    "tpu.trace_stop"() : () -> ()
    %cst_39 = arith.constant dense<0.000000e+00> : vector<24x32xf32>
    %69 = vector.multi_reduction <add>, %68, %cst_39 [0] : vector<4x24x32xf32> to vector<24x32xf32>
    %70 = arith.addf %3, %69 : vector<24x32xf32>
    %c0_40 = arith.constant 0 : index
    %c0_41 = arith.constant 0 : index
    %c0_42 = arith.constant 0 : index
    %71 = vector.load %arg10[%c0_40, %c0_41, %c0_42] : memref<1x1x32xf32, #tpu.memory_space<vmem>>, vector<1x1x32xf32>
    %72 = vector.shape_cast %71 : vector<1x1x32xf32> to vector<1x32xf32>
    %c0_43 = arith.constant 0 : index
    %c0_44 = arith.constant 0 : index
    %c0_45 = arith.constant 0 : index
    %73 = vector.load %arg11[%c0_43, %c0_44, %c0_45] : memref<1x1x32xf32, #tpu.memory_space<vmem>>, vector<1x1x32xf32>
    %74 = vector.shape_cast %73 : vector<1x1x32xf32> to vector<1x32xf32>
    %cst_46 = arith.constant dense<0.000000e+00> : vector<24xf32>
    %75 = vector.multi_reduction <add>, %70, %cst_46 [1] : vector<24x32xf32> to vector<24xf32>
    %76 = vector.shape_cast %75 : vector<24xf32> to vector<24x1xf32>
    %cst_47 = arith.constant 3.200000e+01 : f32
    %77 = vector.broadcast %cst_47 : f32 to vector<24x1xf32>
    %78 = arith.divf %76, %77 : vector<24x1xf32>
    %79 = vector.broadcast %78 : vector<24x1xf32> to vector<24x32xf32>
    %80 = arith.subf %70, %79 : vector<24x32xf32>
    %81 = arith.mulf %80, %80 : vector<24x32xf32>
    %cst_48 = arith.constant dense<0.000000e+00> : vector<24xf32>
    %82 = vector.multi_reduction <add>, %81, %cst_48 [1] : vector<24x32xf32> to vector<24xf32>
    %83 = vector.shape_cast %82 : vector<24xf32> to vector<24x1xf32>
    %cst_49 = arith.constant 3.200000e+01 : f32
    %84 = vector.broadcast %cst_49 : f32 to vector<24x1xf32>
    %85 = arith.divf %83, %84 : vector<24x1xf32>
    %86 = vector.broadcast %78 : vector<24x1xf32> to vector<24x32xf32>
    %87 = arith.subf %70, %86 : vector<24x32xf32>
    %cst_50 = arith.constant 9.99999974E-6 : f32
    %88 = vector.broadcast %cst_50 : f32 to vector<24x1xf32>
    %89 = arith.addf %85, %88 : vector<24x1xf32>
    %90 = math.rsqrt %89 : vector<24x1xf32>
    %91 = vector.broadcast %90 : vector<24x1xf32> to vector<24x32xf32>
    %92 = arith.mulf %87, %91 : vector<24x32xf32>
    %93 = vector.broadcast %72 : vector<1x32xf32> to vector<24x32xf32>
    %94 = arith.mulf %92, %93 : vector<24x32xf32>
    %95 = vector.broadcast %74 : vector<1x32xf32> to vector<24x32xf32>
    %96 = arith.addf %94, %95 : vector<24x32xf32>
    %97 = arith.truncf %96 : vector<24x32xf32> to vector<24x32xbf16>
    %c0_51 = arith.constant 0 : index
    %c0_52 = arith.constant 0 : index
    %c0_53 = arith.constant 0 : index
    %98 = vector.load %arg12[%c0_51, %c0_52, %c0_53] : memref<1x32x4xbf16, #tpu.memory_space<vmem>>, vector<1x32x4xbf16>
    %99 = vector.shape_cast %98 : vector<1x32x4xbf16> to vector<32x4xbf16>
    %cst_54 = arith.constant dense<0.000000e+00> : vector<24x4xf32>
    %100 = tpu.matmul %97, %99, %cst_54 {dimension_numbers = #tpu.dot_dimension_numbers<[1], [0], [0], [1], [0, 0, 1, 1], [], []>} : vector<24x32xbf16>, vector<32x4xbf16>, vector<24x4xf32> -> vector<24x4xf32>
    %c0_55 = arith.constant 0 : index
    %c0_56 = arith.constant 0 : index
    %c0_57 = arith.constant 0 : index
    %101 = vector.load %arg13[%c0_55, %c0_56, %c0_57] : memref<1x1x4xf32, #tpu.memory_space<vmem>>, vector<1x1x4xf32>
    %102 = vector.shape_cast %101 : vector<1x1x4xf32> to vector<1x4xf32>
    %103 = vector.broadcast %102 : vector<1x4xf32> to vector<24x4xf32>
    %104 = arith.addf %100, %103 : vector<24x4xf32>
    %cst_58 = arith.constant dense<0xFF800000> : vector<24xf32>
    %105 = vector.multi_reduction <maximumf>, %104, %cst_58 [1] : vector<24x4xf32> to vector<24xf32>
    %106 = vector.shape_cast %105 : vector<24xf32> to vector<24x1xf32>
    %107 = vector.broadcast %106 : vector<24x1xf32> to vector<24x4xf32>
    %108 = arith.subf %104, %107 : vector<24x4xf32>
    %109 = math.exp %108 : vector<24x4xf32>
    %cst_59 = arith.constant dense<0.000000e+00> : vector<24xf32>
    %110 = vector.multi_reduction <add>, %109, %cst_59 [1] : vector<24x4xf32> to vector<24xf32>
    %111 = vector.shape_cast %110 : vector<24xf32> to vector<24x1xf32>
    %112 = vector.broadcast %111 : vector<24x1xf32> to vector<24x4xf32>
    %113 = arith.divf %109, %112 : vector<24x4xf32>
    %cst_60 = arith.constant dense<0xFF800000> : vector<24xf32>
    %114 = vector.multi_reduction <maximumf>, %113, %cst_60 [1] : vector<24x4xf32> to vector<24xf32>
    %115 = vector.shape_cast %114 : vector<24xf32> to vector<24x1xf32>
    %116 = tpu.iota {dimensions = array<i32: 1>} : vector<24x4xi32>
    %117 = vector.broadcast %115 : vector<24x1xf32> to vector<24x4xf32>
    %118 = arith.cmpf oge, %113, %117 : vector<24x4xf32>
    %c4_i32 = arith.constant 4 : i32
    %119 = vector.broadcast %c4_i32 : i32 to vector<24x4xi32>
    %120 = arith.select %118, %116, %119 : vector<24x4xi1>, vector<24x4xi32>
    %cst_61 = arith.constant dense<2147483647> : vector<24xi32>
    %121 = vector.multi_reduction <minsi>, %120, %cst_61 [1] : vector<24x4xi32> to vector<24xi32>
    %122 = vector.shape_cast %121 : vector<24xi32> to vector<24x1xi32>
    %c0_62 = arith.constant 0 : index
    %c0_63 = arith.constant 0 : index
    %c0_64 = arith.constant 0 : index
    %123 = vector.load %arg14[%c0_62, %c0_63, %c0_64] : memref<1x32x512xbf16, #tpu.memory_space<vmem>>, vector<1x32x512xbf16>
    %124 = vector.shape_cast %123 : vector<1x32x512xbf16> to vector<32x512xbf16>
    %cst_65 = arith.constant dense<0.000000e+00> : vector<24x512xf32>
    %125 = tpu.matmul %97, %124, %cst_65 {dimension_numbers = #tpu.dot_dimension_numbers<[1], [0], [0], [1], [0, 0, 1, 1], [], []>} : vector<24x32xbf16>, vector<32x512xbf16>, vector<24x512xf32> -> vector<24x512xf32>
    %126 = vector.extract_strided_slice %125 {offsets = [0, 0], sizes = [24, 256], strides = [1, 1]} : vector<24x512xf32> to vector<24x256xf32>
    %127 = vector.extract_strided_slice %125 {offsets = [0, 256], sizes = [24, 256], strides = [1, 1]} : vector<24x512xf32> to vector<24x256xf32>
    %cst_66 = arith.constant 0.000000e+00 : f32
    %128 = vector.broadcast %cst_66 : f32 to vector<24x256xf32>
    %129 = arith.subf %128, %126 : vector<24x256xf32>
    %130 = math.exp %129 : vector<24x256xf32>
    %cst_67 = arith.constant 1.000000e+00 : f32
    %131 = vector.broadcast %cst_67 : f32 to vector<24x256xf32>
    %132 = arith.addf %131, %130 : vector<24x256xf32>
    %cst_68 = arith.constant 1.000000e+00 : f32
    %133 = vector.broadcast %cst_68 : f32 to vector<24x256xf32>
    %134 = arith.divf %133, %132 : vector<24x256xf32>
    %135 = arith.mulf %126, %134 : vector<24x256xf32>
    %136 = arith.mulf %135, %127 : vector<24x256xf32>
    %c0_69 = arith.constant 0 : index
    %c0_70 = arith.constant 0 : index
    %137 = vector.load %arg3[%c0_69, %c0_70] : memref<1x256xi32, #tpu.memory_space<vmem>>, vector<1x256xi32>
    %138 = vector.broadcast %137 : vector<1x256xi32> to vector<24x256xi32>
    %139 = vector.broadcast %122 : vector<24x1xi32> to vector<24x256xi32>
    %140 = arith.cmpi eq, %138, %139 : vector<24x256xi32>
    %141 = arith.extui %140 : vector<24x256xi1> to vector<24x256xi32>
    %142 = arith.sitofp %141 : vector<24x256xi32> to vector<24x256xf32>
    %143 = arith.mulf %136, %142 : vector<24x256xf32>
    %144 = arith.truncf %143 : vector<24x256xf32> to vector<24x256xbf16>
    %c0_71 = arith.constant 0 : index
    %c0_72 = arith.constant 0 : index
    %c0_73 = arith.constant 0 : index
    %145 = vector.load %arg15[%c0_71, %c0_72, %c0_73] : memref<1x256x32xbf16, #tpu.memory_space<vmem>>, vector<1x256x32xbf16>
    %146 = vector.shape_cast %145 : vector<1x256x32xbf16> to vector<256x32xbf16>
    %cst_74 = arith.constant dense<0.000000e+00> : vector<24x32xf32>
    %147 = tpu.matmul %144, %146, %cst_74 {dimension_numbers = #tpu.dot_dimension_numbers<[1], [0], [0], [1], [0, 0, 1, 1], [], []>} : vector<24x256xbf16>, vector<256x32xbf16>, vector<24x32xf32> -> vector<24x32xf32>
    %148 = arith.addf %70, %147 : vector<24x32xf32>
    %c0_75 = arith.constant 0 : index
    %c0_76 = arith.constant 0 : index
    %149 = vector.load %arg21[%c0_75, %c0_76] : memref<24x32xf32, #tpu.memory_space<vmem>>, vector<24x32xf32>
    tpu.vector_store %arg21[%c0_75, %c0_76], %148 {strides = array<i32>} : memref<24x32xf32, #tpu.memory_space<vmem>>, vector<24x32xf32>,
    %cst_77 = arith.constant 0.000000e+00 : f32
    %150 = vector.broadcast %cst_77 : f32 to vector<24x120xf32>
    %151 = tpu.concatenate %113, %104, %150 in 1 : vector<24x4xf32>, vector<24x4xf32>, vector<24x120xf32> -> vector<24x128xf32>
    %c0_78 = arith.constant 0 : index
    %c0_79 = arith.constant 0 : index
    %c0_80 = arith.constant 0 : index
    %152 = vector.load %arg19[%c0_78, %c0_79, %c0_80] : memref<1x24x128xf32, #tpu.memory_space<vmem>>, vector<1x24x128xf32>
    %153 = vector.shape_cast %152 : vector<1x24x128xf32> to vector<24x128xf32>
    %154 = vector.shape_cast %151 : vector<24x128xf32> to vector<1x24x128xf32>
    tpu.vector_store %arg19[%c0_78, %c0_79, %c0_80], %154 {strides = array<i32>} : memref<1x24x128xf32, #tpu.memory_space<vmem>>, vector<1x24x128xf32>,
    %c1_i32 = arith.constant 1 : i32
    %155 = arith.cmpi eq, %arg0, %c1_i32 : i32
    %156 = arith.extui %155 : i1 to i32
    %c0_i32_81 = arith.constant 0 : i32
    %157 = arith.cmpi ne, %156, %c0_i32_81 : i32
    scf.if %157 {
      %c0_82 = arith.constant 0 : index
      %c0_83 = arith.constant 0 : index
      %158 = vector.load %arg16[%c0_82, %c0_83] : memref<1x32xf32, #tpu.memory_space<vmem>>, vector<1x32xf32>
      %c0_84 = arith.constant 0 : index
      %c0_85 = arith.constant 0 : index
      %159 = vector.load %arg17[%c0_84, %c0_85] : memref<1x32xf32, #tpu.memory_space<vmem>>, vector<1x32xf32>
      %cst_86 = arith.constant dense<0.000000e+00> : vector<24xf32>
      %160 = vector.multi_reduction <add>, %148, %cst_86 [1] : vector<24x32xf32> to vector<24xf32>
      %161 = vector.shape_cast %160 : vector<24xf32> to vector<24x1xf32>
      %cst_87 = arith.constant 3.200000e+01 : f32
      %162 = vector.broadcast %cst_87 : f32 to vector<24x1xf32>
      %163 = arith.divf %161, %162 : vector<24x1xf32>
      %164 = vector.broadcast %163 : vector<24x1xf32> to vector<24x32xf32>
      %165 = arith.subf %148, %164 : vector<24x32xf32>
      %166 = arith.mulf %165, %165 : vector<24x32xf32>
      %cst_88 = arith.constant dense<0.000000e+00> : vector<24xf32>
      %167 = vector.multi_reduction <add>, %166, %cst_88 [1] : vector<24x32xf32> to vector<24xf32>
      %168 = vector.shape_cast %167 : vector<24xf32> to vector<24x1xf32>
      %cst_89 = arith.constant 3.200000e+01 : f32
      %169 = vector.broadcast %cst_89 : f32 to vector<24x1xf32>
      %170 = arith.divf %168, %169 : vector<24x1xf32>
      %171 = vector.broadcast %163 : vector<24x1xf32> to vector<24x32xf32>
      %172 = arith.subf %148, %171 : vector<24x32xf32>
      %cst_90 = arith.constant 9.99999974E-6 : f32
      %173 = vector.broadcast %cst_90 : f32 to vector<24x1xf32>
      %174 = arith.addf %170, %173 : vector<24x1xf32>
      %175 = math.rsqrt %174 : vector<24x1xf32>
      %176 = vector.broadcast %175 : vector<24x1xf32> to vector<24x32xf32>
      %177 = arith.mulf %172, %176 : vector<24x32xf32>
      %178 = vector.broadcast %158 : vector<1x32xf32> to vector<24x32xf32>
      %179 = arith.mulf %177, %178 : vector<24x32xf32>
      %180 = vector.broadcast %159 : vector<1x32xf32> to vector<24x32xf32>
      %181 = arith.addf %179, %180 : vector<24x32xf32>
      %182 = arith.truncf %181 : vector<24x32xf32> to vector<24x32xbf16>
      %c0_91 = arith.constant 0 : index
      %c0_92 = arith.constant 0 : index
      %183 = vector.load %arg18[%c0_91, %c0_92] : memref<32x128xbf16, #tpu.memory_space<vmem>>, vector<32x128xbf16>
      %cst_93 = arith.constant dense<0.000000e+00> : vector<24x128xf32>
      %184 = tpu.matmul %182, %183, %cst_93 {dimension_numbers = #tpu.dot_dimension_numbers<[1], [0], [0], [1], [0, 0, 1, 1], [], []>} : vector<24x32xbf16>, vector<32x128xbf16>, vector<24x128xf32> -> vector<24x128xf32>
      %c0_94 = arith.constant 0 : index
      %c0_95 = arith.constant 0 : index
      %185 = vector.load %arg20[%c0_94, %c0_95] : memref<24x128xf32, #tpu.memory_space<vmem>>, vector<24x128xf32>
      tpu.vector_store %arg20[%c0_94, %c0_95], %184 {strides = array<i32>} : memref<24x128xf32, #tpu.memory_space<vmem>>, vector<24x128xf32>,
    } else {
    }
    return
  }
  func.func @transform_0(%arg0: i32) -> (i32, i32) {
    %c0_i32 = arith.constant 0 : i32
    %c0_i32_0 = arith.constant 0 : i32
    %c0_i32_1 = arith.constant 0 : i32
    return %c0_i32, %c0_i32_0 : i32, i32
  }
  func.func @transform_1(%arg0: i32) -> (i32, i32) {
    %c0_i32 = arith.constant 0 : i32
    %c0_i32_0 = arith.constant 0 : i32
    %c0_i32_1 = arith.constant 0 : i32
    return %c0_i32, %c0_i32_0 : i32, i32
  }
  func.func @transform_2(%arg0: i32) -> (i32, i32) {
    %c0_i32 = arith.constant 0 : i32
    %c0_i32_0 = arith.constant 0 : i32
    %c0_i32_1 = arith.constant 0 : i32
    return %c0_i32, %c0_i32_0 : i32, i32
  }
  func.func @transform_3(%arg0: i32) -> (i32, i32, i32) {
    %c0_i32 = arith.constant 0 : i32
    %c0_i32_0 = arith.constant 0 : i32
    %c0_i32_1 = arith.constant 0 : i32
    return %arg0, %c0_i32, %c0_i32_0 : i32, i32, i32
  }
  func.func @transform_4(%arg0: i32) -> (i32, i32, i32) {
    %c0_i32 = arith.constant 0 : i32
    %c0_i32_0 = arith.constant 0 : i32
    %c0_i32_1 = arith.constant 0 : i32
    return %arg0, %c0_i32, %c0_i32_0 : i32, i32, i32
  }
  func.func @transform_5(%arg0: i32) -> (i32, i32, i32, i32) {
    %c0_i32 = arith.constant 0 : i32
    %c0_i32_0 = arith.constant 0 : i32
    %c0_i32_1 = arith.constant 0 : i32
    %c0_i32_2 = arith.constant 0 : i32
    return %arg0, %c0_i32, %c0_i32_0, %c0_i32_1 : i32, i32, i32, i32
  }
  func.func @transform_6(%arg0: i32) -> (i32, i32, i32, i32) {
    %c0_i32 = arith.constant 0 : i32
    %c0_i32_0 = arith.constant 0 : i32
    %c0_i32_1 = arith.constant 0 : i32
    %c0_i32_2 = arith.constant 0 : i32
    return %arg0, %c0_i32, %c0_i32_0, %c0_i32_1 : i32, i32, i32, i32
  }
  func.func @transform_7(%arg0: i32) -> (i32, i32, i32, i32) {
    %c0_i32 = arith.constant 0 : i32
    %c0_i32_0 = arith.constant 0 : i32
    %c0_i32_1 = arith.constant 0 : i32
    %c0_i32_2 = arith.constant 0 : i32
    return %arg0, %c0_i32, %c0_i32_0, %c0_i32_1 : i32, i32, i32, i32
  }
  func.func @transform_8(%arg0: i32) -> (i32, i32, i32, i32) {
    %c0_i32 = arith.constant 0 : i32
    %c0_i32_0 = arith.constant 0 : i32
    %c0_i32_1 = arith.constant 0 : i32
    %c0_i32_2 = arith.constant 0 : i32
    return %arg0, %c0_i32, %c0_i32_0, %c0_i32_1 : i32, i32, i32, i32
  }
  func.func @transform_9(%arg0: i32) -> (i32, i32, i32) {
    %c0_i32 = arith.constant 0 : i32
    %c0_i32_0 = arith.constant 0 : i32
    %c0_i32_1 = arith.constant 0 : i32
    return %arg0, %c0_i32, %c0_i32_0 : i32, i32, i32
  }
  func.func @transform_10(%arg0: i32) -> (i32, i32, i32) {
    %c0_i32 = arith.constant 0 : i32
    %c0_i32_0 = arith.constant 0 : i32
    %c0_i32_1 = arith.constant 0 : i32
    return %arg0, %c0_i32, %c0_i32_0 : i32, i32, i32
  }
  func.func @transform_11(%arg0: i32) -> (i32, i32, i32) {
    %c0_i32 = arith.constant 0 : i32
    %c0_i32_0 = arith.constant 0 : i32
    %c0_i32_1 = arith.constant 0 : i32
    return %arg0, %c0_i32, %c0_i32_0 : i32, i32, i32
  }
  func.func @transform_12(%arg0: i32) -> (i32, i32, i32) {
    %c0_i32 = arith.constant 0 : i32
    %c0_i32_0 = arith.constant 0 : i32
    %c0_i32_1 = arith.constant 0 : i32
    return %arg0, %c0_i32, %c0_i32_0 : i32, i32, i32
  }
  func.func @transform_13(%arg0: i32) -> (i32, i32, i32) {
    %c0_i32 = arith.constant 0 : i32
    %c0_i32_0 = arith.constant 0 : i32
    %c0_i32_1 = arith.constant 0 : i32
    return %arg0, %c0_i32, %c0_i32_0 : i32, i32, i32
  }
  func.func @transform_14(%arg0: i32) -> (i32, i32, i32) {
    %c0_i32 = arith.constant 0 : i32
    %c0_i32_0 = arith.constant 0 : i32
    %c0_i32_1 = arith.constant 0 : i32
    return %arg0, %c0_i32, %c0_i32_0 : i32, i32, i32
  }
  func.func @transform_15(%arg0: i32) -> (i32, i32) {
    %c0_i32 = arith.constant 0 : i32
    %c0_i32_0 = arith.constant 0 : i32
    %c0_i32_1 = arith.constant 0 : i32
    return %c0_i32, %c0_i32_0 : i32, i32
  }
  func.func @transform_16(%arg0: i32) -> (i32, i32) {
    %c0_i32 = arith.constant 0 : i32
    %c0_i32_0 = arith.constant 0 : i32
    %c0_i32_1 = arith.constant 0 : i32
    return %c0_i32, %c0_i32_0 : i32, i32
  }
  func.func @transform_17(%arg0: i32) -> (i32, i32) {
    %c0_i32 = arith.constant 0 : i32
    %c0_i32_0 = arith.constant 0 : i32
    %c0_i32_1 = arith.constant 0 : i32
    return %c0_i32, %c0_i32_0 : i32, i32
  }
  func.func @transform_18(%arg0: i32) -> (i32, i32, i32) {
    %c0_i32 = arith.constant 0 : i32
    %c0_i32_0 = arith.constant 0 : i32
    %c0_i32_1 = arith.constant 0 : i32
    return %arg0, %c0_i32, %c0_i32_0 : i32, i32, i32
  }
  func.func @transform_19(%arg0: i32) -> (i32, i32) {
    %c0_i32 = arith.constant 0 : i32
    %c0_i32_0 = arith.constant 0 : i32
    %c0_i32_1 = arith.constant 0 : i32
    return %c0_i32, %c0_i32_0 : i32, i32
  }
}

</mosaic_0001>

<bundles_post_ra>
// kernel: squeeze.14
= control target key start
LH: loop header
LB: loop body
LE: loop exit
PB: predicated region body
PF: predicated region fallthrough
CT: control target
= control target key end

     0   :  { %vm7_vm0 = vcmask 97280   ;;  %s69_s0 = inlined_call_operand.vmem [shape: f32[1,24,4], index: 0, kind: input, shape index: {}]   ;;  %s70_s1 = inlined_call_operand.vmem [shape: f32[2,12,4], index: 1, kind: output, shape index: {}]  }
   0x1   :  { %v4_v0 = vld [vmem:[%s69_s0] sm:$0xf]  ;;  %s43_s0 = smov 116  }
   0x2   :  { %5 = vst [vmem:[#allocation1] sm:$0xf] %v4_v0 }
   0x9   :  { %v9_v1 = vld [vmem:[#allocation1] sm:$0xf]  }
   0xa   :  { %v6_v2 = vld [vmem:[#allocation1] sm:$0xf]   ;;  %10 = vrot.lane.b32.xlu0 %v9_v1, %s43_s0 }
   0xb   :  { %8 = vst.msk [vmem:[#allocation0] ss:$8 sm:$0xf] %vm7_vm0, %v6_v2  }
  0x7c   :  { %v11_v3 = vpop.permute.xlu0 %10  }
  0x7d   :  { %14 = vst.msk [vmem:[#allocation0 + $0x1] ss:$8 sm:$0xf] %vm7_vm0, %v11_v3  }
  0x84   :  { %v17_v4 = vld [vmem:[#allocation0] sm:$0x3]  ;;  %v22_v5 = vld [vmem:[#allocation0 + $0x8] sm:$0x3]  ;;  %v28_v6 = vld [vmem:[#allocation0 + $0x10] sm:$0x3] }
  0x85   :  { %20 = vst [vmem:[%s70_s1] sm:$0x3] %v17_v4  ;;  %v34_v7 = vld [vmem:[#allocation0 + $0x18] sm:$0x3] }
  0x86   :  { %39 = vst [vmem:[%s70_s1 + $0x2] sm:$0x3] %v22_v5 }
  0x87   :  { %40 = vst [vmem:[%s70_s1 + $0x4] sm:$0x3] %v28_v6 }
  0x88   :  { %41 = vst [vmem:[%s70_s1 + $0x6] sm:$0x3] %v34_v7 }

// kernel: vlm_moe_forward.2
= control target key start
LH: loop header
LB: loop body
LE: loop exit
PB: predicated region body
PF: predicated region fallthrough
CT: control target
= control target key end

     0   :  { %vm131_vm0 = vcmask 523264   ;;  %vm163_vm1 = vcmask 195584   ;;  %v320_v24 = vmov 24.0   ;;  %vm221_vm3 = vcmask 1043456   ;;  %s427_s1 = inlined_call_operand.vmem [shape: bf16[192,24], index: 1, kind: input, shape index: {}]   ;;  %s428_s0 = inlined_call_operand.vmem [shape: f32[8,192], index: 0, kind: input, shape index: {}]   ;;  %s429_s2 = inlined_call_operand.vmem [shape: f32[1,24], index: 2, kind: input, shape index: {}]   ;;  %s430_s3 = inlined_call_operand.vmem [shape: f32[1,24], index: 3, kind: input, shape index: {}]   ;;  %s431_s4 = inlined_call_operand.vmem [shape: f32[1,24], index: 4, kind: input, shape index: {}]   ;;  %s432_s6 = inlined_call_operand.vmem [shape: f32[1,32], index: 6, kind: input, shape index: {}]   ;;  %s433_s5 = inlined_call_operand.vmem [shape: bf16[24,32], index: 5, kind: input, shape index: {}]   ;;  %s434_s7 = inlined_call_operand.vmem [shape: f32[8,32], index: 7, kind: output, shape index: {}]  }
   0x1   :  { %v305_v0 = vld [vmem:[%s427_s1 + $0x38] sm:$0xff]  ;;  %v304_v2 = vld [vmem:[%s427_s1 + $0x30] sm:$0xff]  ;;  %v303_v4 = vld [vmem:[%s427_s1 + $0x28] sm:$0xff]  ;;  %316 = vrcp.f32 %v320_v24  ;;  %vm238_vm7 = vcmask 261120  }
   0x2   :  { %v309_v1 = vld [vmem:[%s427_s1 + $0x58] sm:$0xff]  ;;  %135 = vmatpush.bf16.msra.mxu0 %v305_v0  ;;  %v308_v3 = vld [vmem:[%s427_s1 + $0x50] sm:$0xff]  ;;  %v307_v5 = vld [vmem:[%s427_s1 + $0x48] sm:$0xff] }
   0x3   :  { %152 = vmatpush.bf16.msra.mxu1 %v309_v1  ;;  %v302_v6 = vld [vmem:[%s427_s1 + $0x20] sm:$0xff]  ;;  %v28_v8 = vld [vmem:[%s428_s0 + $0x8] sm:$0xff]  ;;  %v301_v9 = vld [vmem:[%s427_s1 + $0x18] sm:$0xff] }
   0x4   :  { %v306_v7 = vld [vmem:[%s427_s1 + $0x40] sm:$0xff]  ;;  %v30_v10 = vpack.c.bf16 %v28_v8, %v28_v8  ;;  %v300_v11 = vld [vmem:[%s427_s1 + $0x10] sm:$0xff]  ;;  %v299_v12 = vld [vmem:[%s427_s1 + $0x8] sm:$0xff] }
   0x5   :  { %v298_v13 = vld [vmem:[%s427_s1] sm:$0xff]  ;;  %v204_v36 = vld [vmem:[%s433_s5 + $0x8] sm:$0xf] }
   0x6   :  { %136 = vmatpush.bf16.msra.mxu0 %v304_v2  ;;  %v27_v14 = vld [vmem:[%s428_s0] sm:$0xff]  ;;  %v214_v37 = vunpack.c.l.b16 %v204_v36 }
   0x7   :  { %153 = vmatpush.bf16.msra.mxu1 %v308_v3  ;;  %v29_v15 = vpack.c.bf16 %v27_v14, %v27_v14  ;;  %v312_v18 = vld [vmem:[%s429_s2] ss:$0 sm:$0xff]  ;;  %v317_v25 = vpop.eup %316 }
   0x8   :  { %v168_v26 = vmul.f32 24.0, %v317_v25  ;;  %vm172_vm2 = vweird.f32 %v317_v25  ;;  %v216_v38 = vpack.c.b16 %v214_v37, %v214_v37  ;;  %v310_v40 = vld [vmem:[%s433_s5] sm:$0xff] }
   0x9   :  { %v313_v50 = vld [vmem:[%s430_s3] ss:$0 sm:$0xff] }
   0xa   :  { %137 = vmatpush.bf16.msra.mxu0 %v303_v4  ;;  %v169_v27 = vsub.f32 1.0, %v168_v26  ;;  %v223_v39 = vsel %vm221_vm3, %v216_v38, 0  ;;  %v314_v53 = vld [vmem:[%s431_s4] ss:$0 sm:$0xff] }
   0xb   :  { %154 = vmatpush.bf16.msra.mxu1 %v307_v5  ;;  %231 = vmatpush.bf16.msra.mxu2 %v223_v39  ;;  %v315_v57 = vld [vmem:[%s432_s6] ss:$0 sm:$0xff] }
   0xc   :  { %v170_v28 = vmul.f32 %v317_v25, %v169_v27 }
   0xe   :  { %138 = vmatpush.bf16.msra.mxu0 %v302_v6  ;;  %v171_v29 = vadd.f32 %v317_v25, %v170_v28 }
   0xf   :  { %155 = vmatpush.bf16.msra.mxu1 %v306_v7  ;;  %232 = vmatpush.bf16.msra.mxu2 %v310_v40 }
  0x10   :  { %v173_v30 = vsel %vm172_vm2, %v317_v25, %v171_v29 }
  0x12   :  { %139 = vmatpush.bf16.msra.mxu0 %v301_v9  ;;  %292 = vmatmul.msk.bf16.vlgmr.msra.gmra.mxu1 %vm131_vm0, %v30_v10 }
  0x16   :  { %140 = vmatpush.bf16.msra.mxu0 %v300_v11 }
  0x1a   :  { %141 = vmatpush.bf16.msra.mxu0 %v299_v12 }
  0x1e   :  { %142 = vmatpush.bf16.msra.mxu0 %v298_v13 }
  0x21   :  { %143 = vmatmul.bf16.vlgmr.msra.gmra.mxu0 %v29_v15 }
  0x8f   :  { %v157_v16 = vpop.f32.mrf.mxu1 }
  0x97   :  { %v159_v17 = vpop.f32.mrf.mxu1 }
  0x9e   :  { %v144_v19 = vpop.f32.mrf.mxu0 }
  0x9f   :  { %v145_v20 = vadd.f32 %v312_v18, %v144_v19 }
  0xa1   :  { %v158_v21 = vadd.f32 %v157_v16, %v145_v20 }
  0xa3   :  { %v164_v22 = vsel %vm163_vm1, %v158_v21, 0.0 }
  0xa4   :  { %165 = vadd.xlane.f32.xlu0 %v164_v22 }
  0xa6   :  { %v146_v23 = vpop.f32.mrf.mxu0 }
 0x117   :  { %v166_v31 = vpop.xlane.xlu0 %165 }
 0x118   :  { %v174_v32 = vmul.f32 %v173_v30, %v166_v31 }
 0x11a   :  { %v175_v33 = vsub.f32 %v158_v21, %v174_v32 }
 0x11c   :  { %v176_v34 = vmul.f32 %v175_v33, %v175_v33 }
 0x11e   :  { %v177_v35 = vsel %vm163_vm1, %v176_v34, 0.0 }
 0x11f   :  { %178 = vadd.xlane.f32.xlu0 %v177_v35 }
 0x192   :  { %v179_v41 = vpop.xlane.xlu0 %178 }
 0x193   :  { %v180_v42 = vmul.f32 %v179_v41, %v173_v30 }
 0x195   :  { %v181_v43 = vadd.f32 1e-05, %v180_v42 }
 0x197   :  { %318 = vrsqrt.f32 %v181_v43  ;;  %vm188_vm5 = vweird.f32 %v181_v43 }
 0x19d   :  { %v319_v44 = vpop.eup %318 }
 0x19e   :  { %v183_v45 = vmul.f32 %v319_v44, %v181_v43  ;;  %vm189_vm4 = vweird.f32 %v319_v44 }
 0x19f   :  { %vm190_vm6 = vmor %vm188_vm5, %vm189_vm4 }
 0x1a0   :  { %v184_v46 = vmul.f32 %v319_v44, %v183_v45 }
 0x1a2   :  { %v185_v47 = vmul.f32 0.5, %v184_v46 }
 0x1a4   :  { %v186_v48 = vsub.f32 1.5, %v185_v47 }
 0x1a6   :  { %v187_v49 = vmul.f32 %v319_v44, %v186_v48 }
 0x1a8   :  { %v191_v51 = vsel %vm190_vm6, %v319_v44, %v187_v49 }
 0x1a9   :  { %v192_v52 = vmul.f32 %v191_v51, %v175_v33 }
 0x1ab   :  { %v196_v54 = vmul.f32 %v313_v50, %v192_v52 }
 0x1ad   :  { %v200_v55 = vadd.f32 %v314_v53, %v196_v54 }
 0x1af   :  { %v201_v56 = vpack.c.bf16 %v200_v55, %v200_v55 }
 0x1b1   :  { %297 = vmatmul.msk.bf16.vlgmr.msra.gmra.mxu2 %vm163_vm1, %v201_v56 }
 0x234   :  { %v234_v58 = vpop.f32.mrf.mxu2 }
 0x235   :  { %v235_v59 = vadd.f32 %v315_v57, %v234_v58 }
 0x237   :  { %239 = vst.msk [vmem:[%s434_s7] sm:$0xff] %vm238_vm7, %v235_v59 }
 0x23c   :  { %v236_v60 = vpop.f32.mrf.mxu2 }

// kernel: vlm_moe_forward.3
= control target key start
LH: loop header
LB: loop body
LE: loop exit
PB: predicated region body
PF: predicated region fallthrough
CT: control target
= control target key end

     0   :  { %s4366_s0 = inlined_call_operand.vmem [shape: f32[24,32], index: 0, kind: input, shape index: {}]   ;;  %s4367_s1 = inlined_call_operand.vmem [shape: f32[24,24], index: 1, kind: input, shape index: {}]   ;;  %s4368_s2 = inlined_call_operand.vmem [shape: s32[1,256], index: 2, kind: input, shape index: {}]   ;;  %s4369_s3 = inlined_call_operand.vmem [shape: f32[2,1,32], index: 3, kind: input, shape index: {}]   ;;  %s4370_s4 = inlined_call_operand.vmem [shape: f32[2,1,32], index: 4, kind: input, shape index: {}]   ;;  %s4371_s5 = inlined_call_operand.vmem [shape: bf16[2,4,32,8], index: 5, kind: input, shape index: {}]   ;;  %s4372_s6 = inlined_call_operand.vmem [shape: bf16[2,4,32,8], index: 6, kind: input, shape index: {}]   ;;  %s4373_s7 = inlined_call_operand.vmem [shape: bf16[2,4,32,8], index: 7, kind: input, shape index: {}]   ;;  %s4374_s8 = inlined_call_operand.vmem [shape: bf16[2,4,8,32], index: 8, kind: input, shape index: {}]   ;;  %s4375_s9 = inlined_call_operand.vmem [shape: f32[2,1,32], index: 9, kind: input, shape index: {}]   ;;  %s4376_s10 = inlined_call_operand.vmem [shape: f32[2,1,32], index: 10, kind: input, shape index: {}]   ;;  %s4377_s11 = inlined_call_operand.vmem [shape: bf16[2,32,4], index: 11, kind: input, shape index: {}]   ;;  %s4378_s12 = inlined_call_operand.vmem [shape: f32[2,1,4], index: 12, kind: input, shape index: {}]   ;;  %s4379_s13 = inlined_call_operand.vmem [shape: bf16[2,32,512], index: 13, kind: input, shape index: {}]   ;;  %s4380_s14 = inlined_call_operand.vmem [shape: bf16[2,256,32], index: 14, kind: input, shape index: {}]   ;;  %s4381_s15 = inlined_call_operand.vmem [shape: f32[1,32], index: 15, kind: input, shape index: {}]   ;;  %s4382_s16 = inlined_call_operand.vmem [shape: f32[1,32], index: 16, kind: input, shape index: {}]   ;;  %s4383_s17 = inlined_call_operand.vmem [shape: bf16[32,128], index: 17, kind: input, shape index: {}]   ;;  %s4384_s18 = inlined_call_operand.vmem [shape: f32[2,24,128], index: 18, kind: output, shape index: {0}]   ;;  %s4385_s19 = inlined_call_operand.vmem [shape: f32[24,128], index: 19, kind: output, shape index: {1}]  }
   0x1   :  { %4391 = sst [smem:[#allocation4_spill]] %s4366_s0  ;;  %s3691_s0 = smov 0  }
   0x2   :  { %4392 = sst [smem:[#allocation5_spill]] %s4367_s1 }
   0x3   :  { %4393 = sst [smem:[#allocation6_spill]] %s4368_s2 }
   0x4   :  { %4394 = sst [smem:[#allocation7_spill]] %s4369_s3 }
   0x5   :  { %4395 = sst [smem:[#allocation8_spill]] %s4371_s5 }
   0x6   :  { %4396 = sst [smem:[#allocation9_spill]] %s4372_s6 }
   0x7   :  { %4397 = sst [smem:[#allocation10_spill]] %s4373_s7 }
   0x8   :  { %4398 = sst [smem:[#allocation11_spill]] %s4374_s8 }
   0x9   :  { %4399 = sst [smem:[#allocation12_spill]] %s4381_s15 }
   0xa   :  { %4400 = sst [smem:[#allocation13_spill]] %s4382_s16 }
   0xb   :  { %4401 = sst [smem:[#allocation14_spill]] %s4383_s17 }
   0xc   :  { %4402 = sst [smem:[#allocation15_spill]] %s4385_s19 }
   0xd LB: > { %4403 = sst [smem:[#allocation3_spill]] %s3586_s0  ;;  %s3697_s30 = sadd.s32 4294967295, %s3586_s0   ;;  %s3586_s0 = sphi %s3691_s0, %s30_s0  }
   0xe   : > { %p3097_p0 = scmp.ge.s32.totalorder %s3586_s0, 1  ;;  %p635_p1 = scmp.lt.s32.totalorder %s3586_s0, 3 }
  0x10   : > { %p636_p2 = pnand %p3097_p0, %p635_p1 }
  0x11   : > { %p736_p3 = scmp.lt.s32.totalorder (!%p636_p2), %s3697_s30, 1  ;;  %s4405_s5 = sld [smem:[#allocation8_spill]] (!%p636_p2) }
  0x12   : > { %639 = sbr.rel (%p636_p2) target bundleno = 2857 (0xb29), region = 92  ;;  %s4406_s6 = sld [smem:[#allocation9_spill]] (!%p636_p2) }
  0x13   : > { %s4407_s7 = sld [smem:[#allocation10_spill]] (!%p636_p2)  ;;  %p3113_p4 = scmp.ne.s32.totalorder (!%p636_p2), %s3697_s30, 0 }
  0x14   : > { %s4408_s8 = sld [smem:[#allocation11_spill]] (!%p636_p2) }
  0x17   : > { %s3703_s20 = scalar_select %p736_p3, %s3697_s30, 1 }
  0x18   : > { %s4409_s19 = sld [smem:[#allocation4_spill]] (!%p3113_p4) }
  0x19   : > { %s3391_s3 = sshll.u32 %s3703_s20, 6  ;;  %s3394_s26 = sshll.u32 %s3703_s20, 4 }
  0x1a   : > { %s3718_s29 = scalar_lea.vmem %s4405_s5, %s3391_s3  ;;  %s3723_s0 = scalar_lea.vmem %s4406_s6, %s3391_s3 }
  0x1b   : > { %s3728_s22 = scalar_lea.vmem %s4407_s7, %s3391_s3  ;;  %s3733_s24 = scalar_lea.vmem %s4408_s8, %s3394_s26 }
  0x1c   : > { %s3746_s17 = scalar_lea.vmem %s4377_s11, %s3394_s26  ;;  %s775_s7 = scalar_lea.vmem %s4378_s12, %s3703_s20 }
  0x1d   : > { %s3755_s8 = scalar_lea.vmem %s4379_s13, %s3391_s3  ;;  %s3397_s15 = sshll.u32 %s3703_s20, 7 }
  0x1e   : > { %s3761_s5 = scalar_lea.vmem %s4380_s14, %s3397_s15  ;;  %s3454_s28 = smul.u32 24, %s3703_s20 }
  0x1f   : > { %795 = sbr.rel (%p3113_p4) target bundleno = 40 (0x28), region = 96 }
  0x20   : > { %s3767_s26 = scalar_lea.vmem %s4384_s18, %s3454_s28 }
  0x24   : > { %v796_v0 = vld [vmem:[%s4409_s19] sm:$0xff]  ;;  %vm799_vm0 = vcmask 261120   ;;  %v797_v1 = vld [vmem:[%s4409_s19 + $0x8] sm:$0xff]  ;;  %v798_v2 = vld [vmem:[%s4409_s19 + $0x10] sm:$0xff] }
  0x25   : > { %800 = vst.msk [vmem:[#allocation2] sm:$0xff] %vm799_vm0, %v796_v0 }
  0x26   : > { %801 = vst.msk [vmem:[#allocation2 + $0x8] sm:$0xff] %vm799_vm0, %v797_v1 }
  0x27   : > { %802 = vst.msk [vmem:[#allocation2 + $0x10] sm:$0xff] %vm799_vm0, %v798_v2 }
  0x28 PF: > { %vm808_vm1 = vcmask 261120   ;;  %v3588_v9 = vmov 32.0   ;;  %v3399_v31 = vld [vmem:[%s3718_s29 + $0x8] sm:$0xff]  ;;  %v3398_v32 = vld [vmem:[%s3718_s29] sm:$0xff]  ;;  %v3401_v38 = vld [vmem:[%s3718_s29 + $0x18] sm:$0xff]  ;;  %s4412_s1 = scalar_lea.vmem %s4370_s4, %s3703_s20  ;;  %vm1374_vm12 = vcmask 64512   ;;  %s4414_s21 = scalar_lea.vmem %s4375_s9, %s3703_s20 }
  0x29   : > { %3471 = vrcp.f32 %v3588_v9  ;;  %3450 = vmatpush.bf16.msra.mxu3 %v3399_v31  ;;  %945 = vmatpush.bf16.msra.mxu0 %v3399_v31  ;;  %v3403_v39 = vld [vmem:[%s3718_s29 + $0x28] sm:$0xff]  ;;  %v3405_v40 = vld [vmem:[%s3718_s29 + $0x38] sm:$0xff]  ;;  %v3400_v45 = vld [vmem:[%s3718_s29 + $0x10] sm:$0xff]  ;;  %vm1723_vm13 = vcmask 1043456   ;;  %s4413_s16 = sld [smem:[#allocation5_spill]]  ;;  %vm1543_vm14 = vcmask 195584  }
  0x2a   : > { %975 = vmatpush.bf16.msra.mxu1 %v3401_v38  ;;  %1005 = vmatpush.bf16.msra.mxu2 %v3403_v39  ;;  %v3402_v46 = vld [vmem:[%s3718_s29 + $0x20] sm:$0xff]  ;;  %v3404_v47 = vld [vmem:[%s3718_s29 + $0x30] sm:$0xff]  ;;  %v3407_v56 = vld [vmem:[%s3723_s0 + $0x8] sm:$0xff]  ;;  %s4410_s29 = sld [smem:[#allocation7_spill]]  ;;  %p3378_p5 = scmp.ne.s32.totalorder %s3697_s30, 1 }
  0x2b   : > { %v3406_v60 = vld [vmem:[%s3723_s0] sm:$0xff]  ;;  %v3416_v38 = vld [vmem:[%s3728_s22 + $0x10] sm:$0xff]  ;;  %s4418_s27 = sld [smem:[#allocation12_spill]] (!%p3378_p5) }
  0x2c   : > { %v803_v7 = vld [vmem:[#allocation2] sm:$0xff] }
  0x2d   : > { %v804_v4 = vld [vmem:[#allocation2 + $0x8] sm:$0xff]  ;;  %v809_v8 = vsel %vm808_vm1, %v803_v7, 0.0  ;;  %3451 = vmatpush.bf16.msra.mxu3 %v3398_v32  ;;  %946 = vmatpush.bf16.msra.mxu0 %v3398_v32  ;;  %v3467_v61 = vld [vmem:[%s4412_s1] ss:$0 sm:$0xff]  ;;  %s4416_s1 = sld [smem:[#allocation6_spill]] }
  0x2e   : > { %v805_v3 = vld [vmem:[#allocation2 + $0x10] sm:$0xff]  ;;  %v812_v6 = vsel %vm808_vm1, %v804_v4, 0.0  ;;  %976 = vmatpush.bf16.msra.mxu1 %v3400_v45  ;;  %1006 = vmatpush.bf16.msra.mxu2 %v3402_v46  ;;  %v3418_v39 = vld [vmem:[%s3728_s22 + $0x20] sm:$0xff] }
  0x2f   : > { %v815_v5 = vsel %vm808_vm1, %v805_v3, 0.0  ;;  %813 = vadd.xlane.f32.xlu1 %v812_v6  ;;  %v3472_v10 = vpop.eup %3471 }
  0x30   : > { %816 = vadd.xlane.f32.xlu0 %v815_v5  ;;  %v819_v11 = vmul.f32 32.0, %v3472_v10  ;;  %vm823_vm2 = vweird.f32 %v3472_v10  ;;  %s4411_s25 = scalar_lea.vmem %s4410_s29, %s3703_s20  ;;  %s4415_s29 = scalar_lea.vmem %s4376_s10, %s3703_s20 }
  0x31   : > { %1035 = vmatpush.bf16.msrb.mxu3 %v3405_v40  ;;  %v3466_v57 = vld [vmem:[%s4411_s25] ss:$0 sm:$0xff]  ;;  %1081 = vmatpush.bf16.msrb.mxu0 %v3407_v56  ;;  %v3420_v40 = vld [vmem:[%s3728_s22 + $0x30] sm:$0xff] }
  0x32   : > { %v820_v12 = vsub.f32 1.0, %v819_v11 }
  0x34   : > { %v821_v13 = vmul.f32 %v3472_v10, %v820_v12 }
  0x35   : > { %1036 = vmatpush.bf16.msrb.mxu3 %v3404_v47  ;;  %1082 = vmatpush.bf16.msrb.mxu0 %v3406_v60 }
  0x36   : > { %v822_v14 = vadd.f32 %v3472_v10, %v821_v13 }
  0x38   : > { %810 = vadd.xlane.f32.xlu0 %v809_v8  ;;  %v3782_v15 = vsel %vm823_vm2, %v3472_v10, %v822_v14 }
  0xa2   : > { %v814_v20 = vpop.xlane.xlu1 %813 }
  0xa3   : > { %v817_v16 = vpop.xlane.xlu0 %816  ;;  %v826_v24 = vmul.f32 %v3782_v15, %v814_v20 }
  0xa4   : > { %v827_v17 = vmul.f32 %v3782_v15, %v817_v16 }
  0xa5   : > { %v3794_v26 = vsub.f32 %v804_v4, %v826_v24 }
  0xa6   : > { %v3785_v18 = vsub.f32 %v805_v3, %v827_v17  ;;  %v3411_v17 = vld [vmem:[%s3723_s0 + $0x28] sm:$0xff] }
  0xa7   : > { %v832_v29 = vmul.f32 %v3794_v26, %v3794_v26  ;;  %1141 = vmatpush.bf16.msrb.mxu2 %v3411_v17 }
  0xa8   : > { %v833_v19 = vmul.f32 %v3785_v18, %v3785_v18 }
  0xa9   : > { %v837_v30 = vsel %vm808_vm1, %v832_v29, 0.0 }
  0xaa   : > { %v840_v21 = vsel %vm808_vm1, %v833_v19, 0.0  ;;  %v3413_v19 = vld [vmem:[%s3723_s0 + $0x38] sm:$0xff] }
  0xab   : > { %841 = vadd.xlane.f32.xlu1 %v840_v21  ;;  %v811_v22 = vpop.xlane.xlu0 %810  ;;  %v3408_v21 = vld [vmem:[%s3723_s0 + $0x10] sm:$0xff] }
  0xac   : > { %v825_v23 = vmul.f32 %v3782_v15, %v811_v22  ;;  %v3410_v22 = vld [vmem:[%s3723_s0 + $0x20] sm:$0xff] }
  0xad   : > { %1142 = vmatpush.bf16.msrb.mxu2 %v3410_v22 }
  0xae   : > { %v3792_v25 = vsub.f32 %v803_v7, %v825_v23 }
  0xb0   : > { %v831_v27 = vmul.f32 %v3792_v25, %v3792_v25 }
  0xb2   : > { %v834_v28 = vsel %vm808_vm1, %v831_v27, 0.0 }
  0xb3   : > { %835 = vadd.xlane.f32.xlu2 %v834_v28 }
  0xbb   : > { %838 = vadd.xlane.f32.xlu2 %v837_v30 }
 0x11e   : > { %v842_v33 = vpop.xlane.xlu1 %841 }
 0x11f   : > { %v845_v34 = vmul.f32 %v842_v33, %v3782_v15 }
 0x121   : > { %v848_v35 = vadd.f32 1e-05, %v845_v34  ;;  %v3414_v34 = vld [vmem:[%s3728_s22] sm:$0xff] }
 0x123   : > { %3473 = vrsqrt.f32 %v848_v35  ;;  %vm875_vm4 = vweird.f32 %v848_v35 }
 0x126   : > { %v836_v36 = vpop.xlane.xlu2 %835 }
 0x127   : > { %v843_v37 = vmul.f32 %v836_v36, %v3782_v15  ;;  %v3419_v36 = vld [vmem:[%s3728_s22 + $0x28] sm:$0xff] }
 0x129   : > { %v3474_v41 = vpop.eup %3473  ;;  %v846_v42 = vadd.f32 1e-05, %v843_v37  ;;  %v3421_v37 = vld [vmem:[%s3728_s22 + $0x38] sm:$0xff] }
 0x12a   : > { %v870_v43 = vmul.f32 %v3474_v41, %v848_v35  ;;  %vm876_vm3 = vweird.f32 %v3474_v41  ;;  %v3417_v35 = vld [vmem:[%s3728_s22 + $0x18] sm:$0xff] }
 0x12b   : > { %3475 = vrsqrt.f32 %v846_v42  ;;  %vm877_vm5 = vmor %vm875_vm4, %vm876_vm3  ;;  %vm855_vm7 = vweird.f32 %v846_v42 }
 0x12c   : > { %v871_v44 = vmul.f32 %v3474_v41, %v870_v43 }
 0x12e   : > { %v872_v48 = vmul.f32 0.5, %v871_v44  ;;  %v839_v49 = vpop.xlane.xlu2 %838 }
 0x12f   : > { %v844_v50 = vmul.f32 %v839_v49, %v3782_v15 }
 0x130   : > { %v873_v51 = vsub.f32 1.5, %v872_v48 }
 0x131   : > { %v3476_v52 = vpop.eup %3475  ;;  %v847_v53 = vadd.f32 1e-05, %v844_v50 }
 0x132   : > { %v874_v54 = vmul.f32 %v3474_v41, %v873_v51  ;;  %v850_v55 = vmul.f32 %v3476_v52, %v846_v42  ;;  %vm856_vm6 = vweird.f32 %v3476_v52 }
 0x133   : > { %3477 = vrsqrt.f32 %v847_v53  ;;  %vm857_vm8 = vmor %vm855_vm7, %vm856_vm6  ;;  %vm865_vm10 = vweird.f32 %v847_v53 }
 0x134   : > { %v878_v58 = vsel %vm877_vm5, %v3474_v41, %v874_v54  ;;  %v851_v59 = vmul.f32 %v3476_v52, %v850_v55 }
 0x135   : > { %v881_v62 = vmul.f32 %v878_v58, %v3785_v18  ;;  %v3409_v18 = vld [vmem:[%s3723_s0 + $0x18] sm:$0xff] }
 0x136   : > { %v852_v63 = vmul.f32 0.5, %v851_v59  ;;  %1111 = vmatpush.bf16.msrb.mxu1 %v3409_v18 }
 0x137   : > { %v887_v0 = vmul.f32 %v3466_v57, %v881_v62 }
 0x138   : > { %v853_v1 = vsub.f32 1.5, %v852_v63 }
 0x139   : > { %v3478_v2 = vpop.eup %3477  ;;  %v893_v3 = vadd.f32 %v3467_v61, %v887_v0 }
 0x13a   : > { %v854_v4 = vmul.f32 %v3476_v52, %v853_v1  ;;  %v860_v5 = vmul.f32 %v3478_v2, %v847_v53  ;;  %vm866_vm9 = vweird.f32 %v3478_v2  ;;  %1112 = vmatpush.bf16.msrb.mxu1 %v3408_v21 }
 0x13b   : > { %v896_v6 = vpack.c.bf16 %v893_v3, %v893_v3  ;;  %vm867_vm11 = vmor %vm865_vm10, %vm866_vm9  ;;  %vm2183_vm9 = vcmask 31744  }
 0x13c   : > { %v858_v7 = vsel %vm857_vm8, %v3476_v52, %v854_v4  ;;  %v861_v8 = vmul.f32 %v3478_v2, %v860_v5 }
 0x13d   : > { %v918_v9 = vunpack.c.l.b16 %v896_v6  ;;  %v879_v10 = vmul.f32 %v858_v7, %v3792_v25  ;;  %v3412_v25 = vld [vmem:[%s3723_s0 + $0x30] sm:$0xff] }
 0x13e   : > { %v862_v11 = vmul.f32 0.5, %v861_v8 }
 0x13f   : > { %v3827_v12 = vpack.c.b16 %v918_v9, %v918_v9  ;;  %v885_v14 = vmul.f32 %v3466_v57, %v879_v10 }
 0x140   : > { %v863_v13 = vsub.f32 1.5, %v862_v11 }
 0x141   : > { %3123 = vmatmul.msk.bf16.vlgmr.msra.gmra.mxu3 %vm808_vm1, %v3827_v12  ;;  %v891_v23 = vadd.f32 %v3467_v61, %v885_v14 }
 0x142   : > { %v864_v16 = vmul.f32 %v3478_v2, %v863_v13  ;;  %1171 = vmatpush.bf16.msra.mxu3 %v3413_v19 }
 0x143   : > { %v894_v28 = vpack.c.bf16 %v891_v23, %v891_v23 }
 0x144   : > { %v868_v20 = vsel %vm867_vm11, %v3478_v2, %v864_v16 }
 0x145   : > { %v880_v24 = vmul.f32 %v868_v20, %v3794_v26  ;;  %v916_v31 = vunpack.c.l.b16 %v894_v28  ;;  %v3415_v26 = vld [vmem:[%s3728_s22 + $0x8] sm:$0xff] }
 0x146   : > { %1172 = vmatpush.bf16.msra.mxu3 %v3412_v25 }
 0x147   : > { %v886_v27 = vmul.f32 %v3466_v57, %v880_v24 }
 0x149   : > { %v892_v29 = vadd.f32 %v3467_v61, %v886_v27 }
 0x14b   : > { %v895_v30 = vpack.c.bf16 %v892_v29, %v892_v29 }
 0x14d   : > { %v917_v32 = vunpack.c.l.b16 %v895_v30 }
 0x14f   : > { %v919_v33 = vpack.c.b16 %v917_v32, %v916_v31 }
 0x151   : > { %3122 = vmatmul.msk.bf16.vlgmr.msra.gmra.mxu0 %vm808_vm1, %v919_v33  ;;  %3132 = vmatmul.msk.bf16.vlgmr.msra.gmra.mxu1 %vm808_vm1, %v919_v33 }
 0x152   : > { %3142 = vmatmul.msk.bf16.vlgmr.msra.gmra.mxu2 %vm808_vm1, %v919_v33  ;;  %3152 = vmatmul.msk.bf16.vlgmr.msrb.gmra.mxu3 %vm808_vm1, %v919_v33 }
 0x153   : > { %1217 = vmatpush.bf16.msra.mxu0 %v3415_v26  ;;  %1247 = vmatpush.bf16.msra.mxu1 %v3417_v35 }
 0x154   : > { %1277 = vmatpush.bf16.msra.mxu2 %v3419_v36  ;;  %1307 = vmatpush.bf16.msrb.mxu3 %v3421_v37 }
 0x157   : > { %1218 = vmatpush.bf16.msra.mxu0 %v3414_v34  ;;  %1248 = vmatpush.bf16.msra.mxu1 %v3416_v38 }
 0x158   : > { %1278 = vmatpush.bf16.msra.mxu2 %v3418_v39  ;;  %1308 = vmatpush.bf16.msrb.mxu3 %v3420_v40 }
 0x161   : > { %3133 = vmatmul.msk.bf16.gmra.mxu1 %vm808_vm1, %v3827_v12  ;;  %3162 = vmatmul.msk.bf16.vlgmr.msrb.gmra.mxu0 %vm808_vm1, %v919_v33 }
 0x162   : > { %3143 = vmatmul.msk.bf16.gmra.mxu2 %vm808_vm1, %v3827_v12  ;;  %3153 = vmatmul.msk.bf16.gmra.mxu3 %vm808_vm1, %v3827_v12 }
 0x171   : > { %3163 = vmatmul.msk.bf16.gmra.mxu0 %vm808_vm1, %v3827_v12  ;;  %3172 = vmatmul.msk.bf16.vlgmr.msrb.gmra.mxu1 %vm808_vm1, %v919_v33 }
 0x172   : > { %3182 = vmatmul.msk.bf16.vlgmr.msrb.gmra.mxu2 %vm808_vm1, %v919_v33  ;;  %3192 = vmatmul.msk.bf16.vlgmr.msra.gmra.mxu3 %vm808_vm1, %v919_v33 }
 0x181   : > { %3173 = vmatmul.msk.bf16.gmra.mxu1 %vm808_vm1, %v3827_v12  ;;  %3202 = vmatmul.msk.bf16.vlgmr.msra.gmra.mxu0 %vm808_vm1, %v919_v33 }
 0x182   : > { %3183 = vmatmul.msk.bf16.gmra.mxu2 %vm808_vm1, %v3827_v12  ;;  %3193 = vmatmul.msk.bf16.gmra.mxu3 %vm808_vm1, %v3827_v12 }
 0x191   : > { %3203 = vmatmul.msk.bf16.gmra.mxu0 %vm808_vm1, %v3827_v12  ;;  %3212 = vmatmul.msk.bf16.vlgmr.msra.gmra.mxu1 %vm808_vm1, %v919_v33 }
 0x192   : > { %3222 = vmatmul.msk.bf16.vlgmr.msra.gmra.mxu2 %vm808_vm1, %v919_v33  ;;  %3232 = vmatmul.msk.bf16.vlgmr.msrb.gmra.mxu3 %vm808_vm1, %v919_v33 }
 0x1a1   : > { %3213 = vmatmul.msk.bf16.gmra.mxu1 %vm808_vm1, %v3827_v12 }
 0x1a2   : > { %3223 = vmatmul.msk.bf16.gmra.mxu2 %vm808_vm1, %v3827_v12  ;;  %3233 = vmatmul.msk.bf16.gmra.mxu3 %vm808_vm1, %v3827_v12 }
 0x1c4   : > { %v953_v41 = vpop.f32.mrf.mxu3 }
 0x1c5   : > { %v1321_v36 = vmul.f32 0.35355338, %v953_v41 }
 0x1cc   : > { %v955_v42 = vpop.f32.mrf.mxu3 }
 0x1ce   : > { %v948_v43 = vpop.f32.mrf.mxu0  ;;  %v3880_v44 = vpop.f32.mrf.mxu1 }
 0x1cf   : > { %v1319_v10 = vmul.f32 0.35355338, %v948_v43 }
 0x1d1   : > { %v1331_v13 = vpack.c.bf16 %v1319_v10, %v1319_v10 }
 0x1d3   : > { %v1361_v22 = vunpack.c.l.b16 %v1331_v13 }
 0x1d5   : > { %v3882_v45 = vpop.f32.mrf.mxu2  ;;  %v3884_v46 = vpop.f32.mrf.mxu3 }
 0x1d6   : > { %v950_v47 = vpop.f32.mrf.mxu0  ;;  %v980_v48 = vpop.f32.mrf.mxu1 }
 0x1d7   : > { %v1320_v8 = vmul.f32 0.35355338, %v950_v47  ;;  %v1323_v37 = vmul.f32 0.35355338, %v980_v48  ;;  %v1322_v47 = vmul.f32 0.35355338, %v3880_v44 }
 0x1d9   : > { %v1332_v12 = vpack.c.bf16 %v1320_v8, %v1320_v8 }
 0x1db   : > { %v1362_v20 = vunpack.c.l.b16 %v1332_v12 }
 0x1dd   : > { %v3886_v49 = vpop.f32.mrf.mxu2  ;;  %v3888_v50 = vpop.f32.mrf.mxu3  ;;  %v1364_v25 = vpack.c.b16 %v1362_v20, %v1361_v22 }
 0x1de   : > { %v3890_v51 = vpop.f32.mrf.mxu1  ;;  %v1084_v52 = vpop.f32.mrf.mxu0 }
 0x1df   : > { %v1343_v0 = vpack.c.bf16 %v1084_v52, %v1084_v52 }
 0x1e1   : > { %v1369_v9 = vunpack.c.l.b16 %v1343_v0 }
 0x1e5   : > { %v3892_v53 = vpop.f32.mrf.mxu2  ;;  %v3894_v54 = vpop.f32.mrf.mxu3 }
 0x1e6   : > { %v985_v55 = vpop.f32.mrf.mxu1  ;;  %v1086_v56 = vpop.f32.mrf.mxu0 }
 0x1e7   : > { %v1344_v62 = vpack.c.bf16 %v1086_v56, %v1086_v56 }
 0x1e9   : > { %v1370_v2 = vunpack.c.l.b16 %v1344_v62 }
 0x1eb   : > { %v1372_v11 = vpack.c.b16 %v1370_v2, %v1369_v9  ;;  %v1326_v2 = vmul.f32 0.35355338, %v3886_v49  ;;  %v1325_v9 = vmul.f32 0.35355338, %v3882_v45 }
 0x1ed   : > { %v1015_v57 = vpop.f32.mrf.mxu2  ;;  %v1045_v58 = vpop.f32.mrf.mxu3  ;;  %v1382_v17 = vsel %vm1374_vm12, %v1372_v11, 0  ;;  %v1328_v11 = vmul.f32 0.35355338, %v3884_v46 }
 0x1ee   : > { %v1089_v59 = vpop.f32.mrf.mxu0  ;;  %v1114_v60 = vpop.f32.mrf.mxu1 }
 0x1ef   : > { %v1345_v61 = vpack.c.bf16 %v1089_v59, %v1089_v59  ;;  %v1346_v27 = vpack.c.bf16 %v1114_v60, %v1114_v60  ;;  %v1333_v59 = vpack.c.bf16 %v1321_v36, %v1321_v36  ;;  %v1335_v60 = vpack.c.bf16 %v1323_v37, %v1323_v37 }
 0x1f0   : > { %v1324_v36 = vmul.f32 0.35355338, %v3890_v51 }
 0x1f1   : > { %v1371_v63 = vunpack.c.l.b16 %v1345_v61  ;;  %v1416_v38 = vunpack.c.l.b16 %v1346_v27  ;;  %v1363_v8 = vunpack.c.l.b16 %v1333_v59  ;;  %v1409_v12 = vunpack.c.l.b16 %v1335_v60 }
 0x1f3   : > { %v1373_v1 = vpack.c.b16 %v1371_v63, %v1371_v63  ;;  %v1334_v63 = vpack.c.bf16 %v1322_v47, %v1322_v47  ;;  %v1365_v20 = vpack.c.b16 %v1363_v8, %v1363_v8  ;;  %v1327_v47 = vmul.f32 0.35355338, %v3892_v53 }
 0x1f5   : > { %v3896_v3 = vpop.f32.mrf.mxu2  ;;  %v3898_v4 = vpop.f32.mrf.mxu3  ;;  %v1385_v5 = vsel %vm1374_vm12, %v1373_v1, 0  ;;  %v1408_v49 = vunpack.c.l.b16 %v1334_v63  ;;  %v1339_v59 = vpack.c.bf16 %v1327_v47, %v1327_v47 }
 0x1f6   : > { %v1091_v6 = vpop.f32.mrf.mxu0  ;;  %v1116_v7 = vpop.f32.mrf.mxu1  ;;  %1393 = vmatpush.bf16.xpose.msrb.mxu0 %v1385_v5  ;;  %v1349_v55 = vpack.c.bf16 %v3896_v3, %v3896_v3  ;;  %v1352_v56 = vpack.c.bf16 %v3898_v4, %v3898_v4  ;;  %v1329_v3 = vmul.f32 0.35355338, %v3888_v50 }
 0x1f7   : > { %v1347_v23 = vpack.c.bf16 %v1116_v7, %v1116_v7  ;;  %v1411_v45 = vpack.c.b16 %v1409_v12, %v1408_v49  ;;  %v1456_v53 = vunpack.c.l.b16 %v1339_v59 }
 0x1f8   : > { %v1462_v4 = vunpack.c.l.b16 %v1349_v55  ;;  %v1508_v5 = vunpack.c.l.b16 %v1352_v56  ;;  %v1341_v50 = vpack.c.bf16 %v1329_v3, %v1329_v3 }
 0x1f9   : > { %v1417_v29 = vunpack.c.l.b16 %v1347_v23  ;;  %v1458_v12 = vpack.c.b16 %v1456_v53, %v1456_v53 }
 0x1fb   : > { %v1419_v52 = vpack.c.b16 %v1417_v29, %v1416_v38 }
 0x1fd   : > { %v1146_v14 = vpop.f32.mrf.mxu2  ;;  %v1176_v16 = vpop.f32.mrf.mxu3  ;;  %v1428_v1 = vsel %vm1374_vm12, %v1419_v52, 0  ;;  %v1330_v52 = vmul.f32 0.35355338, %v3894_v54 }
 0x1fe   : > { %v1119_v18 = vpop.f32.mrf.mxu1  ;;  %v3902_v19 = vpop.f32.mrf.mxu0  ;;  %1394 = vmatpush.bf16.xpose.msrb.mxu0 %v1382_v17  ;;  %v1350_v39 = vpack.c.bf16 %v1146_v14, %v1146_v14  ;;  %v1353_v40 = vpack.c.bf16 %v1176_v16, %v1176_v16 }
 0x1ff   : > { %v1348_v21 = vpack.c.bf16 %v1119_v18, %v1119_v18  ;;  %v1338_v18 = vpack.c.bf16 %v1326_v2, %v1326_v2  ;;  %v1688_v22 = vpack.c.bf16 %v3902_v19, %v3902_v19  ;;  %v1342_v60 = vpack.c.bf16 %v1330_v52, %v1330_v52 }
 0x200   : > { %v1463_v41 = vunpack.c.l.b16 %v1350_v39  ;;  %v1509_v48 = vunpack.c.l.b16 %v1353_v40  ;;  %v1336_v40 = vpack.c.bf16 %v1324_v36, %v1324_v36 }
 0x201   : > { %v1418_v24 = vunpack.c.l.b16 %v1348_v21  ;;  %v1337_v21 = vpack.c.bf16 %v1325_v9, %v1325_v9 }
 0x202   : > { %v1511_v13 = vpack.c.b16 %v1509_v48, %v1508_v5  ;;  %v1465_v14 = vpack.c.b16 %v1463_v41, %v1462_v4 }
 0x203   : > { %v1420_v28 = vpack.c.b16 %v1418_v24, %v1418_v24  ;;  %v1340_v24 = vpack.c.bf16 %v1328_v11, %v1328_v11 }
 0x204   : > { %v1520_v46 = vsel %vm1374_vm12, %v1511_v13, 0 }
 0x205   : > { %v1149_v30 = vpop.f32.mrf.mxu2  ;;  %v1179_v31 = vpop.f32.mrf.mxu3  ;;  %3234 = vmatmul.msk.bf16.vlgmr.msrb.gmra.mxu0 %vm1374_vm12, %v1364_v25  ;;  %v1431_v32 = vsel %vm1374_vm12, %v1420_v28, 0  ;;  %v1474_v25 = vsel %vm1374_vm12, %v1465_v14, 0 }
 0x206   : > { %v1351_v33 = vpack.c.bf16 %v1149_v30, %v1149_v30  ;;  %v1354_v26 = vpack.c.bf16 %v1179_v31, %v1179_v31  ;;  %v1121_v34 = vpop.f32.mrf.mxu1  ;;  %v1222_v35 = vpop.f32.mrf.mxu0  ;;  %1439 = vmatpush.bf16.xpose.msrb.mxu1 %v1431_v32  ;;  %v1455_v31 = vunpack.c.l.b16 %v1338_v18  ;;  %v1501_v32 = vunpack.c.l.b16 %v1341_v50 }
 0x207   : > { %v1689_v16 = vpack.c.bf16 %v1222_v35, %v1222_v35  ;;  %v1454_v34 = vunpack.c.l.b16 %v1337_v21  ;;  %v1500_v35 = vunpack.c.l.b16 %v1340_v24 }
 0x208   : > { %v1464_v42 = vunpack.c.l.b16 %v1351_v33  ;;  %v1510_v43 = vunpack.c.l.b16 %v1354_v26  ;;  %v1711_v26 = vunpack.c.l.b16 %v1688_v22 }
 0x209   : > { %v1712_v27 = vunpack.c.l.b16 %v1689_v16  ;;  %v1457_v38 = vpack.c.b16 %v1455_v31, %v1454_v34  ;;  %v1503_v39 = vpack.c.b16 %v1501_v32, %v1500_v35  ;;  %v1355_v31 = vld [vmem:[%s4413_s16] sm:$0xff] }
 0x20a   : > { %v1466_v57 = vpack.c.b16 %v1464_v42, %v1464_v42  ;;  %v1512_v58 = vpack.c.b16 %v1510_v43, %v1510_v43 }
 0x20b   : > { %v1714_v37 = vpack.c.b16 %v1712_v27, %v1711_v26 }
 0x20c   : > { %v1477_v61 = vsel %vm1374_vm12, %v1466_v57, 0  ;;  %v1523_v62 = vsel %vm1374_vm12, %v1512_v58, 0  ;;  %v1410_v57 = vunpack.c.l.b16 %v1336_v40 }
 0x20d   : > { %v1151_v0 = vpop.f32.mrf.mxu2  ;;  %v1181_v44 = vpop.f32.mrf.mxu3  ;;  %1485 = vmatpush.bf16.xpose.msrb.mxu2 %v1477_v61  ;;  %1531 = vmatpush.bf16.xpose.msra.mxu3 %v1523_v62 }
 0x20e   : > { %v1225_v6 = vpop.f32.mrf.mxu0  ;;  %v3916_v7 = vpop.f32.mrf.mxu1  ;;  %1440 = vmatpush.bf16.xpose.msrb.mxu1 %v1428_v1  ;;  %v1412_v61 = vpack.c.b16 %v1410_v57, %v1410_v57  ;;  %v1502_v1 = vunpack.c.l.b16 %v1342_v60 }
 0x20f   : > { %v1690_v10 = vpack.c.bf16 %v1225_v6, %v1225_v6  ;;  %v1691_v41 = vpack.c.bf16 %v3916_v7, %v3916_v7 }
 0x210   : > { %v1504_v13 = vpack.c.b16 %v1502_v1, %v1502_v1 }
 0x211   : > { %v1713_v17 = vunpack.c.l.b16 %v1690_v10  ;;  %v1756_v4 = vunpack.c.l.b16 %v1691_v41 }
 0x213   : > { %v1715_v23 = vpack.c.b16 %v1713_v17, %v1713_v17 }
 0x215   : > { %v3924_v28 = vpop.f32.mrf.mxu2  ;;  %v3926_v29 = vpop.f32.mrf.mxu3  ;;  %1486 = vmatpush.bf16.xpose.msrb.mxu2 %v1474_v25  ;;  %1532 = vmatpush.bf16.xpose.msra.mxu3 %v1520_v46  ;;  %v1725_v30 = vsel %vm1723_vm13, %v1715_v23, 0 }
 0x216   : > { %3235 = vmatmul.msk.bf16.gmra.mxu0 %vm1374_vm12, %v1365_v20  ;;  %3236 = vmatmul.msk.bf16.vlgmr.msrb.gmra.mxu1 %vm1374_vm12, %v1411_v45  ;;  %v1227_v19 = vpop.f32.mrf.mxu0  ;;  %v1252_v33 = vpop.f32.mrf.mxu1  ;;  %v1694_v9 = vpack.c.bf16 %v3924_v28, %v3924_v28  ;;  %v1697_v10 = vpack.c.bf16 %v3926_v29, %v3926_v29 }
 0x217   : > { %1733 = vmatpush.bf16.msra.mxu0 %v1725_v30  ;;  %v1692_v58 = vpack.c.bf16 %v1252_v33, %v1252_v33 }
 0x218   : > { %v1800_v20 = vunpack.c.l.b16 %v1694_v9  ;;  %v1844_v21 = vunpack.c.l.b16 %v1697_v10 }
 0x219   : > { %v1757_v62 = vunpack.c.l.b16 %v1692_v58 }
 0x21b   : > { %1734 = vmatpush.bf16.msra.mxu0 %v1714_v37  ;;  %v1759_v11 = vpack.c.b16 %v1757_v62, %v1756_v4  ;;  %v1356_v37 = vld [vmem:[%s4413_s16 + $0x8] sm:$0xff] }
 0x21c   : > { %3238 = vmatmul.msk.bf16.vlgmr.msrb.gmra.mxu2 %vm1374_vm12, %v1457_v38  ;;  %3240 = vmatmul.msk.bf16.vlgmr.msra.gmra.mxu3 %vm1374_vm12, %v1503_v39 }
 0x21d   : > { %v1282_v42 = vpop.f32.mrf.mxu2  ;;  %v1312_v43 = vpop.f32.mrf.mxu3 }
 0x21e   : > { %v1255_v55 = vpop.f32.mrf.mxu1  ;;  %v1695_v5 = vpack.c.bf16 %v1282_v42, %v1282_v42  ;;  %v1698_v6 = vpack.c.bf16 %v1312_v43, %v1312_v43 }
 0x21f   : > { %v1693_v56 = vpack.c.bf16 %v1255_v55, %v1255_v55 }
 0x220   : > { %v1801_v17 = vunpack.c.l.b16 %v1695_v5  ;;  %v1845_v49 = vunpack.c.l.b16 %v1698_v6 }
 0x221   : > { %v1758_v51 = vunpack.c.l.b16 %v1693_v56 }
 0x222   : > { %v1803_v24 = vpack.c.b16 %v1801_v17, %v1800_v20  ;;  %v1847_v45 = vpack.c.b16 %v1845_v49, %v1844_v21 }
 0x223   : > { %v1760_v48 = vpack.c.b16 %v1758_v51, %v1758_v51  ;;  %v1357_v51 = vld [vmem:[%s4413_s16 + $0x10] sm:$0xff] }
 0x225   : > { %v1285_v63 = vpop.f32.mrf.mxu2  ;;  %v1315_v0 = vpop.f32.mrf.mxu3  ;;  %v1769_v44 = vsel %vm1723_vm13, %v1760_v48, 0 }
 0x226   : > { %v1696_v54 = vpack.c.bf16 %v1285_v63, %v1285_v63  ;;  %v1699_v2 = vpack.c.bf16 %v1315_v0, %v1315_v0  ;;  %3237 = vmatmul.msk.bf16.gmra.mxu1 %vm1374_vm12, %v1412_v61  ;;  %v1257_v3 = vpop.f32.mrf.mxu1 }
 0x227   : > { %1777 = vmatpush.bf16.msra.mxu1 %v1769_v44 }
 0x228   : > { %v1802_v8 = vunpack.c.l.b16 %v1696_v54  ;;  %v1846_v7 = vunpack.c.l.b16 %v1699_v2 }
 0x22a   : > { %v1804_v14 = vpack.c.b16 %v1802_v8, %v1802_v8  ;;  %v1848_v16 = vpack.c.b16 %v1846_v7, %v1846_v7 }
 0x22b   : > { %1778 = vmatpush.bf16.msra.mxu1 %v1759_v11 }
 0x22c   : > { %3239 = vmatmul.msk.bf16.gmra.mxu2 %vm1374_vm12, %v1458_v12  ;;  %3241 = vmatmul.msk.bf16.gmra.mxu3 %vm1374_vm12, %v1504_v13  ;;  %v1813_v18 = vsel %vm1723_vm13, %v1804_v14, 0  ;;  %v1857_v50 = vsel %vm1723_vm13, %v1848_v16, 0 }
 0x22d   : > { %v1287_v22 = vpop.f32.mrf.mxu2  ;;  %v1317_v23 = vpop.f32.mrf.mxu3  ;;  %1821 = vmatpush.bf16.msra.mxu2 %v1813_v18  ;;  %1865 = vmatpush.bf16.msrb.mxu3 %v1857_v50 }
 0x231   : > { %1822 = vmatpush.bf16.msra.mxu2 %v1803_v24  ;;  %1866 = vmatpush.bf16.msrb.mxu3 %v1847_v45 }
 0x282   : > { %v1396_v25 = vpop.f32.mrf.mxu0 }
 0x283   : > { %v1397_v57 = vadd.f32 %v1396_v25, %v1355_v31 }
 0x285   : > { %v1544_v62 = vsel %vm1543_vm14, %v1397_v57, -inf }
 0x28a   : > { %v1398_v46 = vpop.f32.mrf.mxu0 }
 0x28b   : > { %v1399_v38 = vadd.f32 %v1398_v46, %v1356_v37 }
 0x28d   : > { %v1547_v56 = vsel %vm1543_vm14, %v1399_v38, -inf }
 0x293   : > { %v1401_v27 = vpop.f32.mrf.mxu0  ;;  %v1442_v28 = vpop.f32.mrf.mxu1 }
 0x294   : > { %v1443_v58 = vadd.f32 %v1442_v28, %v1355_v31  ;;  %v3977_v4 = vadd.f32 %v1401_v27, %v1357_v51 }
 0x296   : > { %v1553_v48 = vsel %vm1543_vm14, %v1443_v58, -inf  ;;  %v1550_v5 = vsel %vm1543_vm14, %v3977_v4, -inf }
 0x29b   : > { %v1403_v29 = vpop.f32.mrf.mxu0  ;;  %v1444_v30 = vpop.f32.mrf.mxu1 }
 0x29c   : > { %v3965_v63 = vadd.f32 %v1444_v30, %v1356_v37 }
 0x29e   : > { %v1556_v2 = vsel %vm1543_vm14, %v3965_v63, -inf }
 0x29f   : > { %v1488_v32 = vpop.f32.mrf.mxu2  ;;  %v1534_v19 = vpop.f32.mrf.mxu3 }
 0x2a0   : > { %v1489_v33 = vadd.f32 %v1488_v32, %v1355_v31  ;;  %v1535_v26 = vadd.f32 %v1534_v19, %v1355_v31 }
 0x2a2   : > { %v1571_v34 = vsel %vm1543_vm14, %v1535_v26, -inf  ;;  %v1562_v35 = vsel %vm1543_vm14, %v1489_v33, -inf }
 0x2a3   : > { %1572 = vmax.xlane.f32.xlu2 %v1571_v34  ;;  %1563 = vmax.xlane.f32.xlu0 %v1562_v35  ;;  %v1447_v36 = vpop.f32.mrf.mxu1 }
 0x2a4   : > { %v3969_v44 = vadd.f32 %v1447_v36, %v1357_v51 }
 0x2a6   : > { %v1559_v3 = vsel %vm1543_vm14, %v3969_v44, -inf }
 0x2a7   : > { %v1490_v39 = vpop.f32.mrf.mxu2  ;;  %v1536_v40 = vpop.f32.mrf.mxu3 }
 0x2a8   : > { %v1491_v42 = vadd.f32 %v1490_v39, %v1356_v37  ;;  %v1537_v43 = vadd.f32 %v1536_v40, %v1356_v37 }
 0x2aa   : > { %v1565_v47 = vsel %vm1543_vm14, %v1491_v42, -inf  ;;  %v1574_v52 = vsel %vm1543_vm14, %v1537_v43, -inf }
 0x2ab   : > { %1566 = vmax.xlane.f32.xlu1 %v1565_v47  ;;  %1575 = vmax.xlane.f32.xlu0 %v1574_v52  ;;  %v1449_v55 = vpop.f32.mrf.mxu1 }
 0x2ac   : > { %1548 = vmax.xlane.f32.xlu2 %v1547_v56 }
 0x2af   : > { %v1493_v59 = vpop.f32.mrf.mxu2  ;;  %v1539_v60 = vpop.f32.mrf.mxu3 }
 0x2b0   : > { %v1494_v41 = vadd.f32 %v1493_v59, %v1357_v51  ;;  %v3967_v0 = vadd.f32 %v1539_v60, %v1357_v51 }
 0x2b2   : > { %v1568_v61 = vsel %vm1543_vm14, %v1494_v41, -inf  ;;  %v1577_v54 = vsel %vm1543_vm14, %v3967_v0, -inf }
 0x2b3   : > { %1554 = vmax.xlane.f32.xlu0 %v1553_v48  ;;  %1545 = vmax.xlane.f32.xlu1 %v1544_v62 }
 0x2b4   : > { %1569 = vmax.xlane.f32.xlu2 %v1568_v61 }
 0x2b7   : > { %v1495_v53 = vpop.f32.mrf.mxu2  ;;  %v1541_v1 = vpop.f32.mrf.mxu3 }
 0x2bb   : > { %1578 = vmax.xlane.f32.xlu0 %v1577_v54  ;;  %1557 = vmax.xlane.f32.xlu1 %v1556_v2 }
 0x2bc   : > { %1560 = vmax.xlane.f32.xlu2 %v1559_v3 }
 0x2c3   : > { %1551 = vmax.xlane.f32.xlu1 %v1550_v5 }
 0x316   : > { %v1573_v6 = vpop.xlane.xlu2 %1572  ;;  %v1564_v8 = vpop.xlane.xlu0 %1563 }
 0x317   : > { %v1589_v7 = vsub.f32 %v1535_v26, %v1573_v6  ;;  %v1586_v9 = vsub.f32 %v1489_v33, %v1564_v8 }
 0x319   : > { %v1610_v10 = vmul.f32 1.442695, %v1589_v7  ;;  %v1604_v11 = vmul.f32 1.442695, %v1586_v9 }
 0x31b   : > { %3479 = vpow2.f32 %v1610_v10 }
 0x31c   : > { %3481 = vpow2.f32 %v1604_v11 }
 0x31e   : > { %v1567_v12 = vpop.xlane.xlu1 %1566  ;;  %v1576_v13 = vpop.xlane.xlu0 %1575 }
 0x31f   : > { %v1587_v14 = vsub.f32 %v1491_v42, %v1567_v12  ;;  %v1590_v16 = vsub.f32 %v1537_v43, %v1576_v13  ;;  %v1549_v17 = vpop.xlane.xlu2 %1548 }
 0x320   : > { %v1581_v49 = vsub.f32 %v1399_v38, %v1549_v17 }
 0x321   : > { %v3981_v18 = vpop.eup %3479  ;;  %v1606_v50 = vmul.f32 1.442695, %v1587_v14  ;;  %v1612_v20 = vmul.f32 1.442695, %v1590_v16 }
 0x322   : > { %v3983_v21 = vpop.eup %3481  ;;  %v1594_v22 = vmul.f32 1.442695, %v1581_v49  ;;  %v1643_v23 = vsel %vm1543_vm14, %v3981_v18, 0.0 }
 0x323   : > { %3483 = vpow2.f32 %v1606_v50  ;;  %v1634_v24 = vsel %vm1543_vm14, %v3983_v21, 0.0  ;;  %1644 = vadd.xlane.f32.xlu2 %v1643_v23 }
 0x324   : > { %3485 = vpow2.f32 %v1612_v20  ;;  %1635 = vadd.xlane.f32.xlu0 %v1634_v24 }
 0x325   : > { %3487 = vpow2.f32 %v1594_v22 }
 0x326   : > { %v1555_v45 = vpop.xlane.xlu0 %1554  ;;  %v1546_v25 = vpop.xlane.xlu1 %1545 }
 0x327   : > { %v1583_v46 = vsub.f32 %v1443_v58, %v1555_v45  ;;  %v1570_v27 = vpop.xlane.xlu2 %1569  ;;  %v1580_v28 = vsub.f32 %v1397_v57, %v1546_v25 }
 0x328   : > { %v1588_v29 = vsub.f32 %v1494_v41, %v1570_v27 }
 0x329   : > { %v3989_v30 = vpop.eup %3483  ;;  %v1598_v31 = vmul.f32 1.442695, %v1583_v46  ;;  %v1592_v32 = vmul.f32 1.442695, %v1580_v28 }
 0x32a   : > { %v3991_v19 = vpop.eup %3485  ;;  %v1608_v33 = vmul.f32 1.442695, %v1588_v29  ;;  %v1637_v26 = vsel %vm1543_vm14, %v3989_v30, 0.0 }
 0x32b   : > { %v3995_v34 = vpop.eup %3487  ;;  %3489 = vpow2.f32 %v1598_v31  ;;  %v1646_v35 = vsel %vm1543_vm14, %v3991_v19, 0.0  ;;  %1638 = vadd.xlane.f32.xlu1 %v1637_v26 }
 0x32c   : > { %3491 = vpow2.f32 %v1608_v33  ;;  %1647 = vadd.xlane.f32.xlu0 %v1646_v35  ;;  %v1619_v36 = vsel %vm1543_vm14, %v3995_v34, 0.0 }
 0x32d   : > { %3493 = vpow2.f32 %v1592_v32  ;;  %1620 = vadd.xlane.f32.xlu2 %v1619_v36 }
 0x32e   : > { %v1579_v37 = vpop.xlane.xlu0 %1578  ;;  %v1558_v38 = vpop.xlane.xlu1 %1557 }
 0x32f   : > { %v1591_v39 = vsub.f32 %v3967_v0, %v1579_v37  ;;  %v1561_v40 = vpop.xlane.xlu2 %1560  ;;  %v1584_v42 = vsub.f32 %v3965_v63, %v1558_v38 }
 0x330   : > { %v1585_v43 = vsub.f32 %v3969_v44, %v1561_v40 }
 0x331   : > { %v4004_v47 = vpop.eup %3489  ;;  %v1614_v52 = vmul.f32 1.442695, %v1591_v39  ;;  %v1600_v55 = vmul.f32 1.442695, %v1584_v42 }
 0x332   : > { %v4006_v56 = vpop.eup %3491  ;;  %v1602_v57 = vmul.f32 1.442695, %v1585_v43  ;;  %v1625_v58 = vsel %vm1543_vm14, %v4004_v47, 0.0 }
 0x333   : > { %v4010_v51 = vpop.eup %3493  ;;  %3495 = vpow2.f32 %v1614_v52  ;;  %v1640_v59 = vsel %vm1543_vm14, %v4006_v56, 0.0 }
 0x334   : > { %3497 = vpow2.f32 %v1602_v57  ;;  %1626 = vadd.xlane.f32.xlu0 %v1625_v58  ;;  %v1616_v60 = vsel %vm1543_vm14, %v4010_v51, 0.0 }
 0x335   : > { %3499 = vpow2.f32 %v1600_v55  ;;  %1641 = vadd.xlane.f32.xlu2 %v1640_v59  ;;  %1617 = vadd.xlane.f32.xlu1 %v1616_v60 }
 0x336   : > { %v1552_v41 = vpop.xlane.xlu1 %1551 }
 0x337   : > { %v1582_v48 = vsub.f32 %v3977_v4, %v1552_v41 }
 0x339   : > { %v4017_v61 = vpop.eup %3495  ;;  %v1596_v62 = vmul.f32 1.442695, %v1582_v48 }
 0x33a   : > { %v4019_v63 = vpop.eup %3497  ;;  %v1649_v0 = vsel %vm1543_vm14, %v4017_v61, 0.0 }
 0x33b   : > { %v4023_v44 = vpop.eup %3499  ;;  %3501 = vpow2.f32 %v1596_v62  ;;  %v1631_v53 = vsel %vm1543_vm14, %v4019_v63, 0.0 }
 0x33c   : > { %1650 = vadd.xlane.f32.xlu0 %v1649_v0  ;;  %v1628_v1 = vsel %vm1543_vm14, %v4023_v44, 0.0 }
 0x33d   : > { %1632 = vadd.xlane.f32.xlu2 %v1631_v53  ;;  %1629 = vadd.xlane.f32.xlu1 %v1628_v1 }
 0x341   : > { %v4029_v54 = vpop.eup %3501 }
 0x342   : > { %v1622_v2 = vsel %vm1543_vm14, %v4029_v54, 0.0 }
 0x345   : > { %1623 = vadd.xlane.f32.xlu1 %v1622_v2 }
 0x396   : > { %v1645_v3 = vpop.xlane.xlu2 %1644 }
 0x397   : > { %v1636_v4 = vpop.xlane.xlu0 %1635 }
 0x398   : > { %3503 = vrcp.f32 %v1636_v4 }
 0x399   : > { %3505 = vrcp.f32 %v1645_v3 }
 0x39e   : > { %v1639_v5 = vpop.xlane.xlu1 %1638  ;;  %v3504_v6 = vpop.eup %3503 }
 0x39f   : > { %v1648_v8 = vpop.xlane.xlu0 %1647  ;;  %3507 = vrcp.f32 %v1639_v5  ;;  %v3506_v7 = vpop.eup %3505  ;;  %v1670_v10 = vmul.f32 %v3504_v6, %v3983_v21 }
 0x3a0   : > { %3509 = vrcp.f32 %v1648_v8  ;;  %v1621_v9 = vpop.xlane.xlu2 %1620  ;;  %v1673_v11 = vmul.f32 %v3506_v7, %v3981_v18 }
 0x3a1   : > { %3511 = vrcp.f32 %v1621_v9  ;;  %v1682_v14 = vpack.c.bf16 %v1670_v10, %v1670_v10  ;;  %v1891_v10 = vld [vmem:[%s3733_s24 + $0x8] sm:$0xf] }
 0x3a2   : > { %v1685_v17 = vpack.c.bf16 %v1673_v11, %v1673_v11  ;;  %v1978_v11 = vsel %vm1723_vm13, %v1891_v10, 0 }
 0x3a3   : > { %v1792_v25 = vunpack.c.l.b16 %v1682_v14  ;;  %1987 = vmatpush.bf16.msrb.mxu2 %v1978_v11  ;;  %v1890_v14 = vld [vmem:[%s3733_s24 + $0x4] sm:$0xf] }
 0x3a4   : > { %v1836_v18 = vunpack.c.l.b16 %v1685_v17 }
 0x3a5   : > { %v3508_v12 = vpop.eup %3507 }
 0x3a6   : > { %v3510_v13 = vpop.eup %3509  ;;  %v1671_v16 = vmul.f32 %v3508_v12, %v3989_v30 }
 0x3a7   : > { %v1674_v49 = vmul.f32 %v3510_v13, %v3991_v19  ;;  %v1627_v50 = vpop.xlane.xlu0 %1626  ;;  %v3512_v45 = vpop.eup %3511  ;;  %v1889_v13 = vld [vmem:[%s3733_s24] sm:$0xf] }
 0x3a8   : > { %v1683_v20 = vpack.c.bf16 %v1671_v16, %v1671_v16  ;;  %v1642_v22 = vpop.xlane.xlu2 %1641  ;;  %v1618_v23 = vpop.xlane.xlu1 %1617  ;;  %v1665_v29 = vmul.f32 %v3512_v45, %v3995_v34  ;;  %v1943_v16 = vsel %vm1723_vm13, %v1890_v14, 0 }
 0x3a9   : > { %v1686_v24 = vpack.c.bf16 %v1674_v49, %v1674_v49  ;;  %3513 = vrcp.f32 %v1642_v22  ;;  %1952 = vmatpush.bf16.msrb.mxu1 %v1943_v16 }
 0x3aa   : > { %v1793_v21 = vunpack.c.l.b16 %v1683_v20  ;;  %3515 = vrcp.f32 %v1618_v23  ;;  %v1677_v26 = vpack.c.bf16 %v1665_v29, %v1665_v29 }
 0x3ab   : > { %v1837_v46 = vunpack.c.l.b16 %v1686_v24  ;;  %3517 = vrcp.f32 %v1627_v50 }
 0x3ac   : > { %v1795_v27 = vpack.c.b16 %v1793_v21, %v1792_v25  ;;  %v1704_v39 = vunpack.c.l.b16 %v1677_v26 }
 0x3ad   : > { %v1839_v28 = vpack.c.b16 %v1837_v46, %v1836_v18 }
 0x3ae   : > { %3246 = vmatmul.msk.bf16.vlgmr.msra.gmra.mxu2 %vm1543_vm14, %v1795_v27 }
 0x3af   : > { %v3514_v30 = vpop.eup %3513  ;;  %v1651_v31 = vpop.xlane.xlu0 %1650  ;;  %3248 = vmatmul.msk.bf16.vlgmr.msrb.gmra.mxu3 %vm1543_vm14, %v1839_v28 }
 0x3b0   : > { %v3516_v32 = vpop.eup %3515  ;;  %3519 = vrcp.f32 %v1651_v31  ;;  %v1630_v19 = vpop.xlane.xlu1 %1629  ;;  %v1672_v33 = vmul.f32 %v3514_v30, %v4006_v56 }
 0x3b1   : > { %v1664_v35 = vmul.f32 %v3516_v32, %v4010_v51  ;;  %v3518_v36 = vpop.eup %3517  ;;  %3521 = vrcp.f32 %v1630_v19  ;;  %v1633_v52 = vpop.xlane.xlu2 %1632 }
 0x3b2   : > { %v1684_v38 = vpack.c.bf16 %v1672_v33, %v1672_v33  ;;  %v1667_v34 = vmul.f32 %v3518_v36, %v4004_v47 }
 0x3b3   : > { %v1676_v37 = vpack.c.bf16 %v1664_v35, %v1664_v35 }
 0x3b4   : > { %v1794_v59 = vunpack.c.l.b16 %v1684_v38  ;;  %v1679_v56 = vpack.c.bf16 %v1667_v34, %v1667_v34 }
 0x3b5   : > { %v1703_v40 = vunpack.c.l.b16 %v1676_v37 }
 0x3b6   : > { %v3520_v42 = vpop.eup %3519  ;;  %v1796_v47 = vpack.c.b16 %v1794_v59, %v1794_v59  ;;  %v1748_v62 = vunpack.c.l.b16 %v1679_v56 }
 0x3b7   : > { %v1706_v43 = vpack.c.b16 %v1704_v39, %v1703_v40  ;;  %v1675_v55 = vmul.f32 %v3520_v42, %v4017_v61  ;;  %v3522_v57 = vpop.eup %3521 }
 0x3b8   : > { %v1624_v58 = vpop.xlane.xlu1 %1623  ;;  %v1668_v60 = vmul.f32 %v3522_v57, %v4023_v44 }
 0x3b9   : > { %3242 = vmatmul.msk.bf16.vlgmr.msra.gmra.mxu0 %vm1543_vm14, %v1706_v43  ;;  %3523 = vrcp.f32 %v1624_v58  ;;  %v1687_v51 = vpack.c.bf16 %v1675_v55, %v1675_v55 }
 0x3ba   : > { %3525 = vrcp.f32 %v1633_v52  ;;  %v1680_v41 = vpack.c.bf16 %v1668_v60, %v1668_v60 }
 0x3bb   : > { %v1838_v48 = vunpack.c.l.b16 %v1687_v51 }
 0x3bc   : > { %v1749_v0 = vunpack.c.l.b16 %v1680_v41 }
 0x3bd   : > { %v1840_v53 = vpack.c.b16 %v1838_v48, %v1838_v48 }
 0x3be   : > { %3247 = vmatmul.msk.bf16.gmra.mxu2 %vm1543_vm14, %v1796_v47  ;;  %v1751_v1 = vpack.c.b16 %v1749_v0, %v1748_v62 }
 0x3bf   : > { %v3524_v61 = vpop.eup %3523  ;;  %3249 = vmatmul.msk.bf16.gmra.mxu3 %vm1543_vm14, %v1840_v53 }
 0x3c0   : > { %v3526_v44 = vpop.eup %3525  ;;  %v1666_v2 = vmul.f32 %v3524_v61, %v4029_v54  ;;  %3244 = vmatmul.msk.bf16.vlgmr.msra.gmra.mxu1 %vm1543_vm14, %v1751_v1  ;;  %v1892_v54 = vld [vmem:[%s3733_s24 + $0xc] sm:$0xf]  ;;  %s4419_s24 = sld [smem:[#allocation13_spill]] (!%p3378_p5) }
 0x3c1   : > { %v1669_v4 = vmul.f32 %v3526_v44, %v4019_v63  ;;  %v2013_v12 = vsel %vm1723_vm13, %v1892_v54, 0  ;;  %v1908_v63 = vsel %vm1723_vm13, %v1889_v13, 0 }
 0x3c2   : > { %v1678_v3 = vpack.c.bf16 %v1666_v2, %v1666_v2  ;;  %2022 = vmatpush.bf16.msra.mxu3 %v2013_v12  ;;  %1917 = vmatpush.bf16.msrb.mxu0 %v1908_v63 }
 0x3c3   : > { %v1681_v8 = vpack.c.bf16 %v1669_v4, %v1669_v4 }
 0x3c4   : > { %v1705_v5 = vunpack.c.l.b16 %v1678_v3 }
 0x3c5   : > { %v1750_v7 = vunpack.c.l.b16 %v1681_v8 }
 0x3c6   : > { %v1707_v6 = vpack.c.b16 %v1705_v5, %v1705_v5 }
 0x3c7   : > { %v1752_v9 = vpack.c.b16 %v1750_v7, %v1750_v7 }
 0x3c9   : > { %3243 = vmatmul.msk.bf16.gmra.mxu0 %vm1543_vm14, %v1707_v6 }
 0x3d0   : > { %3245 = vmatmul.msk.bf16.gmra.mxu1 %vm1543_vm14, %v1752_v9 }
 0x431   : > { %v1824_v17 = vpop.f32.mrf.mxu2 }
 0x432   : > { %v1868_v49 = vpop.f32.mrf.mxu3  ;;  %v1883_v20 = vpack.c.bf16 %v1824_v17, %v1824_v17 }
 0x433   : > { %v1886_v22 = vpack.c.bf16 %v1868_v49, %v1868_v49  ;;  %v3569_v49 = vld [vmem:[#allocation2] sm:$0xff] }
 0x434   : > { %v1966_v21 = vunpack.c.l.b16 %v1883_v20 }
 0x435   : > { %v2001_v46 = vunpack.c.l.b16 %v1886_v22 }
 0x436   : > { %v1736_v50 = vpop.f32.mrf.mxu0 }
 0x437   : > { %v1877_v27 = vpack.c.bf16 %v1736_v50, %v1736_v50 }
 0x439   : > { %v1826_v23 = vpop.f32.mrf.mxu2  ;;  %v1896_v33 = vunpack.c.l.b16 %v1877_v27 }
 0x43a   : > { %v1884_v24 = vpack.c.bf16 %v1826_v23, %v1826_v23  ;;  %v1870_v45 = vpop.f32.mrf.mxu3 }
 0x43b   : > { %v1887_v25 = vpack.c.bf16 %v1870_v45, %v1870_v45 }
 0x43c   : > { %v1967_v18 = vunpack.c.l.b16 %v1884_v24 }
 0x43d   : > { %v2002_v28 = vunpack.c.l.b16 %v1887_v25  ;;  %v1780_v31 = vpop.f32.mrf.mxu1 }
 0x43e   : > { %v1969_v29 = vpack.c.b16 %v1967_v18, %v1966_v21  ;;  %v1738_v30 = vpop.f32.mrf.mxu0  ;;  %v1880_v38 = vpack.c.bf16 %v1780_v31, %v1780_v31 }
 0x43f   : > { %v2004_v32 = vpack.c.b16 %v2002_v28, %v2001_v46  ;;  %v1878_v19 = vpack.c.bf16 %v1738_v30, %v1738_v30  ;;  %v3570_v30 = vld [vmem:[#allocation2 + $0x8] sm:$0xff] }
 0x440   : > { %3254 = vmatmul.msk.bf16.vlgmr.msrb.gmra.mxu2 %vm1374_vm12, %v1969_v29  ;;  %v1931_v52 = vunpack.c.l.b16 %v1880_v38 }
 0x441   : > { %v1897_v26 = vunpack.c.l.b16 %v1878_v19  ;;  %3256 = vmatmul.msk.bf16.vlgmr.msra.gmra.mxu3 %vm1374_vm12, %v2004_v32  ;;  %v1829_v35 = vpop.f32.mrf.mxu2 }
 0x442   : > { %v1873_v36 = vpop.f32.mrf.mxu3  ;;  %v1885_v39 = vpack.c.bf16 %v1829_v35, %v1829_v35 }
 0x443   : > { %v1899_v37 = vpack.c.b16 %v1897_v26, %v1896_v33  ;;  %v1888_v42 = vpack.c.bf16 %v1873_v36, %v1873_v36 }
 0x444   : > { %v1968_v58 = vunpack.c.l.b16 %v1885_v39 }
 0x445   : > { %3250 = vmatmul.msk.bf16.vlgmr.msrb.gmra.mxu0 %vm1374_vm12, %v1899_v37  ;;  %v1782_v40 = vpop.f32.mrf.mxu1  ;;  %v2003_v56 = vunpack.c.l.b16 %v1888_v42  ;;  %v3571_v42 = vld [vmem:[#allocation2 + $0x10] sm:$0xff] }
 0x446   : > { %v1741_v34 = vpop.f32.mrf.mxu0  ;;  %v1881_v43 = vpack.c.bf16 %v1782_v40, %v1782_v40  ;;  %v1970_v41 = vpack.c.b16 %v1968_v58, %v1968_v58 }
 0x447   : > { %v1879_v60 = vpack.c.bf16 %v1741_v34, %v1741_v34  ;;  %v2005_v62 = vpack.c.b16 %v2003_v56, %v2003_v56 }
 0x448   : > { %v1932_v55 = vunpack.c.l.b16 %v1881_v43 }
 0x449   : > { %v1831_v57 = vpop.f32.mrf.mxu2  ;;  %v1898_v0 = vunpack.c.l.b16 %v1879_v60 }
 0x44a   : > { %v1875_v59 = vpop.f32.mrf.mxu3  ;;  %v1934_v51 = vpack.c.b16 %v1932_v55, %v1931_v52 }
 0x44b   : > { %v1900_v53 = vpack.c.b16 %v1898_v0, %v1898_v0 }
 0x44c   : > { %3252 = vmatmul.msk.bf16.vlgmr.msrb.gmra.mxu1 %vm1374_vm12, %v1934_v51 }
 0x44d   : > { %v1785_v47 = vpop.f32.mrf.mxu1 }
 0x44e   : > { %v1743_v48 = vpop.f32.mrf.mxu0  ;;  %v1882_v61 = vpack.c.bf16 %v1785_v47, %v1785_v47 }
 0x450   : > { %3255 = vmatmul.msk.bf16.gmra.mxu2 %vm1374_vm12, %v1970_v41  ;;  %v1933_v44 = vunpack.c.l.b16 %v1882_v61 }
 0x451   : > { %3257 = vmatmul.msk.bf16.gmra.mxu3 %vm1374_vm12, %v2005_v62 }
 0x452   : > { %v1935_v2 = vpack.c.b16 %v1933_v44, %v1933_v44  ;;  %v3286_v44 = vld [vmem:[%s3755_s8 + $0x20] sm:$0xf] }
 0x455   : > { %3251 = vmatmul.msk.bf16.gmra.mxu0 %vm1374_vm12, %v1900_v53  ;;  %v1787_v1 = vpop.f32.mrf.mxu1 }
 0x45c   : > { %3253 = vmatmul.msk.bf16.gmra.mxu1 %vm1374_vm12, %v1935_v2  ;;  %v3430_v2 = vld [vmem:[%s3755_s8 + $0x2c] sm:$0xf0] }
 0x4c2   : > { %v1919_v3 = vpop.f32.mrf.mxu0 }
 0x4c3   : > { %v1989_v4 = vpop.f32.mrf.mxu2  ;;  %v2033_v7 = vsel %vm808_vm1, %v1919_v3, 0.0  ;;  %v3428_v3 = vld [vmem:[%s3755_s8 + $0x24] sm:$0xf] }
 0x4c4   : > { %v2024_v5 = vpop.f32.mrf.mxu3  ;;  %v2036_v12 = vsel %vm808_vm1, %v1989_v4, 0.0  ;;  %v3423_v4 = vld [vmem:[%s3746_s17 + $0x8] sm:$0xff] }
 0x4c5   : > { %v2038_v63 = vsel %vm808_vm1, %v2024_v5, 0.0  ;;  %v3287_v5 = vor.u32 %v3430_v2, %v3286_v44  ;;  %2171 = vmatpush.bf16.msra.mxu0 %v3423_v4 }
 0x4c7   : > { %2372 = vmatpush.bf16.msra.mxu1 %v3287_v5 }
 0x4c9   : > { %v1954_v8 = vpop.f32.mrf.mxu1 }
 0x4ca   : > { %v1921_v6 = vpop.f32.mrf.mxu0  ;;  %v2034_v9 = vsel %vm808_vm1, %v1954_v8, 0.0  ;;  %v3294_v8 = vld [vmem:[%s3755_s8 + $0x28] sm:$0xf] }
 0x4cb   : > { %v1991_v10 = vpop.f32.mrf.mxu2  ;;  %v2035_v11 = vadd.f32 %v2034_v9, %v2033_v7  ;;  %v2040_v20 = vsel %vm808_vm1, %v1921_v6, 0.0  ;;  %v3288_v6 = vld [vmem:[%s3755_s8 + $0x30] sm:$0xf0]  ;;  %v3431_v9 = vld [vmem:[%s3755_s8 + $0x34] sm:$0xf0] }
 0x4cc   : > { %v2026_v54 = vpop.f32.mrf.mxu3  ;;  %v2043_v21 = vsel %vm808_vm1, %v1991_v10, 0.0  ;;  %v3291_v7 = vor.u32 %v3428_v3, %v3288_v6 }
 0x4cd   : > { %v2037_v13 = vadd.f32 %v2036_v12, %v2035_v11  ;;  %v2045_v46 = vsel %vm808_vm1, %v2026_v54, 0.0  ;;  %v3295_v11 = vor.u32 %v3431_v9, %v3294_v8  ;;  %v3270_v12 = vld [vmem:[%s3755_s8] sm:$0xf] }
 0x4ce   : > { %2390 = vmatpush.bf16.msra.mxu2 %v3291_v7 }
 0x4cf   : > { %v2039_v14 = vadd.f32 %v2038_v63, %v2037_v13  ;;  %v3426_v13 = vld [vmem:[%s3755_s8 + $0xc] sm:$0xf0]  ;;  %v3424_v63 = vld [vmem:[%s3755_s8 + $0x4] sm:$0xf]  ;;  %2408 = vmatpush.bf16.msrb.mxu3 %v3295_v11 }
 0x4d1   : > { %v1956_v17 = vpop.f32.mrf.mxu1  ;;  %v4073_v50 = vadd.f32 %v3569_v49, %v2039_v14  ;;  %v3422_v14 = vld [vmem:[%s3746_s17] sm:$0xff]  ;;  %v3278_v49 = vld [vmem:[%s3755_s8 + $0x8] sm:$0xf] }
 0x4d2   : > { %v1924_v16 = vpop.f32.mrf.mxu0  ;;  %v2041_v22 = vsel %vm808_vm1, %v1956_v17, 0.0  ;;  %v3272_v17 = vld [vmem:[%s3755_s8 + $0x10] sm:$0xf0]  ;;  %2172 = vmatpush.bf16.msra.mxu0 %v3422_v14 }
 0x4d3   : > { %v1994_v23 = vpop.f32.mrf.mxu2  ;;  %v2042_v24 = vadd.f32 %v2041_v22, %v2040_v20  ;;  %v2059_v45 = vsel %vm808_vm1, %v4073_v50, 0.0  ;;  %v2047_v32 = vsel %vm808_vm1, %v1924_v16, 0.0  ;;  %v3271_v16 = vor.u32 %v3426_v13, %v3270_v12 }
 0x4d4   : > { %v2029_v25 = vpop.f32.mrf.mxu3  ;;  %2060 = vadd.xlane.f32.xlu0 %v2059_v45  ;;  %v2050_v37 = vsel %vm808_vm1, %v1994_v23, 0.0  ;;  %v3275_v22 = vor.u32 %v3424_v63, %v3272_v17  ;;  %v3427_v23 = vld [vmem:[%s3755_s8 + $0x14] sm:$0xf0] }
 0x4d5   : > { %v2044_v18 = vadd.f32 %v2043_v21, %v2042_v24  ;;  %v2052_v39 = vsel %vm808_vm1, %v2029_v25, 0.0  ;;  %2373 = vmatpush.bf16.msra.mxu1 %v3271_v16  ;;  %v3279_v24 = vor.u32 %v3427_v23, %v3278_v49 }
 0x4d6   : > { %2391 = vmatpush.bf16.msra.mxu2 %v3275_v22 }
 0x4d7   : > { %v2046_v27 = vadd.f32 %v2045_v46, %v2044_v18  ;;  %2409 = vmatpush.bf16.msrb.mxu3 %v3279_v24 }
 0x4d9   : > { %v1959_v29 = vpop.f32.mrf.mxu1  ;;  %v4081_v31 = vadd.f32 %v3570_v30, %v2046_v27 }
 0x4da   : > { %v1926_v28 = vpop.f32.mrf.mxu0  ;;  %v2048_v19 = vsel %vm808_vm1, %v1959_v29, 0.0 }
 0x4db   : > { %v1996_v33 = vpop.f32.mrf.mxu2  ;;  %v2049_v26 = vadd.f32 %v2048_v19, %v2047_v32  ;;  %v2062_v35 = vsel %vm808_vm1, %v4081_v31, 0.0 }
 0x4dc   : > { %v2031_v36 = vpop.f32.mrf.mxu3  ;;  %2063 = vadd.xlane.f32.xlu1 %v2062_v35 }
 0x4dd   : > { %v2051_v38 = vadd.f32 %v2050_v37, %v2049_v26 }
 0x4df   : > { %v2053_v34 = vadd.f32 %v2052_v39, %v2051_v38  ;;  %v3429_v39 = vld [vmem:[%s3755_s8 + $0x2c] sm:$0xf] }
 0x4e1   : > { %v1961_v40 = vpop.f32.mrf.mxu1  ;;  %v4089_v43 = vadd.f32 %v3571_v42, %v2053_v34  ;;  %v3296_v34 = vld [vmem:[%s3755_s8 + $0x38] sm:$0xf0]  ;;  %v3425_v42 = vld [vmem:[%s3755_s8 + $0xc] sm:$0xf] }
 0x4e2   : > { %v3299_v40 = vor.u32 %v3429_v39, %v3296_v34 }
 0x4e3   : > { %v2065_v52 = vsel %vm808_vm1, %v4089_v43, 0.0 }
 0x4e4   : > { %2066 = vadd.xlane.f32.xlu2 %v2065_v52  ;;  %v3280_v52 = vld [vmem:[%s3755_s8 + $0x18] sm:$0xf0]  ;;  %2426 = vmatpush.bf16.msrb.mxu0 %v3299_v40  ;;  %s4420_s8 = sld [smem:[#allocation15_spill]] (!%p3378_p5) }
 0x547   : > { %v2061_v55 = vpop.xlane.xlu0 %2060 }
 0x548   : > { %v2068_v57 = vmul.f32 %v2061_v55, %v3782_v15 }
 0x54a   : > { %v4095_v58 = vsub.f32 %v4073_v50, %v2068_v57 }
 0x54c   : > { %v2074_v59 = vmul.f32 %v4095_v58, %v4095_v58 }
 0x54e   : > { %v2077_v56 = vsel %vm808_vm1, %v2074_v59, 0.0  ;;  %v3468_v59 = vld [vmem:[%s4414_s21] ss:$0 sm:$0xff] }
 0x54f   : > { %2078 = vadd.xlane.f32.xlu0 %v2077_v56  ;;  %v2064_v60 = vpop.xlane.xlu1 %2063 }
 0x550   : > { %v2069_v51 = vmul.f32 %v2064_v60, %v3782_v15  ;;  %v3283_v60 = vor.u32 %v3425_v42, %v3280_v52 }
 0x552   : > { %v4102_v41 = vsub.f32 %v4081_v31, %v2069_v51  ;;  %2427 = vmatpush.bf16.msrb.mxu0 %v3283_v60 }
 0x554   : > { %v2075_v48 = vmul.f32 %v4102_v41, %v4102_v41 }
 0x556   : > { %v2080_v47 = vsel %vm808_vm1, %v2075_v48, 0.0 }
 0x557   : > { %2081 = vadd.xlane.f32.xlu1 %v2080_v47  ;;  %v2067_v62 = vpop.xlane.xlu2 %2066 }
 0x558   : > { %v2070_v0 = vmul.f32 %v2067_v62, %v3782_v15 }
 0x55a   : > { %v4109_v53 = vsub.f32 %v4089_v43, %v2070_v0  ;;  %v3469_v0 = vld [vmem:[%s4415_s29] ss:$0 sm:$0xff] }
 0x55c   : > { %v2076_v61 = vmul.f32 %v4109_v53, %v4109_v53 }
 0x55e   : > { %v2083_v1 = vsel %vm808_vm1, %v2076_v61, 0.0 }
 0x55f   : > { %2084 = vadd.xlane.f32.xlu2 %v2083_v1 }
 0x5c2   : > { %v2079_v10 = vpop.xlane.xlu0 %2078 }
 0x5c3   : > { %v2086_v54 = vmul.f32 %v2079_v10, %v3782_v15 }
 0x5c5   : > { %v2089_v20 = vadd.f32 1e-05, %v2086_v54 }
 0x5c7   : > { %3527 = vrsqrt.f32 %v2089_v20  ;;  %vm2098_vm0 = vweird.f32 %v2089_v20 }
 0x5ca   : > { %v2082_v45 = vpop.xlane.xlu1 %2081 }
 0x5cb   : > { %v2087_v25 = vmul.f32 %v2082_v45, %v3782_v15 }
 0x5cd   : > { %v3528_v21 = vpop.eup %3527  ;;  %v2090_v18 = vadd.f32 1e-05, %v2087_v25 }
 0x5ce   : > { %v2093_v46 = vmul.f32 %v3528_v21, %v2089_v20  ;;  %vm2099_vm15 = vweird.f32 %v3528_v21 }
 0x5cf   : > { %3529 = vrsqrt.f32 %v2090_v18  ;;  %vm2100_vm2 = vmor %vm2098_vm0, %vm2099_vm15  ;;  %vm2108_vm4 = vweird.f32 %v2090_v18 }
 0x5d0   : > { %v2094_v27 = vmul.f32 %v3528_v21, %v2093_v46 }
 0x5d2   : > { %v2095_v28 = vmul.f32 0.5, %v2094_v27  ;;  %v2085_v29 = vpop.xlane.xlu2 %2084 }
 0x5d3   : > { %v2088_v30 = vmul.f32 %v2085_v29, %v3782_v15 }
 0x5d4   : > { %v2096_v32 = vsub.f32 1.5, %v2095_v28 }
 0x5d5   : > { %v3530_v19 = vpop.eup %3529  ;;  %v2091_v33 = vadd.f32 1e-05, %v2088_v30 }
 0x5d6   : > { %v2097_v26 = vmul.f32 %v3528_v21, %v2096_v32  ;;  %v2103_v35 = vmul.f32 %v3530_v19, %v2090_v18  ;;  %vm2109_vm3 = vweird.f32 %v3530_v19 }
 0x5d7   : > { %3531 = vrsqrt.f32 %v2091_v33  ;;  %vm2110_vm5 = vmor %vm2108_vm4, %vm2109_vm3  ;;  %vm2118_vm7 = vweird.f32 %v2091_v33 }
 0x5d8   : > { %v2104_v36 = vmul.f32 %v3530_v19, %v2103_v35  ;;  %v2101_v37 = vsel %vm2100_vm2, %v3528_v21, %v2097_v26 }
 0x5d9   : > { %v2122_v56 = vmul.f32 %v2101_v37, %v4095_v58 }
 0x5da   : > { %v2105_v38 = vmul.f32 0.5, %v2104_v36 }
 0x5db   : > { %v2128_v61 = vmul.f32 %v3468_v59, %v2122_v56 }
 0x5dc   : > { %v2106_v55 = vsub.f32 1.5, %v2105_v38 }
 0x5dd   : > { %v3532_v57 = vpop.eup %3531  ;;  %v2134_v3 = vadd.f32 %v3469_v0, %v2128_v61 }
 0x5de   : > { %v2107_v51 = vmul.f32 %v3530_v19, %v2106_v55  ;;  %v2113_v48 = vmul.f32 %v3532_v57, %v2091_v33  ;;  %vm2119_vm6 = vweird.f32 %v3532_v57 }
 0x5df   : > { %vm2120_vm8 = vmor %vm2118_vm7, %vm2119_vm6 }
 0x5e0   : > { %v2111_v47 = vsel %vm2110_vm5, %v3530_v19, %v2107_v51  ;;  %v2114_v62 = vmul.f32 %v3532_v57, %v2113_v48 }
 0x5e1   : > { %v2123_v1 = vmul.f32 %v2111_v47, %v4102_v41 }
 0x5e2   : > { %v2115_v44 = vmul.f32 0.5, %v2114_v62 }
 0x5e3   : > { %v2129_v2 = vmul.f32 %v3468_v59, %v2123_v1 }
 0x5e4   : > { %v2116_v58 = vsub.f32 1.5, %v2115_v44 }
 0x5e5   : > { %v2135_v4 = vadd.f32 %v3469_v0, %v2129_v2 }
 0x5e6   : > { %v2117_v5 = vmul.f32 %v3532_v57, %v2116_v58 }
 0x5e7   : > { %v2137_v6 = vpack.c.bf16 %v2135_v4, %v2134_v3 }
 0x5e8   : > { %v2121_v8 = vsel %vm2120_vm8, %v3532_v57, %v2117_v5 }
 0x5e9   : > { %3266 = vmatmul.msk.bf16.vlgmr.msra.gmra.mxu0 %vm808_vm1, %v2137_v6  ;;  %3300 = vmatmul.msk.bf16.vlgmr.msra.gmra.mxu1 %vm808_vm1, %v2137_v6  ;;  %v2124_v41 = vmul.f32 %v2121_v8, %v4109_v53  ;;  %v3470_v53 = vld [vmem:[%s775_s7] ss:$0 sm:$0xff]  ;;  %s3589_s7 = smov 4  }
 0x5ea   : > { %3302 = vmatmul.msk.bf16.vlgmr.msra.gmra.mxu2 %vm808_vm1, %v2137_v6  ;;  %3304 = vmatmul.msk.bf16.vlgmr.msrb.gmra.mxu3 %vm808_vm1, %v2137_v6 }
 0x5eb   : > { %v2130_v7 = vmul.f32 %v3468_v59, %v2124_v41 }
 0x5ed   : > { %v2136_v9 = vadd.f32 %v3469_v0, %v2130_v7 }
 0x5ef   : > { %v2138_v10 = vpack.c.bf16 %v2136_v9, %v2136_v9 }
 0x5f9   : > { %3267 = vmatmul.msk.bf16.gmra.mxu0 %vm808_vm1, %v2138_v10  ;;  %3301 = vmatmul.msk.bf16.gmra.mxu1 %vm808_vm1, %v2138_v10 }
 0x5fa   : > { %3303 = vmatmul.msk.bf16.gmra.mxu2 %vm808_vm1, %v2138_v10  ;;  %3305 = vmatmul.msk.bf16.gmra.mxu3 %vm808_vm1, %v2138_v10 }
 0x609   : > { %3306 = vmatmul.msk.bf16.vlgmr.msrb.gmra.mxu0 %vm808_vm1, %v2137_v6 }
 0x619   : > { %3307 = vmatmul.msk.bf16.gmra.mxu0 %vm808_vm1, %v2138_v10 }
 0x666   : > { %v2174_v11 = vpop.f32.mrf.mxu0  ;;  %v4163_v54 = vpop.f32.mrf.mxu1 }
 0x667   : > { %v4165_v12 = vadd.f32 %v3470_v53, %v2174_v11  ;;  %v2438_v13 = vsub.f32 0.0, %v4163_v54 }
 0x669   : > { %v2444_v63 = vmul.f32 1.442695, %v2438_v13  ;;  %v2184_v14 = vsel %vm2183_vm9, %v4165_v12, -inf }
 0x66a   : > { %2185 = vmax.xlane.f32.xlu0 %v2184_v14 }
 0x66b   : > { %3533 = vpow2.f32 %v2444_v63 }
 0x66d   : > { %v4170_v16 = vpop.f32.mrf.mxu2  ;;  %v4172_v17 = vpop.f32.mrf.mxu3 }
 0x66e   : > { %v2439_v49 = vsub.f32 0.0, %v4170_v16  ;;  %v2176_v20 = vpop.f32.mrf.mxu0  ;;  %v4175_v22 = vpop.f32.mrf.mxu1 }
 0x66f   : > { %v4177_v23 = vadd.f32 %v3470_v53, %v2176_v20  ;;  %v2440_v24 = vsub.f32 0.0, %v4175_v22 }
 0x670   : > { %v2446_v45 = vmul.f32 1.442695, %v2439_v49 }
 0x671   : > { %v3534_v25 = vpop.eup %3533  ;;  %v2448_v21 = vmul.f32 1.442695, %v2440_v24  ;;  %v2187_v18 = vsel %vm2183_vm9, %v4177_v23, -inf }
 0x672   : > { %v2456_v46 = vadd.f32 1.0, %v3534_v25  ;;  %3535 = vpow2.f32 %v2446_v45  ;;  %2188 = vmax.xlane.f32.xlu1 %v2187_v18 }
 0x673   : > { %3537 = vpow2.f32 %v2448_v21 }
 0x674   : > { %3539 = vrcp.f32 %v2456_v46  ;;  %v2473_v59 = vand.u32 2147483648, %v2456_v46  ;;  %v2471_v47 = vand.u32 2147483647, %v2456_v46  ;;  %vm2467_vm11 = vweird.f32 %v2456_v46 }
 0x675   : > { %v4182_v27 = vpop.f32.mrf.mxu2  ;;  %v4184_v28 = vpop.f32.mrf.mxu3 }
 0x676   : > { %v2441_v29 = vsub.f32 0.0, %v4182_v27  ;;  %v2179_v30 = vpop.f32.mrf.mxu0  ;;  %v4187_v32 = vpop.f32.mrf.mxu1  ;;  %v2474_v58 = vor.u32 1.1754944e-38, %v2473_v59  ;;  %vm2472_vm14 = vcmp.eq.f32.partialorder %v2471_v47, 8.507059e+37 }
 0x677   : > { %v4189_v19 = vadd.f32 %v3470_v53, %v2179_v30  ;;  %v2442_v33 = vsub.f32 0.0, %v4187_v32 }
 0x678   : > { %v3536_v26 = vpop.eup %3535  ;;  %v2450_v35 = vmul.f32 1.442695, %v2441_v29 }
 0x679   : > { %v3538_v36 = vpop.eup %3537  ;;  %v4192_v37 = vadd.f32 1.0, %v3536_v26  ;;  %v2452_v38 = vmul.f32 1.442695, %v2442_v33  ;;  %v2190_v39 = vsel %vm2183_vm9, %v4189_v19, -inf }
 0x67a   : > { %v3540_v34 = vpop.eup %3539  ;;  %v4196_v40 = vadd.f32 1.0, %v3538_v36  ;;  %3541 = vpow2.f32 %v2450_v35  ;;  %2191 = vmax.xlane.f32.xlu2 %v2190_v39 }
 0x67b   : > { %v2463_v42 = vmul.f32 %v3540_v34, %v2456_v46  ;;  %3543 = vrcp.f32 %v4192_v37  ;;  %vm2468_vm10 = vweird.f32 %v3540_v34  ;;  %v2486_v7 = vand.u32 2147483647, %v4192_v37 }
 0x67c   : > { %3545 = vrcp.f32 %v4196_v40  ;;  %vm2469_vm13 = vmor %vm2467_vm11, %vm2468_vm10  ;;  %v2488_v10 = vand.u32 2147483648, %v4192_v37  ;;  %v2501_v49 = vand.u32 2147483647, %v4196_v40  ;;  %v2503_v20 = vand.u32 2147483648, %v4196_v40 }
 0x67d   : > { %v2464_v52 = vsub.f32 1.0, %v2463_v42  ;;  %3547 = vpow2.f32 %v2452_v38  ;;  %v4200_v55 = vpop.f32.mrf.mxu2  ;;  %v4202_v57 = vpop.f32.mrf.mxu3  ;;  %vm2482_vm2 = vweird.f32 %v4192_v37  ;;  %vm2497_vm4 = vweird.f32 %v4196_v40 }
 0x67e   : > { %v2443_v56 = vsub.f32 0.0, %v4200_v55  ;;  %v2181_v60 = vpop.f32.mrf.mxu0  ;;  %v2382_v51 = vpop.f32.mrf.mxu1  ;;  %v2489_v46 = vor.u32 1.1754944e-38, %v2488_v10  ;;  %vm2487_vm5 = vcmp.eq.f32.partialorder %v2486_v7, 8.507059e+37  ;;  %vm2502_vm7 = vcmp.eq.f32.partialorder %v2501_v49, 8.507059e+37 }
 0x67f   : > { %v2465_v48 = vmul.f32 %v3540_v34, %v2464_v52 }
 0x680   : > { %v3542_v62 = vpop.eup %3541  ;;  %v2454_v0 = vmul.f32 1.442695, %v2443_v56 }
 0x681   : > { %v3544_v61 = vpop.eup %3543  ;;  %v2466_v1 = vadd.f32 %v3540_v34, %v2465_v48  ;;  %v4205_v44 = vadd.f32 1.0, %v3542_v62 }
 0x682   : > { %v3546_v2 = vpop.eup %3545  ;;  %v2478_v3 = vmul.f32 %v3544_v61, %v4192_v37  ;;  %3549 = vpow2.f32 %v2454_v0  ;;  %vm2483_vm15 = vweird.f32 %v3544_v61 }
 0x683   : > { %v3548_v4 = vpop.eup %3547  ;;  %v2470_v5 = vsel %vm2469_vm13, %v3540_v34, %v2466_v1  ;;  %v2493_v6 = vmul.f32 %v3546_v2, %v4196_v40  ;;  %3551 = vrcp.f32 %v4205_v44  ;;  %vm2498_vm0 = vweird.f32 %v3546_v2  ;;  %vm2484_vm3 = vmor %vm2482_vm2, %vm2483_vm15 }
 0x684   : > { %v2475_v8 = vsel %vm2472_vm14, %v2474_v58, %v2470_v5  ;;  %v2479_v41 = vsub.f32 1.0, %v2478_v3  ;;  %v4213_v11 = vadd.f32 1.0, %v3548_v4  ;;  %vm2499_vm6 = vmor %vm2497_vm4, %vm2498_vm0  ;;  %v2516_v40 = vand.u32 2147483647, %v4205_v44 }
 0x685   : > { %v2552_v9 = vmul.f32 %v2475_v8, %v4163_v54  ;;  %v2494_v53 = vsub.f32 1.0, %v2493_v6  ;;  %v2400_v13 = vpop.f32.mrf.mxu2  ;;  %v2418_v63 = vpop.f32.mrf.mxu3  ;;  %v2518_v52 = vand.u32 2147483648, %v4205_v44  ;;  %vm2512_vm10 = vweird.f32 %v4205_v44 }
 0x686   : > { %v2480_v14 = vmul.f32 %v3544_v61, %v2479_v41  ;;  %v2429_v24 = vpop.f32.mrf.mxu0  ;;  %3553 = vrcp.f32 %v4213_v11  ;;  %vm2517_vm13 = vcmp.eq.f32.partialorder %v2516_v40, 8.507059e+37  ;;  %v2531_v0 = vand.u32 2147483647, %v4213_v11 }
 0x687   : > { %v4218_v45 = vmul.f32 %v2552_v9, %v4172_v17  ;;  %v2495_v25 = vmul.f32 %v3546_v2, %v2494_v53  ;;  %v2504_v17 = vor.u32 1.1754944e-38, %v2503_v20  ;;  %vm2527_vm15 = vweird.f32 %v4213_v11 }
 0x688   : > { %v3550_v54 = vpop.eup %3549  ;;  %v2481_v21 = vadd.f32 %v3544_v61, %v2480_v14  ;;  %vm2532_vm2 = vcmp.eq.f32.partialorder %v2531_v0, 8.507059e+37 }
 0x689   : > { %v3552_v18 = vpop.eup %3551  ;;  %v2496_v29 = vadd.f32 %v3546_v2, %v2495_v25  ;;  %v2461_v30 = vadd.f32 1.0, %v3550_v54 }
 0x68a   : > { %v2485_v33 = vsel %vm2484_vm3, %v3544_v61, %v2481_v21  ;;  %v2508_v26 = vmul.f32 %v3552_v18, %v4205_v44  ;;  %vm2513_vm8 = vweird.f32 %v3552_v18  ;;  %v2533_v61 = vand.u32 2147483648, %v4213_v11 }
 0x68b   : > { %v2490_v35 = vsel %vm2487_vm5, %v2489_v46, %v2485_v33  ;;  %v2500_v36 = vsel %vm2499_vm6, %v3546_v2, %v2496_v29  ;;  %3555 = vrcp.f32 %v2461_v30  ;;  %vm2514_vm11 = vmor %vm2512_vm10, %vm2513_vm8  ;;  %v2546_v6 = vand.u32 2147483647, %v2461_v30 }
 0x68c   : > { %v2553_v38 = vmul.f32 %v2490_v35, %v4170_v16  ;;  %v2505_v37 = vsel %vm2502_vm7, %v2504_v17, %v2500_v36  ;;  %v2509_v39 = vsub.f32 1.0, %v2508_v26  ;;  %v3554_v34 = vpop.eup %3553  ;;  %v2534_v5 = vor.u32 1.1754944e-38, %v2533_v61 }
 0x68d   : > { %v2554_v42 = vmul.f32 %v2505_v37, %v4175_v22  ;;  %v2523_v56 = vmul.f32 %v3554_v34, %v4213_v11  ;;  %v2519_v22 = vor.u32 1.1754944e-38, %v2518_v52  ;;  %vm2528_vm14 = vweird.f32 %v3554_v34 }
 0x68e   : > { %v2510_v59 = vmul.f32 %v3552_v18, %v2509_v39  ;;  %v4229_v60 = vmul.f32 %v2553_v38, %v2429_v24  ;;  %v2431_v51 = vpop.f32.mrf.mxu0  ;;  %vm2529_vm0 = vmor %vm2527_vm15, %vm2528_vm14  ;;  %v2548_v8 = vand.u32 2147483648, %v2461_v30  ;;  %vm2542_vm4 = vweird.f32 %v2461_v30 }
 0x68f   : > { %v4232_v48 = vmul.f32 %v2554_v42, %v4184_v28  ;;  %v2524_v47 = vsub.f32 1.0, %v2523_v56  ;;  %vm2547_vm6 = vcmp.eq.f32.partialorder %v2546_v6, 8.507059e+37 }
 0x690   : > { %v2511_v16 = vadd.f32 %v3552_v18, %v2510_v59 }
 0x691   : > { %v3556_v62 = vpop.eup %3555  ;;  %v2525_v2 = vmul.f32 %v3554_v34, %v2524_v47 }
 0x692   : > { %v2515_v1 = vsel %vm2514_vm11, %v3552_v18, %v2511_v16  ;;  %v2538_v58 = vmul.f32 %v3556_v62, %v2461_v30  ;;  %vm2543_vm3 = vweird.f32 %v3556_v62 }
 0x693   : > { %v2520_v3 = vsel %vm2517_vm13, %v2519_v22, %v2515_v1  ;;  %v2526_v4 = vadd.f32 %v3554_v34, %v2525_v2  ;;  %vm2544_vm5 = vmor %vm2542_vm4, %vm2543_vm3 }
 0x694   : > { %v2555_v28 = vmul.f32 %v2520_v3, %v4182_v27  ;;  %v2539_v44 = vsub.f32 1.0, %v2538_v58  ;;  %v2549_v27 = vor.u32 1.1754944e-38, %v2548_v8 }
 0x695   : > { %v2530_v41 = vsel %vm2529_vm0, %v3554_v34, %v2526_v4 }
 0x696   : > { %v2540_v7 = vmul.f32 %v3556_v62, %v2539_v44  ;;  %v4239_v9 = vmul.f32 %v2555_v28, %v2431_v51  ;;  %v2434_v10 = vpop.f32.mrf.mxu0  ;;  %v2535_v53 = vsel %vm2532_vm2, %v2534_v5, %v2530_v41 }
 0x697   : > { %v2556_v13 = vmul.f32 %v2535_v53, %v4187_v32 }
 0x698   : > { %v2541_v63 = vadd.f32 %v3556_v62, %v2540_v7 }
 0x699   : > { %v4243_v14 = vmul.f32 %v2556_v13, %v4202_v57 }
 0x69a   : > { %v2545_v11 = vsel %vm2544_vm5, %v3556_v62, %v2541_v63 }
 0x69b   : > { %v2550_v49 = vsel %vm2547_vm6, %v2549_v27, %v2545_v11 }
 0x69c   : > { %v2557_v20 = vmul.f32 %v2550_v49, %v4200_v55 }
 0x69e   : > { %v4246_v24 = vmul.f32 %v2557_v20, %v2434_v10  ;;  %v2436_v25 = vpop.f32.mrf.mxu0 }
 0x6dd   : > { %v2186_v54 = vpop.xlane.xlu0 %2185 }
 0x6de   : > { %v2193_v21 = vsub.f32 %v4165_v12, %v2186_v54 }
 0x6e0   : > { %v2196_v18 = vmul.f32 1.442695, %v2193_v21 }
 0x6e2   : > { %3557 = vpow2.f32 %v2196_v18 }
 0x6e5   : > { %v2189_v32 = vpop.xlane.xlu1 %2188 }
 0x6e6   : > { %v2194_v46 = vsub.f32 %v4177_v23, %v2189_v32  ;;  %v2265_v32 = vlaneseq }
 0x6e8   : > { %v3558_v29 = vpop.eup %3557  ;;  %v2198_v30 = vmul.f32 1.442695, %v2194_v46  ;;  %v2266_v46 = vand.u32 127, %v2265_v32 }
 0x6e9   : > { %v2202_v33 = vsel %vm2183_vm9, %v3558_v29, 0.0 }
 0x6ea   : > { %3559 = vpow2.f32 %v2198_v30  ;;  %2203 = vadd.xlane.f32.xlu0 %v2202_v33 }
 0x6ed   : > { %v2192_v57 = vpop.xlane.xlu2 %2191 }
 0x6ee   : > { %v2195_v55 = vsub.f32 %v4189_v19, %v2192_v57 }
 0x6f0   : > { %v3560_v17 = vpop.eup %3559  ;;  %v2200_v26 = vmul.f32 1.442695, %v2195_v55 }
 0x6f1   : > { %v2205_v35 = vsel %vm2183_vm9, %v3560_v17, 0.0 }
 0x6f2   : > { %3561 = vpow2.f32 %v2200_v26  ;;  %2206 = vadd.xlane.f32.xlu1 %v2205_v35 }
 0x6f8   : > { %v3562_v36 = vpop.eup %3561 }
 0x6f9   : > { %v2208_v38 = vsel %vm2183_vm9, %v3562_v36, 0.0 }
 0x6fa   : > { %2209 = vadd.xlane.f32.xlu2 %v2208_v38 }
 0x75d   : > { %v2204_v37 = vpop.xlane.xlu0 %2203 }
 0x75e   : > { %3563 = vrcp.f32 %v2204_v37  ;;  %v2222_v59 = vand.u32 2147483648, %v2204_v37  ;;  %v2220_v56 = vand.u32 2147483647, %v2204_v37  ;;  %vm2216_vm8 = vweird.f32 %v2204_v37 }
 0x760   : > { %v2223_v47 = vor.u32 1.1754944e-38, %v2222_v59  ;;  %vm2221_vm11 = vcmp.eq.f32.partialorder %v2220_v56, 8.507059e+37 }
 0x764   : > { %v3564_v39 = vpop.eup %3563 }
 0x765   : > { %v2212_v34 = vmul.f32 %v3564_v39, %v2204_v37  ;;  %v2207_v42 = vpop.xlane.xlu1 %2206  ;;  %vm2217_vm7 = vweird.f32 %v3564_v39 }
 0x766   : > { %3565 = vrcp.f32 %v2207_v42  ;;  %vm2218_vm10 = vmor %vm2216_vm8, %vm2217_vm7  ;;  %v2237_v2 = vand.u32 2147483648, %v2207_v42  ;;  %v2235_v28 = vand.u32 2147483647, %v2207_v42  ;;  %vm2231_vm14 = vweird.f32 %v2207_v42 }
 0x767   : > { %v2213_v40 = vsub.f32 1.0, %v2212_v34 }
 0x768   : > { %v2238_v6 = vor.u32 1.1754944e-38, %v2237_v2  ;;  %vm2236_vm0 = vcmp.eq.f32.partialorder %v2235_v28, 8.507059e+37  ;;  %v3438_v2 = vld [vmem:[%s3761_s5 + $0x30] sm:$0xff] }
 0x769   : > { %v2214_v52 = vmul.f32 %v3564_v39, %v2213_v40 }
 0x76b   : > { %v2215_v51 = vadd.f32 %v3564_v39, %v2214_v52 }
 0x76c   : > { %v3566_v16 = vpop.eup %3565 }
 0x76d   : > { %v2227_v62 = vmul.f32 %v3566_v16, %v2207_v42  ;;  %v2210_v22 = vpop.xlane.xlu2 %2209  ;;  %v2219_v0 = vsel %vm2218_vm10, %v3564_v39, %v2215_v51  ;;  %vm2232_vm13 = vweird.f32 %v3566_v16 }
 0x76e   : > { %3567 = vrcp.f32 %v2210_v22  ;;  %v2224_v1 = vsel %vm2221_vm11, %v2223_v47, %v2219_v0  ;;  %vm2233_vm15 = vmor %vm2231_vm14, %vm2232_vm13  ;;  %v2252_v13 = vand.u32 2147483648, %v2210_v22  ;;  %v2250_v27 = vand.u32 2147483647, %v2210_v22  ;;  %v3439_v0 = vld [vmem:[%s3761_s5 + $0x38] sm:$0xff] }
 0x76f   : > { %v2228_v61 = vsub.f32 1.0, %v2227_v62  ;;  %v4254_v58 = vmul.f32 %v3558_v29, %v2224_v1  ;;  %vm2246_vm3 = vweird.f32 %v2210_v22  ;;  %2723 = vmatpush.bf16.msrb.mxu1 %v3439_v0 }
 0x770   : > { %v2253_v20 = vor.u32 1.1754944e-38, %v2252_v13  ;;  %vm2251_vm5 = vcmp.eq.f32.partialorder %v2250_v27, 8.507059e+37  ;;  %v3434_v13 = vld [vmem:[%s3761_s5 + $0x10] sm:$0xff]  ;;  %v3433_v27 = vld [vmem:[%s3761_s5 + $0x8] sm:$0xff] }
 0x771   : > { %v2229_v3 = vmul.f32 %v3566_v16, %v2228_v61  ;;  %v2256_v4 = vsel %vm2183_vm9, %v4254_v58, -inf  ;;  %v3447_v61 = vld [vmem:[%s3761_s5 + $0x78] sm:$0xff] }
 0x772   : > { %2257 = vmax.xlane.f32.xlu0 %v2256_v4  ;;  %2741 = vmatpush.bf16.msrb.mxu2 %v3447_v61 }
 0x773   : > { %v2230_v44 = vadd.f32 %v3566_v16, %v2229_v3  ;;  %v3446_v3 = vld [vmem:[%s3761_s5 + $0x70] sm:$0xff]  ;;  %2724 = vmatpush.bf16.msrb.mxu1 %v3438_v2 }
 0x774   : > { %v3568_v5 = vpop.eup %3567 }
 0x775   : > { %v2242_v8 = vmul.f32 %v3568_v5, %v2210_v22  ;;  %v2234_v41 = vsel %vm2233_vm15, %v3566_v16, %v2230_v44  ;;  %vm2247_vm2 = vweird.f32 %v3568_v5  ;;  %v3437_v44 = vld [vmem:[%s3761_s5 + $0x28] sm:$0xff] }
 0x776   : > { %v2239_v7 = vsel %vm2236_vm0, %v2238_v6, %v2234_v41  ;;  %vm2248_vm4 = vmor %vm2246_vm3, %vm2247_vm2  ;;  %2742 = vmatpush.bf16.msrb.mxu2 %v3446_v3  ;;  %v3444_v41 = vld [vmem:[%s3761_s5 + $0x60] sm:$0xff] }
 0x777   : > { %v2243_v10 = vsub.f32 1.0, %v2242_v8  ;;  %v4258_v53 = vmul.f32 %v3560_v17, %v2239_v7  ;;  %2725 = vmatpush.bf16.msrb.mxu1 %v3437_v44  ;;  %v3436_v8 = vld [vmem:[%s3761_s5 + $0x20] sm:$0xff]  ;;  %v3435_v7 = vld [vmem:[%s3761_s5 + $0x18] sm:$0xff] }
 0x779   : > { %v2244_v63 = vmul.f32 %v3568_v5, %v2243_v10  ;;  %v2259_v11 = vsel %vm2183_vm9, %v4258_v53, -inf  ;;  %v3443_v10 = vld [vmem:[%s3761_s5 + $0x58] sm:$0xff] }
 0x77a   : > { %2260 = vmax.xlane.f32.xlu1 %v2259_v11  ;;  %v3441_v11 = vld [vmem:[%s3761_s5 + $0x48] sm:$0xff] }
 0x77b   : > { %v2245_v49 = vadd.f32 %v3568_v5, %v2244_v63  ;;  %2726 = vmatpush.bf16.msrb.mxu1 %v3436_v8  ;;  %v3442_v63 = vld [vmem:[%s3761_s5 + $0x50] sm:$0xff] }
 0x77d   : > { %v2249_v25 = vsel %vm2248_vm4, %v3568_v5, %v2245_v49  ;;  %v3445_v5 = vld [vmem:[%s3761_s5 + $0x68] sm:$0xff]  ;;  %v3440_v49 = vld [vmem:[%s3761_s5 + $0x40] sm:$0xff] }
 0x77e   : > { %v2254_v54 = vsel %vm2251_vm5, %v2253_v20, %v2249_v25  ;;  %2743 = vmatpush.bf16.msrb.mxu2 %v3445_v5 }
 0x77f   : > { %v4262_v21 = vmul.f32 %v3562_v36, %v2254_v54  ;;  %2727 = vmatpush.bf16.msrb.mxu1 %v3435_v7 }
 0x781   : > { %v2262_v18 = vsel %vm2183_vm9, %v4262_v21, -inf }
 0x782   : > { %2263 = vmax.xlane.f32.xlu2 %v2262_v18  ;;  %2744 = vmatpush.bf16.msrb.mxu2 %v3444_v41 }
 0x783   : > { %2728 = vmatpush.bf16.msrb.mxu1 %v3434_v13 }
 0x786   : > { %2745 = vmatpush.bf16.msrb.mxu2 %v3443_v10 }
 0x787   : > { %2729 = vmatpush.bf16.msrb.mxu1 %v3433_v27 }
 0x78a   : > { %2746 = vmatpush.bf16.msrb.mxu2 %v3442_v63 }
 0x78e   : > { %2747 = vmatpush.bf16.msrb.mxu2 %v3441_v11 }
 0x792   : > { %2748 = vmatpush.bf16.msrb.mxu2 %v3440_v49 }
 0x7e5   : > { %v2258_v29 = vpop.xlane.xlu0 %2257 }
 0x7e6   : > { %vm2267_vm6 = vcmp.ge.f32.partialorder %v4254_v58, %v2258_v29 }
 0x7e7   : > { %v2270_v30 = vsel %vm2267_vm6, %v2266_v46, 4 }
 0x7e8   : > { %v2273_v33 = vsel %vm2183_vm9, %v2270_v30, 2147483647 }
 0x7e9   : > { %v2275_v57 = vshra.s32 %v2273_v33, 16  ;;  %v2274_v52 = vand.u32 65535, %v2273_v33 }
 0x7eb   : > { %v2277_v55 = vcvt.s32.f32 %v2275_v57  ;;  %v2276_v56 = vcvt.s32.f32 %v2274_v52 }
 0x7ed   : > { %v2261_v17 = vpop.xlane.xlu1 %2260  ;;  %2278 = vmin.xlane.f32.xlu0 %v2277_v55 }
 0x7ee   : > { %vm2268_vm7 = vcmp.ge.f32.partialorder %v4258_v53, %v2261_v17  ;;  %v3590_v17 = vmov 0.0  }
 0x7ef   : > { %v2271_v26 = vsel %vm2268_vm7, %v2266_v46, 4 }
 0x7f0   : > { %v2288_v35 = vsel %vm2183_vm9, %v2271_v26, 2147483647 }
 0x7f1   : > { %v2290_v36 = vshra.s32 %v2288_v35, 16  ;;  %v2289_v16 = vand.u32 65535, %v2288_v35 }
 0x7f3   : > { %v2292_v38 = vcvt.s32.f32 %v2290_v36  ;;  %v2291_v62 = vcvt.s32.f32 %v2289_v16 }
 0x7f5   : > { %v2264_v37 = vpop.xlane.xlu2 %2263  ;;  %2293 = vmin.xlane.f32.xlu1 %v2292_v38 }
 0x7f6   : > { %vm2269_vm8 = vcmp.ge.f32.partialorder %v4262_v21, %v2264_v37 }
 0x7f7   : > { %v2272_v39 = vsel %vm2269_vm8, %v2266_v46, 4 }
 0x7f8   : > { %v2303_v34 = vsel %vm2183_vm9, %v2272_v39, 2147483647 }
 0x7f9   : > { %v2305_v42 = vshra.s32 %v2303_v34, 16  ;;  %v2304_v1 = vand.u32 65535, %v2303_v34 }
 0x7fb   : > { %v2307_v40 = vcvt.s32.f32 %v2305_v42  ;;  %v2306_v4 = vcvt.s32.f32 %v2304_v1 }
 0x7fd   : > { %2308 = vmin.xlane.f32.xlu2 %v2307_v40 }
 0x860   : > { %v2279_v59 = vpop.xlane.xlu0 %2278 }
 0x861   : > { %vm2280_vm10 = vcmp.eq.f32.partialorder %v2277_v55, %v2279_v59  ;;  %v2285_v20 = vcvt.f32.s32 %v2279_v59 }
 0x862   : > { %v2281_v51 = vsel %vm2280_vm10, %v2276_v56, inf }
 0x863   : > { %2282 = vmin.xlane.f32.xlu0 %v2281_v51  ;;  %v2286_v54 = vshll.u32 %v2285_v20, 16 }
 0x868   : > { %v2294_v47 = vpop.xlane.xlu1 %2293 }
 0x869   : > { %vm2295_vm11 = vcmp.eq.f32.partialorder %v2292_v38, %v2294_v47  ;;  %v2300_v18 = vcvt.f32.s32 %v2294_v47 }
 0x86a   : > { %v2296_v22 = vsel %vm2295_vm11, %v2291_v62, inf }
 0x86b   : > { %2297 = vmin.xlane.f32.xlu1 %v2296_v22  ;;  %v2301_v30 = vshll.u32 %v2300_v18, 16 }
 0x870   : > { %v4276_v28 = vpop.xlane.xlu2 %2308 }
 0x871   : > { %vm2310_vm13 = vcmp.eq.f32.partialorder %v2307_v40, %v4276_v28  ;;  %v2315_v36 = vcvt.f32.s32 %v4276_v28 }
 0x872   : > { %v2311_v6 = vsel %vm2310_vm13, %v2306_v4, inf }
 0x873   : > { %2312 = vmin.xlane.f32.xlu2 %v2311_v6  ;;  %v2316_v59 = vshll.u32 %v2315_v36, 16 }
 0x877   : > { %2768 = vrot.lane.b32.xlu0 %v4165_v12, %s3589_s7  ;;  %v3432_v12 = vld [vmem:[%s3761_s5] sm:$0xff] }
 0x878   : > { %2730 = vmatpush.bf16.msrb.mxu1 %v3432_v12 }
 0x884   : > { %2770 = vrot.lane.b32.xlu1 %v4177_v23, %s3589_s7 }
 0x88b   : > { %2772 = vrot.lane.b32.xlu2 %v4189_v19, %s3589_s7  ;;  %v2564_v19 = vld [vmem:[%s4416_s1] sm:$0x3] }
 0x88c   : > { %v2565_v32 = vperm.slane %v2564_v19, 0  ;;  %v2566_v46 = vperm.slane %v2564_v19, 1 }
 0x8d6   : > { %v2283_v23 = vpop.xlane.xlu0 %2282 }
 0x8d7   : > { %v2284_v25 = vcvt.f32.s32 %v2283_v23 }
 0x8d9   : > { %v2287_v29 = vadd.s32 %v2286_v54, %v2284_v25 }
 0x8db   : > { %vm2567_vm14 = vcmp.eq.s32.totalorder %v2565_v32, %v2287_v29  ;;  %vm2568_vm15 = vcmp.eq.s32.totalorder %v2566_v46, %v2287_v29 }
 0x8dc   : > { %v3308_v26 = vsel %vm2567_vm14, 1.0, %v3590_v17  ;;  %v3309_v35 = vsel %vm2568_vm15, 1.0, %v3590_v17 }
 0x8dd   : > { %v2585_v39 = vmul.f32 %v3308_v26, %v4218_v45  ;;  %v2586_v34 = vmul.f32 %v3309_v35, %v4229_v60 }
 0x8de   : > { %v2298_v33 = vpop.xlane.xlu1 %2297 }
 0x8df   : > { %v2299_v57 = vcvt.f32.s32 %v2298_v33 }
 0x8e1   : > { %v2302_v55 = vadd.s32 %v2301_v30, %v2299_v57 }
 0x8e3   : > { %vm2569_vm0 = vcmp.eq.s32.totalorder %v2565_v32, %v2302_v55  ;;  %vm2570_vm2 = vcmp.eq.s32.totalorder %v2566_v46, %v2302_v55 }
 0x8e4   : > { %v3310_v38 = vsel %vm2569_vm0, 1.0, %v3590_v17  ;;  %v3311_v37 = vsel %vm2570_vm2, 1.0, %v3590_v17 }
 0x8e5   : > { %v2587_v42 = vmul.f32 %v3310_v38, %v4232_v48  ;;  %v2588_v40 = vmul.f32 %v3311_v37, %v4239_v9 }
 0x8e6   : > { %v2313_v52 = vpop.xlane.xlu2 %2312 }
 0x8e7   : > { %v2591_v56 = vpack.c.bf16 %v2587_v42, %v2585_v39  ;;  %v2592_v51 = vpack.c.bf16 %v2588_v40, %v2586_v34  ;;  %v2314_v16 = vcvt.f32.s32 %v2313_v52 }
 0x8e9   : > { %v2317_v47 = vadd.s32 %v2316_v59, %v2314_v16  ;;  %2731 = vmatmul.bf16.vlgmr.msrb.gmra.mxu1 %v2591_v56  ;;  %2749 = vmatmul.bf16.vlgmr.msrb.gmra.mxu2 %v2592_v51  ;;  %v2769_v62 = vpop.permute.xlu0 %2768 }
 0x8ea   : > { %v2777_v45 = vsel %vm2183_vm9, %v4254_v58, %v2769_v62 }
 0x8eb   : > { %v2780_v60 = vsel %vm1374_vm12, %v2777_v45, 0.0  ;;  %vm2571_vm3 = vcmp.eq.s32.totalorder %v2565_v32, %v2317_v47  ;;  %vm2572_vm4 = vcmp.eq.s32.totalorder %v2566_v46, %v2317_v47 }
 0x8ec   : > { %2783 = vst [vmem:[%s3767_s26] sm:$0xff] %v2780_v60  ;;  %v3312_v0 = vsel %vm2571_vm3, 1.0, %v3590_v17  ;;  %v3313_v61 = vsel %vm2572_vm4, 1.0, %v3590_v17 }
 0x8ed   : > { %v2589_v1 = vmul.f32 %v3312_v0, %v4243_v14  ;;  %v2590_v2 = vmul.f32 %v3313_v61, %v4246_v24 }
 0x8ee   : > { %v2773_v48 = vpop.permute.xlu2 %2772 }
 0x8ef   : > { %v2779_v9 = vsel %vm2183_vm9, %v4262_v21, %v2773_v48  ;;  %v2593_v28 = vpack.c.bf16 %v2589_v1, %v2589_v1  ;;  %v2594_v4 = vpack.c.bf16 %v2590_v2, %v2590_v2 }
 0x8f0   : > { %v2782_v22 = vsel %vm1374_vm12, %v2779_v9, 0.0 }
 0x8f1   : > { %2785 = vst [vmem:[%s3767_s26 + $0x10] sm:$0xff] %v2782_v22 }
 0x8f6   : > { %v2771_v58 = vpop.permute.xlu1 %2770 }
 0x8f7   : > { %v2778_v3 = vsel %vm2183_vm9, %v4258_v53, %v2771_v58 }
 0x8f8   : > { %v2781_v44 = vsel %vm1374_vm12, %v2778_v3, 0.0 }
 0x8f9   : > { %2784 = vst [vmem:[%s3767_s26 + $0x8] sm:$0xff] %v2781_v44  ;;  %2736 = vmatmul.bf16.gmra.mxu1 %v2593_v28  ;;  %2754 = vmatmul.bf16.gmra.mxu2 %v2594_v4  ;;  %s4417_s26 = sld [smem:[#allocation14_spill]] (!%p3378_p5) }
 0x966   : > { %v2732_v21 = vpop.f32.mrf.mxu1 }
 0x96c   : > { %v2750_v5 = vpop.f32.mrf.mxu2 }
 0x96d   : > { %v2751_v6 = vadd.f32 %v2750_v5, %v2732_v21 }
 0x96e   : > { %v2734_v8 = vpop.f32.mrf.mxu1 }
 0x96f   : > { %v2759_v41 = vadd.f32 %v2751_v6, %v4073_v50 }
 0x971   : > { %2762 = vst.msk [vmem:[#allocation2] sm:$0xff] %vm808_vm1, %v2759_v41 }
 0x974   : > { %v2752_v14 = vpop.f32.mrf.mxu2 }
 0x975   : > { %v2753_v24 = vadd.f32 %v2752_v14, %v2734_v8 }
 0x976   : > { %v2737_v7 = vpop.f32.mrf.mxu1 }
 0x977   : > { %v2760_v53 = vadd.f32 %v2753_v24, %v4081_v31 }
 0x979   : > { %2763 = vst.msk [vmem:[#allocation2 + $0x8] sm:$0xff] %vm808_vm1, %v2760_v53 }
 0x97c   : > { %v2755_v10 = vpop.f32.mrf.mxu2 }
 0x97d   : > { %v2756_v13 = vadd.f32 %v2755_v10, %v2737_v7 }
 0x97e   : > { %v2739_v63 = vpop.f32.mrf.mxu1 }
 0x97f   : > { %v2761_v27 = vadd.f32 %v2756_v13, %v4089_v43 }
 0x980   : > { %2789 = sbr.rel (%p3378_p5) target bundleno = 2857 (0xb29), region = 100 }
 0x981   : > { %2764 = vst.msk [vmem:[#allocation2 + $0x10] sm:$0xff] %vm808_vm1, %v2761_v27 }
 0x984   : > { %v2757_v11 = vpop.f32.mrf.mxu2 }
 0x985   : > { %v2792_v50 = vsel %vm808_vm1, %v2759_v41, 0.0  ;;  %v2798_v12 = vsel %vm808_vm1, %v2761_v27, 0.0  ;;  %v2795_v31 = vsel %vm808_vm1, %v2760_v53, 0.0  ;;  %v3449_v17 = vld [vmem:[%s4417_s26 + $0x8] sm:$0xff]  ;;  %v3448_v36 = vld [vmem:[%s4417_s26] sm:$0xff] }
 0x986   : > { %2793 = vadd.xlane.f32.xlu0 %v2792_v50  ;;  %2799 = vadd.xlane.f32.xlu1 %v2798_v12  ;;  %v3573_v21 = vld [vmem:[%s4419_s24] ss:$0 sm:$0xff] }
 0x987   : > { %2900 = vmatpush.bf16.msra.mxu0 %v3449_v17  ;;  %3452 = vmatpush.bf16.msra.mxu1 %v3449_v17 }
 0x98b   : > { %2901 = vmatpush.bf16.msra.mxu0 %v3448_v36  ;;  %3453 = vmatpush.bf16.msra.mxu1 %v3448_v36 }
 0x98e   : > { %2796 = vadd.xlane.f32.xlu0 %v2795_v31 }
 0x9f9   : > { %v2794_v49 = vpop.xlane.xlu0 %2793  ;;  %v2800_v19 = vpop.xlane.xlu1 %2799 }
 0x9fa   : > { %v2801_v20 = vmul.f32 %v2794_v49, %v3782_v15  ;;  %v2803_v32 = vmul.f32 %v2800_v19, %v3782_v15 }
 0x9fc   : > { %v2804_v23 = vsub.f32 %v2759_v41, %v2801_v20  ;;  %v4330_v29 = vsub.f32 %v2761_v27, %v2803_v32 }
 0x9fe   : > { %v2807_v43 = vmul.f32 %v2804_v23, %v2804_v23  ;;  %v2809_v57 = vmul.f32 %v4330_v29, %v4330_v29 }
 0xa00   : > { %v2810_v25 = vsel %vm808_vm1, %v2807_v43, 0.0  ;;  %v2816_v55 = vsel %vm808_vm1, %v2809_v57, 0.0 }
 0xa01   : > { %2811 = vadd.xlane.f32.xlu1 %v2810_v25  ;;  %v2797_v54 = vpop.xlane.xlu0 %2796 }
 0xa02   : > { %v2802_v18 = vmul.f32 %v2797_v54, %v3782_v15 }
 0xa04   : > { %v2805_v46 = vsub.f32 %v2760_v53, %v2802_v18 }
 0xa06   : > { %v2808_v30 = vmul.f32 %v2805_v46, %v2805_v46 }
 0xa08   : > { %v2813_v33 = vsel %vm808_vm1, %v2808_v30, 0.0 }
 0xa09   : > { %2814 = vadd.xlane.f32.xlu2 %v2813_v33 }
 0xa11   : > { %2817 = vadd.xlane.f32.xlu2 %v2816_v55 }
 0xa74   : > { %v2812_v26 = vpop.xlane.xlu1 %2811 }
 0xa75   : > { %v2819_v35 = vmul.f32 %v2812_v26, %v3782_v15 }
 0xa77   : > { %v2822_v38 = vadd.f32 1e-05, %v2819_v35 }
 0xa79   : > { %3574 = vrsqrt.f32 %v2822_v38  ;;  %vm2831_vm9 = vweird.f32 %v2822_v38 }
 0xa7c   : > { %v2815_v37 = vpop.xlane.xlu2 %2814 }
 0xa7d   : > { %v2820_v39 = vmul.f32 %v2815_v37, %v3782_v15 }
 0xa7f   : > { %v3575_v34 = vpop.eup %3574  ;;  %v2823_v42 = vadd.f32 1e-05, %v2820_v39 }
 0xa80   : > { %v2826_v40 = vmul.f32 %v3575_v34, %v2822_v38  ;;  %vm2832_vm12 = vweird.f32 %v3575_v34 }
 0xa81   : > { %3576 = vrsqrt.f32 %v2823_v42  ;;  %vm2833_vm5 = vmor %vm2831_vm9, %vm2832_vm12  ;;  %vm2841_vm7 = vweird.f32 %v2823_v42 }
 0xa82   : > { %v2827_v52 = vmul.f32 %v3575_v34, %v2826_v40 }
 0xa84   : > { %v2828_v59 = vmul.f32 0.5, %v2827_v52  ;;  %v2818_v56 = vpop.xlane.xlu2 %2817 }
 0xa85   : > { %v2821_v51 = vmul.f32 %v2818_v56, %v3782_v15  ;;  %v3572_v15 = vld [vmem:[%s4418_s27] ss:$0 sm:$0xff] }
 0xa86   : > { %v2829_v16 = vsub.f32 1.5, %v2828_v59 }
 0xa87   : > { %v3577_v47 = vpop.eup %3576  ;;  %v2824_v62 = vadd.f32 1e-05, %v2821_v51 }
 0xa88   : > { %v2830_v45 = vmul.f32 %v3575_v34, %v2829_v16  ;;  %v2836_v60 = vmul.f32 %v3577_v47, %v2823_v42  ;;  %vm2842_vm6 = vweird.f32 %v3577_v47 }
 0xa89   : > { %3578 = vrsqrt.f32 %v2824_v62  ;;  %vm2843_vm8 = vmor %vm2841_vm7, %vm2842_vm6  ;;  %vm2851_vm11 = vweird.f32 %v2824_v62 }
 0xa8a   : > { %v2837_v48 = vmul.f32 %v3577_v47, %v2836_v60  ;;  %v2834_v9 = vsel %vm2833_vm5, %v3575_v34, %v2830_v45 }
 0xa8b   : > { %v2855_v1 = vmul.f32 %v2834_v9, %v2804_v23 }
 0xa8c   : > { %v2838_v22 = vmul.f32 0.5, %v2837_v48 }
 0xa8d   : > { %v2861_v44 = vmul.f32 %v3572_v15, %v2855_v1 }
 0xa8e   : > { %v2839_v0 = vsub.f32 1.5, %v2838_v22 }
 0xa8f   : > { %v3579_v61 = vpop.eup %3578  ;;  %v2867_v41 = vadd.f32 %v3573_v21, %v2861_v44 }
 0xa90   : > { %v2840_v2 = vmul.f32 %v3577_v47, %v2839_v0  ;;  %v2846_v58 = vmul.f32 %v3579_v61, %v2824_v62  ;;  %vm2852_vm10 = vweird.f32 %v3579_v61 }
 0xa91   : > { %vm2853_vm13 = vmor %vm2851_vm11, %vm2852_vm10 }
 0xa92   : > { %v2847_v3 = vmul.f32 %v3579_v61, %v2846_v58  ;;  %v2844_v28 = vsel %vm2843_vm8, %v3577_v47, %v2840_v2 }
 0xa93   : > { %v2856_v4 = vmul.f32 %v2844_v28, %v2805_v46 }
 0xa94   : > { %v2848_v5 = vmul.f32 0.5, %v2847_v3 }
 0xa95   : > { %v2862_v6 = vmul.f32 %v3572_v15, %v2856_v4 }
 0xa96   : > { %v2849_v8 = vsub.f32 1.5, %v2848_v5 }
 0xa97   : > { %v2868_v14 = vadd.f32 %v3573_v21, %v2862_v6 }
 0xa98   : > { %v2850_v24 = vmul.f32 %v3579_v61, %v2849_v8 }
 0xa99   : > { %v2870_v7 = vpack.c.bf16 %v2868_v14, %v2867_v41 }
 0xa9a   : > { %v2854_v53 = vsel %vm2853_vm13, %v3579_v61, %v2850_v24 }
 0xa9b   : > { %3387 = vmatmul.msk.bf16.vlgmr.msra.gmra.mxu0 %vm808_vm1, %v2870_v7  ;;  %v2857_v10 = vmul.f32 %v2854_v53, %v4330_v29 }
 0xa9d   : > { %v2863_v13 = vmul.f32 %v3572_v15, %v2857_v10 }
 0xa9f   : > { %v2869_v63 = vadd.f32 %v3573_v21, %v2863_v13 }
 0xaa1   : > { %v2871_v27 = vpack.c.bf16 %v2869_v63, %v2869_v63 }
 0xaa3   : > { %3388 = vmatmul.msk.bf16.vlgmr.msra.gmra.mxu1 %vm808_vm1, %v2871_v27 }
 0xb18   : > { %v2903_v11 = vpop.f32.mrf.mxu0 }
 0xb19   : > { %2912 = vst [vmem:[%s4420_s8] sm:$0xff] %v2903_v11 }
 0xb20   : > { %v2905_v50 = vpop.f32.mrf.mxu0  ;;  %v2908_v12 = vpop.f32.mrf.mxu1 }
 0xb21   : > { %2913 = vst [vmem:[%s4420_s8 + $0x8] sm:$0xff] %v2905_v50 }
 0xb22   : > { %2914 = vst [vmem:[%s4420_s8 + $0x10] sm:$0xff] %v2908_v12 }
 0xb28   : > { %v2910_v31 = vpop.f32.mrf.mxu1 }
 0xb29 PF: > { %s4421_s20 = sld [smem:[#allocation3_spill]] }
 0xb2f   : > { %s30_s0 = sadd.s32 1, %s4421_s20  }
 0xb30   : > { %p27_p6 = scmp.ge.s32.totalorder %s30_s0, 4  }
 0xb32   :  { %29 = sbr.rel (!%p27_p6) target bundleno = 13 (0xd), region = 171 }

</bundles_post_ra>
